<compile_context>
chip_gen: v6e
topology: v6e:2x2x1
jax: 0.10.0
libtpu: 0.0.40
codegen_flags: <defaults>
</compile_context>

<pallas_src>
from functools import partial

import jax
import jax.numpy as jnp
from jax import lax
from jax.experimental import pallas as pl
from jax.experimental.pallas import tpu as pltpu

EPS = 1e-5  # nn.BatchNorm3d default eps
VMEM_LIMIT = 32 * 1024 * 1024  # raise v5e's 16 MiB default; safe on v6e/v7x


# ----------------------------- Pallas kernels ------------------------------

def _conv1_bn_relu_kernel(x_ref, w_ref, s_ref, b_ref, o_ref):
    # x_ref: (TM, Cin) f32 tile, w_ref: (Cin, planes) bf16, s/b: (1, planes) f32
    y = jnp.dot(x_ref[...].astype(jnp.bfloat16), w_ref[...],
                preferred_element_type=jnp.float32)
    y = y * s_ref[...] + b_ref[...]
    o_ref[...] = jnp.maximum(y, 0.0).astype(o_ref.dtype)   # bf16 out


def _fused_conv2_conv3_kernel(t1a_ref, t1b_ref, t1c_ref, xres_ref,
                              w2_ref, w3_ref, s2_ref, b2_ref, s3_ref, b3_ref,
                              o_ref, *, H, W, P):
    """One output depth plane: conv2(3x3x3)+bn2+relu+conv3+bn3+residual+relu.

    t1{a,b,c}_ref: (H+2, W+2, P) bf16 zero-padded conv1-output planes at
                   depths d-1, d, d+1 (halo comes from the padded array).
    xres_ref:      (H*W, Cout) f32 residual plane.
    w2_ref:        (3, 9*P, P) bf16  -- taps folded into the K axis per kd.
    w3_ref:        (P, Cout) bf16.
    """
    HW = H * W
    planes_refs = (t1a_ref, t1b_ref, t1c_ref)

    acc = jnp.zeros((HW, P), jnp.float32)
    for kd in range(3):                                   # 3 dots, K = 9*P
        pv = planes_refs[kd][...]                         # (H+2, W+2, P) bf16
        patches = [pv[kh:kh + H, kw:kw + W, :].reshape(HW, P)
                   for kh in range(3) for kw in range(3)]
        col = jnp.concatenate(patches, axis=1)            # (HW, 9*P) im2col
        acc = acc + jnp.dot(col, w2_ref[kd],
                            preferred_element_type=jnp.float32)

    # bn2 + relu, then conv3 (1x1x1) + bn3 + residual + relu, all in-VMEM.
    y = jnp.maximum(acc * s2_ref[...] + b2_ref[...], 0.0).astype(jnp.bfloat16)
    z = jnp.dot(y, w3_ref[...], preferred_element_type=jnp.float32)
    z = z * s3_ref[...] + b3_ref[...] + xres_ref[...]
    o_ref[...] = jnp.maximum(z, 0.0).astype(o_ref.dtype)


# ------------------------------- wrappers -----------------------------------

def _fold_bn(gamma, beta, mean, var):
    scale = gamma / jnp.sqrt(var + EPS)
    shift = beta - mean * scale
    return scale.reshape(1, -1), shift.reshape(1, -1)


def _pick_rows_tile(m, target=512):
    """Largest multiple-of-16 divisor of m that is <= target (else m)."""
    if m <= target:
        return m
    start = (target // 16) * 16
    for t in range(start, 15, -16):
        if m % t == 0:
            return t
    return m


def bottleneck_forward(x_ncdhw, p):
    """Bottleneck forward (stride=1, dilation=1, downsample=None, eval BN).

    x_ncdhw: (N, inplanes, D, H, W) float32 (PyTorch layout).
    Returns: (N, inplanes, D, H, W) float32.
    """
    x = jnp.transpose(x_ncdhw, (0, 2, 3, 4, 1))            # NDHWC
    N, D, H, W, Cin = x.shape
    P = p["w1k"].shape[1]                                  # planes
    assert Cin == 4 * P, "downsample=None requires inplanes == 4*planes"
    HW = H * W
    M = N * D * HW

    s1, b1 = _fold_bn(p["bn1_g"], p["bn1_b"], p["bn1_m"], p["bn1_v"])
    s2, b2 = _fold_bn(p["bn2_g"], p["bn2_b"], p["bn2_m"], p["bn2_v"])
    s3, b3 = _fold_bn(p["bn3_g"], p["bn3_b"], p["bn3_m"], p["bn3_v"])

    # ---- stage 1: conv1 (1x1x1) + bn1 + relu, voxel-tiled matmul ------------
    tm = _pick_rows_tile(M)
    t1 = pl.pallas_call(
        _conv1_bn_relu_kernel,
        out_shape=jax.ShapeDtypeStruct((M, P), jnp.bfloat16),
        grid=(M // tm,),
        in_specs=[
            pl.BlockSpec((tm, Cin), lambda i: (i, 0)),
            pl.BlockSpec((Cin, P), lambda i: (0, 0)),
            pl.BlockSpec((1, P), lambda i: (0, 0)),
            pl.BlockSpec((1, P), lambda i: (0, 0)),
        ],
        out_specs=pl.BlockSpec((tm, P), lambda i: (i, 0)),
        compiler_params=pltpu.CompilerParams(
            dimension_semantics=("parallel",),
            vmem_limit_bytes=VMEM_LIMIT),
    )(x.reshape(M, Cin), p["w1k"], s1, b1)

    # zero-pad conv1 output by 1 voxel per spatial side (== conv2's padding=1)
    t1p = jnp.pad(t1.reshape(N, D, H, W, P),
                  ((0, 0), (1, 1), (1, 1), (1, 1), (0, 0)))

    # ---- stage 2: fused conv2 + bn2 + relu + conv3 + bn3 + add + relu -------
    x4 = x.reshape(N, D, HW, Cin)                          # residual planes
    kernel = partial(_fused_conv2_conv3_kernel, H=H, W=W, P=P)

    def plane_spec(off):
        return pl.BlockSpec((None, None, H + 2, W + 2, P),
                            lambda n, d, o=off: (n, d + o, 0, 0, 0))

    out4 = pl.pallas_call(
        kernel,
        out_shape=jax.ShapeDtypeStruct((N, D, HW, Cin), jnp.float32),
        grid=(N, D),
        in_specs=[
            plane_spec(0), plane_spec(1), plane_spec(2),   # depths d-1, d, d+1
            pl.BlockSpec((None, None, HW, Cin), lambda n, d: (n, d, 0, 0)),
            pl.BlockSpec((3, 9 * P, P), lambda n, d: (0, 0, 0)),
            pl.BlockSpec((P, Cin), lambda n, d: (0, 0)),
            pl.BlockSpec((1, P), lambda n, d: (0, 0)),
            pl.BlockSpec((1, P), lambda n, d: (0, 0)),
            pl.BlockSpec((1, Cin), lambda n, d: (0, 0)),
            pl.BlockSpec((1, Cin), lambda n, d: (0, 0)),
        ],
        out_specs=pl.BlockSpec((None, None, HW, Cin), lambda n, d: (n, d, 0, 0)),
        compiler_params=pltpu.CompilerParams(
            dimension_semantics=("parallel", "parallel"),
            vmem_limit_bytes=VMEM_LIMIT),
    )(t1p, t1p, t1p, x4, p["w2cols"], p["w3k"], s2, b2, s3, b3)

    out = out4.reshape(N, D, H, W, Cin)
    return jnp.transpose(out, (0, 4, 1, 2, 3))             # back to NCDHW


# -------------------------- params / reference ------------------------------

def init_params(key, inplanes, planes):
    ks = jax.random.split(key, 6)
    # PyTorch conv weight layout: (Cout, Cin, kD, kH, kW)
    w1 = 0.2 * jax.random.normal(ks[0], (planes, inplanes, 1, 1, 1), jnp.float32)
    w2 = 0.2 * jax.random.normal(ks[1], (planes, planes, 3, 3, 3), jnp.float32)
    w3 = 0.2 * jax.random.normal(ks[2], (planes * 4, planes, 1, 1, 1), jnp.float32)

    def bn(k, c):
        kg, kb, km, kv = jax.random.split(k, 4)
        return (1.0 + 0.1 * jax.random.normal(kg, (c,), jnp.float32),
                0.1 * jax.random.normal(kb, (c,), jnp.float32),
                0.1 * jax.random.normal(km, (c,), jnp.float32),
                0.5 + jax.random.uniform(kv, (c,), jnp.float32))

    g1, b1, m1, v1 = bn(ks[3], planes)
    g2, b2, m2, v2 = bn(ks[4], planes)
    g3, b3, m3, v3 = bn(ks[5], planes * 4)

    # kernel-layout weights (bf16 for the MXU; f32 originals kept for the ref)
    w1k = w1.reshape(planes, inplanes).T.astype(jnp.bfloat16)      # (Cin, P)
    # (kd, kh, kw, cin, cout) with (kh, kw, cin) folded into the matmul K axis
    w2cols = jnp.transpose(w2, (2, 3, 4, 1, 0)) \
                .reshape(3, 9 * planes, planes).astype(jnp.bfloat16)
    w3k = w3.reshape(planes * 4, planes).T.astype(jnp.bfloat16)    # (P, 4P)

    return dict(
        w1=w1, w2=w2, w3=w3,
        w1k=w1k, w2cols=w2cols, w3k=w3k,
        bn1_g=g1, bn1_b=b1, bn1_m=m1, bn1_v=v1,
        bn2_g=g2, bn2_b=b2, bn2_m=m2, bn2_v=v2,
        bn3_g=g3, bn3_b=b3, bn3_m=m3, bn3_v=v3,
    )


def reference_forward(x, p):
    """Plain-JAX reference (NCDHW, eval-mode BN) with the same precision policy
    as the kernels: bf16 conv inputs/weights, f32 accumulation & elementwise."""
    dn = ('NCDHW', 'OIDHW', 'NCDHW')

    def conv(h, w, padding):
        return lax.conv_general_dilated(
            h.astype(jnp.bfloat16), w.astype(jnp.bfloat16), (1, 1, 1), padding,
            dimension_numbers=dn, preferred_element_type=jnp.float32)

    def bn(y, g, b, m, v):
        sh = (1, -1, 1, 1, 1)
        return (y - m.reshape(sh)) / jnp.sqrt(v.reshape(sh) + EPS) \
            * g.reshape(sh) + b.reshape(sh)

    out = jnp.maximum(bn(conv(x, p["w1"], 'VALID'),
                         p["bn1_g"], p["bn1_b"], p["bn1_m"], p["bn1_v"]), 0.0)
    out = jnp.maximum(bn(conv(out, p["w2"], [(1, 1), (1, 1), (1, 1)]),
                         p["bn2_g"], p["bn2_b"], p["bn2_m"], p["bn2_v"]), 0.0)
    out = bn(conv(out, p["w3"], 'VALID'),
             p["bn3_g"], p["bn3_b"], p["bn3_m"], p["bn3_v"])
    out = out + x
    return jnp.maximum(out, 0.0)


# --------------------------------- main --------------------------------------

if __name__ == "__main__":
    key = jax.random.PRNGKey(0)
    k_x, k_p = jax.random.split(key)

    inplanes, planes = 32, 8          # expansion=4 -> output channels = 32
    N, D, H, W = 2, 8, 8, 8

    x = jax.random.normal(k_x, (N, inplanes, D, H, W), jnp.float32)
    params = init_params(k_p, inplanes, planes)

    out = jax.block_until_ready(jax.jit(bottleneck_forward)(x, params))
    ref = jax.block_until_ready(jax.jit(reference_forward)(x, params))

    assert out.shape == (N, inplanes, D, H, W), out.shape
    max_err = float(jnp.max(jnp.abs(out - ref)))
    assert jnp.allclose(out, ref, atol=1e-2, rtol=1e-2), max_err

    print("KERNEL_OK")
</pallas_src>

<mosaic_0001>
module attributes {stable_mosaic.version = 11 : i64} {
  func.func @_conv1_bn_relu_kernel(%arg0: i32, %arg1: memref<512x32xf32, #tpu.memory_space<vmem>>, %arg2: memref<32x8xbf16, #tpu.memory_space<vmem>>, %arg3: memref<1x8xf32, #tpu.memory_space<vmem>>, %arg4: memref<1x8xf32, #tpu.memory_space<vmem>>, %arg5: memref<512x8xbf16, #tpu.memory_space<vmem>>) attributes {dimension_semantics = [#tpu.dimension_semantics<parallel>], iteration_bounds = array<i64: 2>, scalar_prefetch = 0 : i64, scratch_operands = 0 : i64, tpu.core_type = #tpu.core_type<tc>, window_params = [{transform_indices = @transform_0, window_bounds = array<i64: 512, 32>}, {pipeline_mode = #tpu.pipeline_mode<synchronous>, transform_indices = @transform_1, window_bounds = array<i64: 32, 8>}, {pipeline_mode = #tpu.pipeline_mode<synchronous>, transform_indices = @transform_2, window_bounds = array<i64: 1, 8>}, {pipeline_mode = #tpu.pipeline_mode<synchronous>, transform_indices = @transform_3, window_bounds = array<i64: 1, 8>}, {transform_indices = @transform_4, window_bounds = array<i64: 512, 8>}]} {
    %c0 = arith.constant 0 : index
    %c0_0 = arith.constant 0 : index
    %0 = vector.load %arg1[%c0, %c0_0] : memref<512x32xf32, #tpu.memory_space<vmem>>, vector<512x32xf32>
    %1 = arith.truncf %0 : vector<512x32xf32> to vector<512x32xbf16>
    %c0_1 = arith.constant 0 : index
    %c0_2 = arith.constant 0 : index
    %2 = vector.load %arg2[%c0_1, %c0_2] : memref<32x8xbf16, #tpu.memory_space<vmem>>, vector<32x8xbf16>
    %cst = arith.constant dense<0.000000e+00> : vector<512x8xf32>
    %3 = tpu.matmul %1, %2, %cst {dimension_numbers = #tpu.dot_dimension_numbers<[1], [0], [0], [1], [0, 0, 1, 1], [], []>} : vector<512x32xbf16>, vector<32x8xbf16>, vector<512x8xf32> -> vector<512x8xf32>
    %c0_3 = arith.constant 0 : index
    %c0_4 = arith.constant 0 : index
    %4 = vector.load %arg3[%c0_3, %c0_4] : memref<1x8xf32, #tpu.memory_space<vmem>>, vector<1x8xf32>
    %5 = vector.broadcast %4 : vector<1x8xf32> to vector<512x8xf32>
    %6 = arith.mulf %3, %5 : vector<512x8xf32>
    %c0_5 = arith.constant 0 : index
    %c0_6 = arith.constant 0 : index
    %7 = vector.load %arg4[%c0_5, %c0_6] : memref<1x8xf32, #tpu.memory_space<vmem>>, vector<1x8xf32>
    %8 = vector.broadcast %7 : vector<1x8xf32> to vector<512x8xf32>
    %9 = arith.addf %6, %8 : vector<512x8xf32>
    %cst_7 = arith.constant 0.000000e+00 : f32
    %10 = vector.broadcast %cst_7 : f32 to vector<512x8xf32>
    %11 = arith.maximumf %9, %10 : vector<512x8xf32>
    %12 = arith.truncf %11 : vector<512x8xf32> to vector<512x8xbf16>
    %c0_8 = arith.constant 0 : index
    %c0_9 = arith.constant 0 : index
    %13 = vector.load %arg5[%c0_8, %c0_9] : memref<512x8xbf16, #tpu.memory_space<vmem>>, vector<512x8xbf16>
    tpu.vector_store %arg5[%c0_8, %c0_9], %12 {strides = array<i32>} : memref<512x8xbf16, #tpu.memory_space<vmem>>, vector<512x8xbf16>,
    return
  }
  func.func @transform_0(%arg0: i32) -> (i32, i32) {
    %c0_i32 = arith.constant 0 : i32
    %c0_i32_0 = arith.constant 0 : i32
    return %arg0, %c0_i32 : i32, i32
  }
  func.func @transform_1(%arg0: i32) -> (i32, i32) {
    %c0_i32 = arith.constant 0 : i32
    %c0_i32_0 = arith.constant 0 : i32
    %c0_i32_1 = arith.constant 0 : i32
    return %c0_i32, %c0_i32_0 : i32, i32
  }
  func.func @transform_2(%arg0: i32) -> (i32, i32) {
    %c0_i32 = arith.constant 0 : i32
    %c0_i32_0 = arith.constant 0 : i32
    %c0_i32_1 = arith.constant 0 : i32
    return %c0_i32, %c0_i32_0 : i32, i32
  }
  func.func @transform_3(%arg0: i32) -> (i32, i32) {
    %c0_i32 = arith.constant 0 : i32
    %c0_i32_0 = arith.constant 0 : i32
    %c0_i32_1 = arith.constant 0 : i32
    return %c0_i32, %c0_i32_0 : i32, i32
  }
  func.func @transform_4(%arg0: i32) -> (i32, i32) {
    %c0_i32 = arith.constant 0 : i32
    %c0_i32_0 = arith.constant 0 : i32
    return %arg0, %c0_i32 : i32, i32
  }
}

module attributes {stable_mosaic.version = 11 : i64} {
  func.func @_fused_conv2_conv3_kernel(%arg0: i32, %arg1: i32, %arg2: memref<1x1x10x10x8xbf16, #tpu.memory_space<vmem>>, %arg3: memref<1x1x10x10x8xbf16, #tpu.memory_space<vmem>>, %arg4: memref<1x1x10x10x8xbf16, #tpu.memory_space<vmem>>, %arg5: memref<1x1x64x32xf32, #tpu.memory_space<vmem>>, %arg6: memref<3x72x8xbf16, #tpu.memory_space<vmem>>, %arg7: memref<8x32xbf16, #tpu.memory_space<vmem>>, %arg8: memref<1x8xf32, #tpu.memory_space<vmem>>, %arg9: memref<1x8xf32, #tpu.memory_space<vmem>>, %arg10: memref<1x32xf32, #tpu.memory_space<vmem>>, %arg11: memref<1x32xf32, #tpu.memory_space<vmem>>, %arg12: memref<1x1x64x32xf32, #tpu.memory_space<vmem>>) attributes {dimension_semantics = [#tpu.dimension_semantics<parallel>, #tpu.dimension_semantics<parallel>], iteration_bounds = array<i64: 2, 8>, scalar_prefetch = 0 : i64, scratch_operands = 0 : i64, tpu.core_type = #tpu.core_type<tc>, window_params = [{transform_indices = @transform_0, window_bounds = array<i64: 1, 1, 10, 10, 8>}, {transform_indices = @transform_1, window_bounds = array<i64: 1, 1, 10, 10, 8>}, {transform_indices = @transform_2, window_bounds = array<i64: 1, 1, 10, 10, 8>}, {transform_indices = @transform_3, window_bounds = array<i64: 1, 1, 64, 32>}, {pipeline_mode = #tpu.pipeline_mode<synchronous>, transform_indices = @transform_4, window_bounds = array<i64: 3, 72, 8>}, {pipeline_mode = #tpu.pipeline_mode<synchronous>, transform_indices = @transform_5, window_bounds = array<i64: 8, 32>}, {pipeline_mode = #tpu.pipeline_mode<synchronous>, transform_indices = @transform_6, window_bounds = array<i64: 1, 8>}, {pipeline_mode = #tpu.pipeline_mode<synchronous>, transform_indices = @transform_7, window_bounds = array<i64: 1, 8>}, {pipeline_mode = #tpu.pipeline_mode<synchronous>, transform_indices = @transform_8, window_bounds = array<i64: 1, 32>}, {pipeline_mode = #tpu.pipeline_mode<synchronous>, transform_indices = @transform_9, window_bounds = array<i64: 1, 32>}, {transform_indices = @transform_10, window_bounds = array<i64: 1, 1, 64, 32>}]} {
    %cst = arith.constant 0.000000e+00 : f32
    %0 = vector.broadcast %cst : f32 to vector<64x8xf32>
    %c0 = arith.constant 0 : index
    %c0_0 = arith.constant 0 : index
    %c0_1 = arith.constant 0 : index
    %c0_2 = arith.constant 0 : index
    %c0_3 = arith.constant 0 : index
    %1 = vector.load %arg2[%c0, %c0_0, %c0_1, %c0_2, %c0_3] : memref<1x1x10x10x8xbf16, #tpu.memory_space<vmem>>, vector<1x1x10x10x8xbf16>
    %2 = vector.shape_cast %1 : vector<1x1x10x10x8xbf16> to vector<10x10x8xbf16>
    %3 = vector.extract_strided_slice %2 {offsets = [0, 0, 0], sizes = [8, 8, 8], strides = [1, 1, 1]} : vector<10x10x8xbf16> to vector<8x8x8xbf16>
    %4 = vector.shape_cast %3 : vector<8x8x8xbf16> to vector<64x8xbf16>
    %5 = vector.extract_strided_slice %2 {offsets = [0, 1, 0], sizes = [8, 8, 8], strides = [1, 1, 1]} : vector<10x10x8xbf16> to vector<8x8x8xbf16>
    %6 = vector.shape_cast %5 : vector<8x8x8xbf16> to vector<64x8xbf16>
    %7 = vector.extract_strided_slice %2 {offsets = [0, 2, 0], sizes = [8, 8, 8], strides = [1, 1, 1]} : vector<10x10x8xbf16> to vector<8x8x8xbf16>
    %8 = vector.shape_cast %7 : vector<8x8x8xbf16> to vector<64x8xbf16>
    %9 = vector.extract_strided_slice %2 {offsets = [1, 0, 0], sizes = [8, 8, 8], strides = [1, 1, 1]} : vector<10x10x8xbf16> to vector<8x8x8xbf16>
    %10 = vector.shape_cast %9 : vector<8x8x8xbf16> to vector<64x8xbf16>
    %11 = vector.extract_strided_slice %2 {offsets = [1, 1, 0], sizes = [8, 8, 8], strides = [1, 1, 1]} : vector<10x10x8xbf16> to vector<8x8x8xbf16>
    %12 = vector.shape_cast %11 : vector<8x8x8xbf16> to vector<64x8xbf16>
    %13 = vector.extract_strided_slice %2 {offsets = [1, 2, 0], sizes = [8, 8, 8], strides = [1, 1, 1]} : vector<10x10x8xbf16> to vector<8x8x8xbf16>
    %14 = vector.shape_cast %13 : vector<8x8x8xbf16> to vector<64x8xbf16>
    %15 = vector.extract_strided_slice %2 {offsets = [2, 0, 0], sizes = [8, 8, 8], strides = [1, 1, 1]} : vector<10x10x8xbf16> to vector<8x8x8xbf16>
    %16 = vector.shape_cast %15 : vector<8x8x8xbf16> to vector<64x8xbf16>
    %17 = vector.extract_strided_slice %2 {offsets = [2, 1, 0], sizes = [8, 8, 8], strides = [1, 1, 1]} : vector<10x10x8xbf16> to vector<8x8x8xbf16>
    %18 = vector.shape_cast %17 : vector<8x8x8xbf16> to vector<64x8xbf16>
    %19 = vector.extract_strided_slice %2 {offsets = [2, 2, 0], sizes = [8, 8, 8], strides = [1, 1, 1]} : vector<10x10x8xbf16> to vector<8x8x8xbf16>
    %20 = vector.shape_cast %19 : vector<8x8x8xbf16> to vector<64x8xbf16>
    %21 = tpu.concatenate %4, %6, %8, %10, %12, %14, %16, %18, %20 in 1 : vector<64x8xbf16>, vector<64x8xbf16>, vector<64x8xbf16>, vector<64x8xbf16>, vector<64x8xbf16>, vector<64x8xbf16>, vector<64x8xbf16>, vector<64x8xbf16>, vector<64x8xbf16> -> vector<64x72xbf16>
    %c0_4 = arith.constant 0 : index
    %c0_5 = arith.constant 0 : index
    %c0_6 = arith.constant 0 : index
    %22 = vector.load %arg6[%c0_4, %c0_5, %c0_6] : memref<3x72x8xbf16, #tpu.memory_space<vmem>>, vector<1x72x8xbf16>
    %23 = vector.shape_cast %22 : vector<1x72x8xbf16> to vector<72x8xbf16>
    %cst_7 = arith.constant dense<0.000000e+00> : vector<64x8xf32>
    %24 = tpu.matmul %21, %23, %cst_7 {dimension_numbers = #tpu.dot_dimension_numbers<[1], [0], [0], [1], [0, 0, 1, 1], [], []>} : vector<64x72xbf16>, vector<72x8xbf16>, vector<64x8xf32> -> vector<64x8xf32>
    %25 = arith.addf %0, %24 : vector<64x8xf32>
    %c0_8 = arith.constant 0 : index
    %c0_9 = arith.constant 0 : index
    %c0_10 = arith.constant 0 : index
    %c0_11 = arith.constant 0 : index
    %c0_12 = arith.constant 0 : index
    %26 = vector.load %arg3[%c0_8, %c0_9, %c0_10, %c0_11, %c0_12] : memref<1x1x10x10x8xbf16, #tpu.memory_space<vmem>>, vector<1x1x10x10x8xbf16>
    %27 = vector.shape_cast %26 : vector<1x1x10x10x8xbf16> to vector<10x10x8xbf16>
    %28 = vector.extract_strided_slice %27 {offsets = [0, 0, 0], sizes = [8, 8, 8], strides = [1, 1, 1]} : vector<10x10x8xbf16> to vector<8x8x8xbf16>
    %29 = vector.shape_cast %28 : vector<8x8x8xbf16> to vector<64x8xbf16>
    %30 = vector.extract_strided_slice %27 {offsets = [0, 1, 0], sizes = [8, 8, 8], strides = [1, 1, 1]} : vector<10x10x8xbf16> to vector<8x8x8xbf16>
    %31 = vector.shape_cast %30 : vector<8x8x8xbf16> to vector<64x8xbf16>
    %32 = vector.extract_strided_slice %27 {offsets = [0, 2, 0], sizes = [8, 8, 8], strides = [1, 1, 1]} : vector<10x10x8xbf16> to vector<8x8x8xbf16>
    %33 = vector.shape_cast %32 : vector<8x8x8xbf16> to vector<64x8xbf16>
    %34 = vector.extract_strided_slice %27 {offsets = [1, 0, 0], sizes = [8, 8, 8], strides = [1, 1, 1]} : vector<10x10x8xbf16> to vector<8x8x8xbf16>
    %35 = vector.shape_cast %34 : vector<8x8x8xbf16> to vector<64x8xbf16>
    %36 = vector.extract_strided_slice %27 {offsets = [1, 1, 0], sizes = [8, 8, 8], strides = [1, 1, 1]} : vector<10x10x8xbf16> to vector<8x8x8xbf16>
    %37 = vector.shape_cast %36 : vector<8x8x8xbf16> to vector<64x8xbf16>
    %38 = vector.extract_strided_slice %27 {offsets = [1, 2, 0], sizes = [8, 8, 8], strides = [1, 1, 1]} : vector<10x10x8xbf16> to vector<8x8x8xbf16>
    %39 = vector.shape_cast %38 : vector<8x8x8xbf16> to vector<64x8xbf16>
    %40 = vector.extract_strided_slice %27 {offsets = [2, 0, 0], sizes = [8, 8, 8], strides = [1, 1, 1]} : vector<10x10x8xbf16> to vector<8x8x8xbf16>
    %41 = vector.shape_cast %40 : vector<8x8x8xbf16> to vector<64x8xbf16>
    %42 = vector.extract_strided_slice %27 {offsets = [2, 1, 0], sizes = [8, 8, 8], strides = [1, 1, 1]} : vector<10x10x8xbf16> to vector<8x8x8xbf16>
    %43 = vector.shape_cast %42 : vector<8x8x8xbf16> to vector<64x8xbf16>
    %44 = vector.extract_strided_slice %27 {offsets = [2, 2, 0], sizes = [8, 8, 8], strides = [1, 1, 1]} : vector<10x10x8xbf16> to vector<8x8x8xbf16>
    %45 = vector.shape_cast %44 : vector<8x8x8xbf16> to vector<64x8xbf16>
    %46 = tpu.concatenate %29, %31, %33, %35, %37, %39, %41, %43, %45 in 1 : vector<64x8xbf16>, vector<64x8xbf16>, vector<64x8xbf16>, vector<64x8xbf16>, vector<64x8xbf16>, vector<64x8xbf16>, vector<64x8xbf16>, vector<64x8xbf16>, vector<64x8xbf16> -> vector<64x72xbf16>
    %c1 = arith.constant 1 : index
    %c0_13 = arith.constant 0 : index
    %c0_14 = arith.constant 0 : index
    %47 = vector.load %arg6[%c1, %c0_13, %c0_14] : memref<3x72x8xbf16, #tpu.memory_space<vmem>>, vector<1x72x8xbf16>
    %48 = vector.shape_cast %47 : vector<1x72x8xbf16> to vector<72x8xbf16>
    %cst_15 = arith.constant dense<0.000000e+00> : vector<64x8xf32>
    %49 = tpu.matmul %46, %48, %cst_15 {dimension_numbers = #tpu.dot_dimension_numbers<[1], [0], [0], [1], [0, 0, 1, 1], [], []>} : vector<64x72xbf16>, vector<72x8xbf16>, vector<64x8xf32> -> vector<64x8xf32>
    %50 = arith.addf %25, %49 : vector<64x8xf32>
    %c0_16 = arith.constant 0 : index
    %c0_17 = arith.constant 0 : index
    %c0_18 = arith.constant 0 : index
    %c0_19 = arith.constant 0 : index
    %c0_20 = arith.constant 0 : index
    %51 = vector.load %arg4[%c0_16, %c0_17, %c0_18, %c0_19, %c0_20] : memref<1x1x10x10x8xbf16, #tpu.memory_space<vmem>>, vector<1x1x10x10x8xbf16>
    %52 = vector.shape_cast %51 : vector<1x1x10x10x8xbf16> to vector<10x10x8xbf16>
    %53 = vector.extract_strided_slice %52 {offsets = [0, 0, 0], sizes = [8, 8, 8], strides = [1, 1, 1]} : vector<10x10x8xbf16> to vector<8x8x8xbf16>
    %54 = vector.shape_cast %53 : vector<8x8x8xbf16> to vector<64x8xbf16>
    %55 = vector.extract_strided_slice %52 {offsets = [0, 1, 0], sizes = [8, 8, 8], strides = [1, 1, 1]} : vector<10x10x8xbf16> to vector<8x8x8xbf16>
    %56 = vector.shape_cast %55 : vector<8x8x8xbf16> to vector<64x8xbf16>
    %57 = vector.extract_strided_slice %52 {offsets = [0, 2, 0], sizes = [8, 8, 8], strides = [1, 1, 1]} : vector<10x10x8xbf16> to vector<8x8x8xbf16>
    %58 = vector.shape_cast %57 : vector<8x8x8xbf16> to vector<64x8xbf16>
    %59 = vector.extract_strided_slice %52 {offsets = [1, 0, 0], sizes = [8, 8, 8], strides = [1, 1, 1]} : vector<10x10x8xbf16> to vector<8x8x8xbf16>
    %60 = vector.shape_cast %59 : vector<8x8x8xbf16> to vector<64x8xbf16>
    %61 = vector.extract_strided_slice %52 {offsets = [1, 1, 0], sizes = [8, 8, 8], strides = [1, 1, 1]} : vector<10x10x8xbf16> to vector<8x8x8xbf16>
    %62 = vector.shape_cast %61 : vector<8x8x8xbf16> to vector<64x8xbf16>
    %63 = vector.extract_strided_slice %52 {offsets = [1, 2, 0], sizes = [8, 8, 8], strides = [1, 1, 1]} : vector<10x10x8xbf16> to vector<8x8x8xbf16>
    %64 = vector.shape_cast %63 : vector<8x8x8xbf16> to vector<64x8xbf16>
    %65 = vector.extract_strided_slice %52 {offsets = [2, 0, 0], sizes = [8, 8, 8], strides = [1, 1, 1]} : vector<10x10x8xbf16> to vector<8x8x8xbf16>
    %66 = vector.shape_cast %65 : vector<8x8x8xbf16> to vector<64x8xbf16>
    %67 = vector.extract_strided_slice %52 {offsets = [2, 1, 0], sizes = [8, 8, 8], strides = [1, 1, 1]} : vector<10x10x8xbf16> to vector<8x8x8xbf16>
    %68 = vector.shape_cast %67 : vector<8x8x8xbf16> to vector<64x8xbf16>
    %69 = vector.extract_strided_slice %52 {offsets = [2, 2, 0], sizes = [8, 8, 8], strides = [1, 1, 1]} : vector<10x10x8xbf16> to vector<8x8x8xbf16>
    %70 = vector.shape_cast %69 : vector<8x8x8xbf16> to vector<64x8xbf16>
    %71 = tpu.concatenate %54, %56, %58, %60, %62, %64, %66, %68, %70 in 1 : vector<64x8xbf16>, vector<64x8xbf16>, vector<64x8xbf16>, vector<64x8xbf16>, vector<64x8xbf16>, vector<64x8xbf16>, vector<64x8xbf16>, vector<64x8xbf16>, vector<64x8xbf16> -> vector<64x72xbf16>
    %c2 = arith.constant 2 : index
    %c0_21 = arith.constant 0 : index
    %c0_22 = arith.constant 0 : index
    %72 = vector.load %arg6[%c2, %c0_21, %c0_22] : memref<3x72x8xbf16, #tpu.memory_space<vmem>>, vector<1x72x8xbf16>
    %73 = vector.shape_cast %72 : vector<1x72x8xbf16> to vector<72x8xbf16>
    %cst_23 = arith.constant dense<0.000000e+00> : vector<64x8xf32>
    %74 = tpu.matmul %71, %73, %cst_23 {dimension_numbers = #tpu.dot_dimension_numbers<[1], [0], [0], [1], [0, 0, 1, 1], [], []>} : vector<64x72xbf16>, vector<72x8xbf16>, vector<64x8xf32> -> vector<64x8xf32>
    %75 = arith.addf %50, %74 : vector<64x8xf32>
    %c0_24 = arith.constant 0 : index
    %c0_25 = arith.constant 0 : index
    %76 = vector.load %arg8[%c0_24, %c0_25] : memref<1x8xf32, #tpu.memory_space<vmem>>, vector<1x8xf32>
    %77 = vector.broadcast %76 : vector<1x8xf32> to vector<64x8xf32>
    %78 = arith.mulf %75, %77 : vector<64x8xf32>
    %c0_26 = arith.constant 0 : index
    %c0_27 = arith.constant 0 : index
    %79 = vector.load %arg9[%c0_26, %c0_27] : memref<1x8xf32, #tpu.memory_space<vmem>>, vector<1x8xf32>
    %80 = vector.broadcast %79 : vector<1x8xf32> to vector<64x8xf32>
    %81 = arith.addf %78, %80 : vector<64x8xf32>
    %cst_28 = arith.constant 0.000000e+00 : f32
    %82 = vector.broadcast %cst_28 : f32 to vector<64x8xf32>
    %83 = arith.maximumf %81, %82 : vector<64x8xf32>
    %84 = arith.truncf %83 : vector<64x8xf32> to vector<64x8xbf16>
    %c0_29 = arith.constant 0 : index
    %c0_30 = arith.constant 0 : index
    %85 = vector.load %arg7[%c0_29, %c0_30] : memref<8x32xbf16, #tpu.memory_space<vmem>>, vector<8x32xbf16>
    %cst_31 = arith.constant dense<0.000000e+00> : vector<64x32xf32>
    %86 = tpu.matmul %84, %85, %cst_31 {dimension_numbers = #tpu.dot_dimension_numbers<[1], [0], [0], [1], [0, 0, 1, 1], [], []>} : vector<64x8xbf16>, vector<8x32xbf16>, vector<64x32xf32> -> vector<64x32xf32>
    %c0_32 = arith.constant 0 : index
    %c0_33 = arith.constant 0 : index
    %87 = vector.load %arg10[%c0_32, %c0_33] : memref<1x32xf32, #tpu.memory_space<vmem>>, vector<1x32xf32>
    %88 = vector.broadcast %87 : vector<1x32xf32> to vector<64x32xf32>
    %89 = arith.mulf %86, %88 : vector<64x32xf32>
    %c0_34 = arith.constant 0 : index
    %c0_35 = arith.constant 0 : index
    %90 = vector.load %arg11[%c0_34, %c0_35] : memref<1x32xf32, #tpu.memory_space<vmem>>, vector<1x32xf32>
    %91 = vector.broadcast %90 : vector<1x32xf32> to vector<64x32xf32>
    %92 = arith.addf %89, %91 : vector<64x32xf32>
    %c0_36 = arith.constant 0 : index
    %c0_37 = arith.constant 0 : index
    %c0_38 = arith.constant 0 : index
    %c0_39 = arith.constant 0 : index
    %93 = vector.load %arg5[%c0_36, %c0_37, %c0_38, %c0_39] : memref<1x1x64x32xf32, #tpu.memory_space<vmem>>, vector<1x1x64x32xf32>
    %94 = vector.shape_cast %93 : vector<1x1x64x32xf32> to vector<64x32xf32>
    %95 = arith.addf %92, %94 : vector<64x32xf32>
    %cst_40 = arith.constant 0.000000e+00 : f32
    %96 = vector.broadcast %cst_40 : f32 to vector<64x32xf32>
    %97 = arith.maximumf %95, %96 : vector<64x32xf32>
    %c0_41 = arith.constant 0 : index
    %c0_42 = arith.constant 0 : index
    %c0_43 = arith.constant 0 : index
    %c0_44 = arith.constant 0 : index
    %98 = vector.load %arg12[%c0_41, %c0_42, %c0_43, %c0_44] : memref<1x1x64x32xf32, #tpu.memory_space<vmem>>, vector<1x1x64x32xf32>
    %99 = vector.shape_cast %98 : vector<1x1x64x32xf32> to vector<64x32xf32>
    %100 = vector.shape_cast %97 : vector<64x32xf32> to vector<1x1x64x32xf32>
    tpu.vector_store %arg12[%c0_41, %c0_42, %c0_43, %c0_44], %100 {strides = array<i32>} : memref<1x1x64x32xf32, #tpu.memory_space<vmem>>, vector<1x1x64x32xf32>,
    return
  }
  func.func @transform_0(%arg0: i32, %arg1: i32) -> (i32, i32, i32, i32, i32) {
    %c0_i32 = arith.constant 0 : i32
    %0 = arith.addi %arg1, %c0_i32 : i32
    %c0_i32_0 = arith.constant 0 : i32
    %c0_i32_1 = arith.constant 0 : i32
    %c0_i32_2 = arith.constant 0 : i32
    %c0_i32_3 = arith.constant 0 : i32
    return %arg0, %0, %c0_i32_0, %c0_i32_1, %c0_i32_2 : i32, i32, i32, i32, i32
  }
  func.func @transform_1(%arg0: i32, %arg1: i32) -> (i32, i32, i32, i32, i32) {
    %c1_i32 = arith.constant 1 : i32
    %0 = arith.addi %arg1, %c1_i32 : i32
    %c0_i32 = arith.constant 0 : i32
    %c0_i32_0 = arith.constant 0 : i32
    %c0_i32_1 = arith.constant 0 : i32
    %c0_i32_2 = arith.constant 0 : i32
    return %arg0, %0, %c0_i32, %c0_i32_0, %c0_i32_1 : i32, i32, i32, i32, i32
  }
  func.func @transform_2(%arg0: i32, %arg1: i32) -> (i32, i32, i32, i32, i32) {
    %c2_i32 = arith.constant 2 : i32
    %0 = arith.addi %arg1, %c2_i32 : i32
    %c0_i32 = arith.constant 0 : i32
    %c0_i32_0 = arith.constant 0 : i32
    %c0_i32_1 = arith.constant 0 : i32
    %c0_i32_2 = arith.constant 0 : i32
    return %arg0, %0, %c0_i32, %c0_i32_0, %c0_i32_1 : i32, i32, i32, i32, i32
  }
  func.func @transform_3(%arg0: i32, %arg1: i32) -> (i32, i32, i32, i32) {
    %c0_i32 = arith.constant 0 : i32
    %c0_i32_0 = arith.constant 0 : i32
    %c0_i32_1 = arith.constant 0 : i32
    return %arg0, %arg1, %c0_i32, %c0_i32_0 : i32, i32, i32, i32
  }
  func.func @transform_4(%arg0: i32, %arg1: i32) -> (i32, i32, i32) {
    %c0_i32 = arith.constant 0 : i32
    %c0_i32_0 = arith.constant 0 : i32
    %c0_i32_1 = arith.constant 0 : i32
    %c0_i32_2 = arith.constant 0 : i32
    return %c0_i32, %c0_i32_0, %c0_i32_1 : i32, i32, i32
  }
  func.func @transform_5(%arg0: i32, %arg1: i32) -> (i32, i32) {
    %c0_i32 = arith.constant 0 : i32
    %c0_i32_0 = arith.constant 0 : i32
    %c0_i32_1 = arith.constant 0 : i32
    return %c0_i32, %c0_i32_0 : i32, i32
  }
  func.func @transform_6(%arg0: i32, %arg1: i32) -> (i32, i32) {
    %c0_i32 = arith.constant 0 : i32
    %c0_i32_0 = arith.constant 0 : i32
    %c0_i32_1 = arith.constant 0 : i32
    return %c0_i32, %c0_i32_0 : i32, i32
  }
  func.func @transform_7(%arg0: i32, %arg1: i32) -> (i32, i32) {
    %c0_i32 = arith.constant 0 : i32
    %c0_i32_0 = arith.constant 0 : i32
    %c0_i32_1 = arith.constant 0 : i32
    return %c0_i32, %c0_i32_0 : i32, i32
  }
  func.func @transform_8(%arg0: i32, %arg1: i32) -> (i32, i32) {
    %c0_i32 = arith.constant 0 : i32
    %c0_i32_0 = arith.constant 0 : i32
    %c0_i32_1 = arith.constant 0 : i32
    return %c0_i32, %c0_i32_0 : i32, i32
  }
  func.func @transform_9(%arg0: i32, %arg1: i32) -> (i32, i32) {
    %c0_i32 = arith.constant 0 : i32
    %c0_i32_0 = arith.constant 0 : i32
    %c0_i32_1 = arith.constant 0 : i32
    return %c0_i32, %c0_i32_0 : i32, i32
  }
  func.func @transform_10(%arg0: i32, %arg1: i32) -> (i32, i32, i32, i32) {
    %c0_i32 = arith.constant 0 : i32
    %c0_i32_0 = arith.constant 0 : i32
    %c0_i32_1 = arith.constant 0 : i32
    return %arg0, %arg1, %c0_i32, %c0_i32_0 : i32, i32, i32, i32
  }
}

</mosaic_0001>

<bundles_post_ra>
// kernel: bottleneck_forward.2
= control target key start
LH: loop header
LB: loop body
LE: loop exit
PB: predicated region body
PF: predicated region fallthrough
CT: control target
= control target key end

     0   :  { %9 = vsyncpa [#allocation3], 0  ;;  %s2204_s0 = inlined_call_operand.hbm [shape: f32[1024,32], index: 0, kind: input, shape index: {}]   ;;  %s2205_s1 = inlined_call_operand.vmem [shape: bf16[32,8], index: 1, kind: input, shape index: {}]   ;;  %s2206_s2 = inlined_call_operand.vmem [shape: f32[1,8], index: 2, kind: input, shape index: {}]   ;;  %s2207_s3 = inlined_call_operand.vmem [shape: f32[1,8], index: 3, kind: input, shape index: {}]   ;;  %s2208_s4 = inlined_call_operand.vmem [shape: bf16[1024,8], index: 4, kind: output, shape index: {}]  }
   0x1   :  { %11 = vsyncpa [#allocation3 + $0x1], 0  ;;  %s1732_s15 = smov 0   ;;  %s1734_s16 = smov 0  }
   0x2   :  { %s1736_s17 = smov 0   ;;  %s1738_s18 = smov 0  }
   0x3 LB: > { %s1313_s19 = sadd.s32 4294967295, %s1702_s18   ;;  %s1752_s20 = sadd.s32 1, %s1702_s18   ;;  %s1702_s18 = sphi %s1738_s18, %s2217_s18   ;;  %s1698_s17 = sphi %s1736_s17, %s2216_s17   ;;  %s1694_s16 = sphi %s1734_s16, %s2215_s16   ;;  %s1690_s15 = sphi %s1732_s15, %s2214_s15  }
   0x4   : > { %s21_s21 = ssub.s32 %s1702_s18, %s1752_s20  ;;  %s24_s22 = sadd.s32 1, %s1698_s17 }
   0x5   : > { %p22_p0 = scmp.eq.s32.totalorder %s21_s21, 0  ;;  %p31_p1 = scmp.ne.s32.totalorder %s1698_s17, %s1694_s16 }
   0x6   : > { %p32_p2 = scmp.eq.s32.totalorder %s1702_s18, 0  ;;  %p37_p3 = scmp.ne.s32.totalorder %s1694_s16, %s1690_s15 }
   0x7   : > { %s1762_s23 = scalar_select %p22_p0, %s1698_s17, %s24_s22  }
   0x8   : > { %p33_p4 = por %p32_p2, %p31_p1  ;;  %p38_p5 = scmp.eq.s32.totalorder %s1313_s19, 0 }
   0x9   : > { %p1603_p6 = scmp.lt.s32.totalorder %s1702_s18, 2  ;;  %s159_s25 = sand.u32 1, %s1698_s17  }
   0xa   : > { %p1767_p7 = por %p38_p5, %p37_p3  ;;  %s1317_s26 = sshll.u32 %s159_s25, 9 }
   0xb   : > { %s1426_s27 = sshll.u32 %s1702_s18, 13  ;;  %s163_s5 = scalar_lea.vmem [#allocation2], %s1317_s26 }
   0xc   : > { %s2210_s24 = scalar_select %p1767_p7, 1, 0 }
   0xd   : > { %s1776_s30 = scalar_lea.hbm %s2204_s0, %s1426_s27  ;;  %s170_s6 = sshll.u32 %s163_s5, 4  ;;  %s1778_s6 = int_to_ptr.vmem [resolvable:$true] %s170_s6 }
   0xe   : > { %p1780_p8 = pnand %p1603_p6, %p33_p4  ;;  %s1785_s8 = scalar_lea.sflag [#allocation3], %s159_s25 }
   0xf   : > { %s1640_s9 = scalar_lea.hbm %s1776_s30, 8192  ;;  %s1645_s12 = scalar_lea.hbm %s2204_s0, 16384 }
  0x10   : > { %p1641_p10 = scmp.ne.s32.totalorder %s1776_s30, %s1640_s9  ;;  %p1642_p11 = pneg %p1780_p8 }
  0x11   : > { %p1646_p0 = scmp.lt.s32.totalorder %s1776_s30, %s2204_s0  ;;  %p1647_p1 = scmp.lt.s32.totalorder %s1645_s12, %s1640_s9 }
  0x12   : > { %p1643_p12 = pnand %p1642_p11, %p1641_p10 }
  0x13   : > { %p1648_p2 = por %p1647_p1, %p1646_p0 }
  0x14   : > { %p1644_p13 = pneg %p1643_p12 }
  0x16   : > { %p1649_p3 = pnand %p1648_p2, %p1644_p13 }
  0x18   : > { %1652 = shalt.err (!%p1649_p3)
}
  0x19   : > { %s1653_s15 = scalar_lea.vmem %s1778_s6, 8192  ;;  %s1704_s21 = smov [#allocation2]  }
  0x1a   : > { %p1654_p4 = scmp.ne.s32.totalorder %s1778_s6, %s1653_s15  ;;  %s1658_s22 = sshll.u32 %s1704_s21, 4  ;;  %s1659_s22 = int_to_ptr.vmem [resolvable:$false] %s1658_s22 }
  0x1b   : > { %s1660_s25 = scalar_lea.vmem %s1659_s22, 16384  ;;  %p1661_p10 = scmp.lt.s32.totalorder %s1778_s6, %s1659_s22 }
  0x1c   : > { %p1656_p5 = pnand %p1654_p4, %p1642_p11  ;;  %p1662_p12 = scmp.lt.s32.totalorder %s1660_s25, %s1653_s15 }
  0x1e   : > { %p1657_p6 = pneg %p1656_p5  ;;  %p1663_p9 = por %p1662_p12, %p1661_p10 }
  0x20   : > { %p1664_p7 = pnand %p1663_p9, %p1657_p6 }
  0x22   : > { %1667 = shalt.err (!%p1664_p7)
}
  0x23   : > { %s1705_s26 = smov 128   ;;  %s1706_s27 = smov 8  }
  0x24   : > { %1602 = dma.hbm_to_vmem [thread:$0]  (!%p1780_p8), %s1776_s30, 8192, %s1778_s6, %s1785_s8, %s1705_s26, %s1705_s26, %s1706_s27  }
  0x25   : > { %p178_p11 = scmp.lt.s32.totalorder %s1702_s18, 3  ;;  %p2212_p13 = scmp.ge.s32.totalorder %s1702_s18, 1 }
  0x27   : > { %p179_p0 = pnand %p2212_p13, %p178_p11 }
  0x28   : > { %s184_s28 = sand.u32 (!%p179_p0), 1, %s1694_s16   ;;  %p2213_p7 = scmp.ne.s32.totalorder (!%p179_p0), %s2210_s24, 0 }
  0x29   : > { %182 = sbr.rel (%p179_p0) target bundleno = 325 (0x145), region = 36  ;;  %s1321_s29 = sshll.u32 (!%p179_p0), %s184_s28, 9 }
  0x2a   : > { %s185_s5 = scalar_lea.sflag (!%p179_p0), [#allocation3], %s184_s28  ;;  %s1810_s9 = scalar_lea.vmem (!%p179_p0), [#allocation2], %s1321_s29 }
  0x2e   : > { %1685 = dma.done.wait (%p2213_p7), %s185_s5, 8192  }
  0x2f   : > { %1687 = vsyncadd (%p2213_p7), %s185_s5, 4294959104  ;;  %v1638_v0 = vld [vmem:[%s2205_s1 + $0x8] sm:$0xff]   ;;  %v1639_v1 = vld [vmem:[%s2205_s1] sm:$0xff]   ;;  %vm333_vm0 = vcmask 261120   ;;  %s1322_s24 = sshll.u32 %s1313_s19, 6  ;;  %vm1181_vm1 = vcmask 60416  }
  0x30   : > { %1525 = vmatprep.subr.bf16.mxu0 %v1638_v0  ;;  %1593 = vmatprep.subr.bf16.mxu1 %v1638_v0  ;;  %v221_v2 = vld [vmem:[%s1810_s9] sm:$0xff]  ;;  %v222_v3 = vld [vmem:[%s1810_s9 + $0x8] sm:$0xff]  ;;  %v223_v7 = vld [vmem:[%s1810_s9 + $0x10] sm:$0xff]  ;;  %p215_p8 = scmp.lt.s32.totalorder %s1322_s24, 127 }
  0x31   : > { %v253_v4 = vld [vmem:[%s1810_s9 + $0x100] sm:$0xff]  ;;  %1526 = vmatpush3.bf16.msra.mxu0 %v1638_v0  ;;  %1595 = vmatpush3.bf16.msra.mxu1 %v1638_v0  ;;  %v285_v5 = vpack.c.bf16 %v222_v3, %v221_v2  ;;  %v254_v6 = vld [vmem:[%s1810_s9 + $0x108] sm:$0xff]  ;;  %v224_v8 = vld [vmem:[%s1810_s9 + $0x18] sm:$0xff] }
  0x32   : > { %1527 = vmatprep.subr.bf16.mxu0 %v1639_v1  ;;  %1594 = vmatprep.subr.bf16.mxu1 %v1639_v1  ;;  %v301_v9 = vpack.c.bf16 %v254_v6, %v253_v4  ;;  %v255_v10 = vld [vmem:[%s1810_s9 + $0x110] sm:$0xff]  ;;  %v256_v11 = vld [vmem:[%s1810_s9 + $0x118] sm:$0xff]  ;;  %v225_v12 = vld [vmem:[%s1810_s9 + $0x20] sm:$0xff]  ;;  %v286_v16 = vpack.c.bf16 %v224_v8, %v223_v7  ;;  %s2219_s24 = smov (!%p215_p8, %s1322_s24), 127 }
  0x33   : > { %1529 = vmatprep.mubr.msk.bf16.mxu0 %vm333_vm0, %v285_v5  ;;  %v226_v13 = vld [vmem:[%s1810_s9 + $0x28] sm:$0xff]  ;;  %v257_v14 = vld [vmem:[%s1810_s9 + $0x120] sm:$0xff]  ;;  %v302_v17 = vpack.c.bf16 %v256_v11, %v255_v10  ;;  %v227_v20 = vld [vmem:[%s1810_s9 + $0x30] sm:$0xff]  ;;  %s1323_s18 = sshll.u32 %s2219_s24, 2 }
  0x34   : > { %v258_v15 = vld [vmem:[%s1810_s9 + $0x128] sm:$0xff]  ;;  %1561 = vmatprep.mubr.msk.bf16.mxu1 %vm333_vm0, %v301_v9  ;;  %v287_v18 = vpack.c.bf16 %v226_v13, %v225_v12  ;;  %v228_v21 = vld [vmem:[%s1810_s9 + $0x38] sm:$0xff]  ;;  %v259_v22 = vld [vmem:[%s1810_s9 + $0x130] sm:$0xff]  ;;  %s1941_s15 = scalar_lea.vmem %s2208_s4, %s1323_s18 }
  0x35   : > { %1528 = vmatpush3.bf16.msra.mxu0 %v1639_v1  ;;  %1596 = vmatpush3.bf16.msra.mxu1 %v1639_v1  ;;  %v303_v19 = vpack.c.bf16 %v258_v15, %v257_v14  ;;  %v260_v23 = vld [vmem:[%s1810_s9 + $0x138] sm:$0xff]  ;;  %v229_v24 = vld [vmem:[%s1810_s9 + $0x40] sm:$0xff]  ;;  %v230_v25 = vld [vmem:[%s1810_s9 + $0x48] sm:$0xff]  ;;  %v288_v28 = vpack.c.bf16 %v228_v21, %v227_v20 }
  0x36   : > { %v261_v26 = vld [vmem:[%s1810_s9 + $0x140] sm:$0xff]  ;;  %v262_v27 = vld [vmem:[%s1810_s9 + $0x148] sm:$0xff]  ;;  %v304_v29 = vpack.c.bf16 %v260_v23, %v259_v22  ;;  %v289_v30 = vpack.c.bf16 %v230_v25, %v229_v24  ;;  %v231_v32 = vld [vmem:[%s1810_s9 + $0x50] sm:$0xff] }
  0x37   : > { %v305_v31 = vpack.c.bf16 %v262_v27, %v261_v26  ;;  %v232_v33 = vld [vmem:[%s1810_s9 + $0x58] sm:$0xff]  ;;  %v263_v34 = vld [vmem:[%s1810_s9 + $0x150] sm:$0xff]  ;;  %v233_v36 = vld [vmem:[%s1810_s9 + $0x60] sm:$0xff] }
  0x38   : > { %1530 = vmatmul.mubr.msk.bf16.vlgmr.msra.gmra.mxu0 %vm333_vm0, %v286_v16  ;;  %1562 = vmatmul.mubr.msk.bf16.vlgmr.msra.gmra.mxu1 %vm333_vm0, %v302_v17  ;;  %v264_v35 = vld [vmem:[%s1810_s9 + $0x158] sm:$0xff]  ;;  %v234_v37 = vld [vmem:[%s1810_s9 + $0x68] sm:$0xff]  ;;  %v265_v38 = vld [vmem:[%s1810_s9 + $0x160] sm:$0xff]  ;;  %v290_v40 = vpack.c.bf16 %v232_v33, %v231_v32 }
  0x39   : > { %1533 = vmatprep.mubr.msk.bf16.mxu0 %vm333_vm0, %v287_v18  ;;  %1565 = vmatprep.mubr.msk.bf16.mxu1 %vm333_vm0, %v303_v19  ;;  %v266_v39 = vld [vmem:[%s1810_s9 + $0x168] sm:$0xff]  ;;  %v306_v41 = vpack.c.bf16 %v264_v35, %v263_v34  ;;  %v291_v42 = vpack.c.bf16 %v234_v37, %v233_v36  ;;  %v235_v44 = vld [vmem:[%s1810_s9 + $0x70] sm:$0xff]  ;;  %v236_v45 = vld [vmem:[%s1810_s9 + $0x78] sm:$0xff] }
  0x3a   : > { %v307_v43 = vpack.c.bf16 %v266_v39, %v265_v38  ;;  %v267_v46 = vld [vmem:[%s1810_s9 + $0x170] sm:$0xff]  ;;  %v268_v47 = vld [vmem:[%s1810_s9 + $0x178] sm:$0xff]  ;;  %v237_v48 = vld [vmem:[%s1810_s9 + $0x80] sm:$0xff]  ;;  %v292_v52 = vpack.c.bf16 %v236_v45, %v235_v44 }
  0x3b   : > { %v238_v49 = vld [vmem:[%s1810_s9 + $0x88] sm:$0xff]  ;;  %v269_v50 = vld [vmem:[%s1810_s9 + $0x180] sm:$0xff]  ;;  %v308_v53 = vpack.c.bf16 %v268_v47, %v267_v46  ;;  %v239_v56 = vld [vmem:[%s1810_s9 + $0x90] sm:$0xff] }
  0x3c   : > { %v270_v51 = vld [vmem:[%s1810_s9 + $0x188] sm:$0xff]  ;;  %v293_v54 = vpack.c.bf16 %v238_v49, %v237_v48  ;;  %v240_v57 = vld [vmem:[%s1810_s9 + $0x98] sm:$0xff]  ;;  %v271_v58 = vld [vmem:[%s1810_s9 + $0x190] sm:$0xff] }
  0x3d   : > { %v309_v55 = vpack.c.bf16 %v270_v51, %v269_v50  ;;  %v272_v59 = vld [vmem:[%s1810_s9 + $0x198] sm:$0xff]  ;;  %v241_v60 = vld [vmem:[%s1810_s9 + $0xa0] sm:$0xff]  ;;  %v242_v61 = vld [vmem:[%s1810_s9 + $0xa8] sm:$0xff]  ;;  %v294_v0 = vpack.c.bf16 %v240_v57, %v239_v56 }
  0x3e   : > { %v273_v62 = vld [vmem:[%s1810_s9 + $0x1a0] sm:$0xff]  ;;  %v274_v63 = vld [vmem:[%s1810_s9 + $0x1a8] sm:$0xff]  ;;  %v310_v1 = vpack.c.bf16 %v272_v59, %v271_v58  ;;  %v295_v2 = vpack.c.bf16 %v242_v61, %v241_v60  ;;  %v243_v4 = vld [vmem:[%s1810_s9 + $0xb0] sm:$0xff] }
  0x3f   : > { %v311_v3 = vpack.c.bf16 %v274_v63, %v273_v62  ;;  %v244_v5 = vld [vmem:[%s1810_s9 + $0xb8] sm:$0xff]  ;;  %v275_v6 = vld [vmem:[%s1810_s9 + $0x1b0] sm:$0xff]  ;;  %v245_v8 = vld [vmem:[%s1810_s9 + $0xc0] sm:$0xff] }
  0x40   : > { %1534 = vmatmul.mubr.msk.bf16.gmra.mxu0 %vm333_vm0, %v288_v28  ;;  %1566 = vmatmul.mubr.msk.bf16.gmra.mxu1 %vm333_vm0, %v304_v29  ;;  %v276_v7 = vld [vmem:[%s1810_s9 + $0x1b8] sm:$0xff]  ;;  %v246_v9 = vld [vmem:[%s1810_s9 + $0xc8] sm:$0xff]  ;;  %v277_v10 = vld [vmem:[%s1810_s9 + $0x1c0] sm:$0xff]  ;;  %v296_v12 = vpack.c.bf16 %v244_v5, %v243_v4 }
  0x41   : > { %1537 = vmatprep.mubr.msk.bf16.mxu0 %vm333_vm0, %v289_v30  ;;  %1569 = vmatprep.mubr.msk.bf16.mxu1 %vm333_vm0, %v305_v31  ;;  %v278_v11 = vld [vmem:[%s1810_s9 + $0x1c8] sm:$0xff]  ;;  %v312_v13 = vpack.c.bf16 %v276_v7, %v275_v6  ;;  %v297_v14 = vpack.c.bf16 %v246_v9, %v245_v8  ;;  %v247_v16 = vld [vmem:[%s1810_s9 + $0xd0] sm:$0xff]  ;;  %v248_v17 = vld [vmem:[%s1810_s9 + $0xd8] sm:$0xff] }
  0x42   : > { %v313_v15 = vpack.c.bf16 %v278_v11, %v277_v10  ;;  %v279_v18 = vld [vmem:[%s1810_s9 + $0x1d0] sm:$0xff]  ;;  %v280_v19 = vld [vmem:[%s1810_s9 + $0x1d8] sm:$0xff]  ;;  %v249_v20 = vld [vmem:[%s1810_s9 + $0xe0] sm:$0xff]  ;;  %v298_v24 = vpack.c.bf16 %v248_v17, %v247_v16 }
  0x43   : > { %v250_v21 = vld [vmem:[%s1810_s9 + $0xe8] sm:$0xff]  ;;  %v281_v22 = vld [vmem:[%s1810_s9 + $0x1e0] sm:$0xff]  ;;  %v314_v25 = vpack.c.bf16 %v280_v19, %v279_v18  ;;  %v251_v28 = vld [vmem:[%s1810_s9 + $0xf0] sm:$0xff] }
  0x44   : > { %v282_v23 = vld [vmem:[%s1810_s9 + $0x1e8] sm:$0xff]  ;;  %v299_v26 = vpack.c.bf16 %v250_v21, %v249_v20  ;;  %v252_v29 = vld [vmem:[%s1810_s9 + $0xf8] sm:$0xff]  ;;  %v283_v30 = vld [vmem:[%s1810_s9 + $0x1f0] sm:$0xff] }
  0x45   : > { %v315_v27 = vpack.c.bf16 %v282_v23, %v281_v22  ;;  %v284_v31 = vld [vmem:[%s1810_s9 + $0x1f8] sm:$0xff]  ;;  %v300_v32 = vpack.c.bf16 %v252_v29, %v251_v28  ;;  %v1923_v34 = vld [vmem:[%s2206_s2] ss:$0 sm:$0xff] }
  0x46   : > { %v316_v33 = vpack.c.bf16 %v284_v31, %v283_v30  ;;  %v1928_v36 = vld [vmem:[%s2207_s3] ss:$0 sm:$0xff] }
  0x48   : > { %1538 = vmatmul.mubr.msk.bf16.gmra.mxu0 %vm333_vm0, %v290_v40  ;;  %1570 = vmatmul.mubr.msk.bf16.gmra.mxu1 %vm333_vm0, %v306_v41 }
  0x49   : > { %1541 = vmatprep.mubr.msk.bf16.mxu0 %vm333_vm0, %v291_v42  ;;  %1573 = vmatprep.mubr.msk.bf16.mxu1 %vm333_vm0, %v307_v43 }
  0x50   : > { %1542 = vmatmul.mubr.msk.bf16.gmra.mxu0 %vm333_vm0, %v292_v52  ;;  %1574 = vmatmul.mubr.msk.bf16.gmra.mxu1 %vm333_vm0, %v308_v53 }
  0x51   : > { %1545 = vmatprep.mubr.msk.bf16.mxu0 %vm333_vm0, %v293_v54  ;;  %1577 = vmatprep.mubr.msk.bf16.mxu1 %vm333_vm0, %v309_v55 }
  0x58   : > { %1546 = vmatmul.mubr.msk.bf16.gmra.mxu0 %vm333_vm0, %v294_v0  ;;  %1578 = vmatmul.mubr.msk.bf16.gmra.mxu1 %vm333_vm0, %v310_v1 }
  0x59   : > { %1549 = vmatprep.mubr.msk.bf16.mxu0 %vm333_vm0, %v295_v2  ;;  %1581 = vmatprep.mubr.msk.bf16.mxu1 %vm333_vm0, %v311_v3 }
  0x60   : > { %1550 = vmatmul.mubr.msk.bf16.gmra.mxu0 %vm333_vm0, %v296_v12  ;;  %1582 = vmatmul.mubr.msk.bf16.gmra.mxu1 %vm333_vm0, %v312_v13 }
  0x61   : > { %1553 = vmatprep.mubr.msk.bf16.mxu0 %vm333_vm0, %v297_v14  ;;  %1585 = vmatprep.mubr.msk.bf16.mxu1 %vm333_vm0, %v313_v15 }
  0x68   : > { %1554 = vmatmul.mubr.msk.bf16.gmra.mxu0 %vm333_vm0, %v298_v24  ;;  %1586 = vmatmul.mubr.msk.bf16.gmra.mxu1 %vm333_vm0, %v314_v25 }
  0x69   : > { %1557 = vmatprep.mubr.msk.bf16.mxu0 %vm333_vm0, %v299_v26  ;;  %1589 = vmatprep.mubr.msk.bf16.mxu1 %vm333_vm0, %v315_v27 }
  0x70   : > { %1558 = vmatmul.mubr.msk.bf16.gmra.mxu0 %vm333_vm0, %v300_v32  ;;  %1590 = vmatmul.mubr.msk.bf16.gmra.mxu1 %vm333_vm0, %v316_v33 }
  0xf8   : > { %v1531_v35 = vpop.f32.mrf.mxu0  ;;  %v1563_v37 = vpop.f32.mrf.mxu1 }
  0xf9   : > { %v728_v38 = vmul.f32 %v1531_v35, %v1923_v34  ;;  %v760_v39 = vmul.f32 %v1563_v37, %v1923_v34 }
  0xfa   : > { %v464_v40 = vpop.f32.mrf.mxu0  ;;  %v592_v41 = vpop.f32.mrf.mxu1 }
  0xfb   : > { %v799_v42 = vadd.f32 %v1928_v36, %v728_v38  ;;  %v831_v43 = vadd.f32 %v1928_v36, %v760_v39  ;;  %v726_v44 = vmul.f32 %v1923_v34, %v464_v40  ;;  %v758_v45 = vmul.f32 %v1923_v34, %v592_v41 }
  0xfc   : > { %v1532_v46 = vpop.f32.mrf.mxu0  ;;  %v1564_v47 = vpop.f32.mrf.mxu1 }
  0xfd   : > { %v863_v48 = vmax.f32 %v799_v42, 0.0  ;;  %v895_v49 = vmax.f32 %v831_v43, 0.0  ;;  %v797_v50 = vadd.f32 %v1928_v36, %v726_v44  ;;  %v829_v51 = vadd.f32 %v1928_v36, %v758_v45 }
  0xfe   : > { %v729_v52 = vmul.f32 %v1532_v46, %v1923_v34  ;;  %v761_v53 = vmul.f32 %v1564_v47, %v1923_v34  ;;  %v467_v54 = vpop.f32.mrf.mxu0  ;;  %v595_v55 = vpop.f32.mrf.mxu1 }
  0xff   : > { %v1429_v56 = vpack.c.bf16 %v863_v48, %v863_v48  ;;  %v1461_v57 = vpack.c.bf16 %v895_v49, %v895_v49  ;;  %v861_v58 = vmax.f32 %v797_v50, 0.0  ;;  %v893_v59 = vmax.f32 %v829_v51, 0.0 }
 0x100   : > { %v800_v60 = vadd.f32 %v1928_v36, %v729_v52  ;;  %v832_v61 = vadd.f32 %v1928_v36, %v761_v53  ;;  %v727_v62 = vmul.f32 %v1923_v34, %v467_v54  ;;  %v759_v63 = vmul.f32 %v1923_v34, %v595_v55  ;;  %v1535_v0 = vpop.f32.mrf.mxu0  ;;  %v1567_v1 = vpop.f32.mrf.mxu1 }
 0x101   : > { %1184 = vst.msk [vmem:[%s1941_s15 + $0x8] sm:$0xf] %vm1181_vm1, %v1429_v56  ;;  %1216 = vst.msk [vmem:[%s1941_s15 + $0x88] sm:$0xf] %vm1181_vm1, %v1461_v57  ;;  %v1427_v2 = vpack.c.bf16 %v861_v58, %v861_v58  ;;  %v1459_v3 = vpack.c.bf16 %v893_v59, %v893_v59  ;;  %v732_v4 = vmul.f32 %v1535_v0, %v1923_v34 }
 0x102   : > { %v764_v5 = vmul.f32 %v1567_v1, %v1923_v34  ;;  %v864_v6 = vmax.f32 %v800_v60, 0.0  ;;  %v896_v7 = vmax.f32 %v832_v61, 0.0  ;;  %v798_v8 = vadd.f32 %v1928_v36, %v727_v62  ;;  %v480_v10 = vpop.f32.mrf.mxu0  ;;  %v608_v11 = vpop.f32.mrf.mxu1 }
 0x103   : > { %v830_v9 = vadd.f32 %v1928_v36, %v759_v63  ;;  %1182 = vst.msk [vmem:[%s1941_s15] sm:$0xf] %vm1181_vm1, %v1427_v2  ;;  %1214 = vst.msk [vmem:[%s1941_s15 + $0x80] sm:$0xf] %vm1181_vm1, %v1459_v3  ;;  %v803_v12 = vadd.f32 %v1928_v36, %v732_v4  ;;  %v730_v14 = vmul.f32 %v1923_v34, %v480_v10 }
 0x104   : > { %v835_v13 = vadd.f32 %v1928_v36, %v764_v5  ;;  %v762_v15 = vmul.f32 %v1923_v34, %v608_v11  ;;  %v1430_v16 = vpack.c.bf16 %v864_v6, %v864_v6  ;;  %v1462_v17 = vpack.c.bf16 %v896_v7, %v896_v7  ;;  %v1536_v20 = vpop.f32.mrf.mxu0  ;;  %v1568_v21 = vpop.f32.mrf.mxu1 }
 0x105   : > { %v862_v18 = vmax.f32 %v798_v8, 0.0  ;;  %v894_v19 = vmax.f32 %v830_v9, 0.0  ;;  %v867_v22 = vmax.f32 %v803_v12, 0.0  ;;  %v801_v24 = vadd.f32 %v1928_v36, %v730_v14 }
 0x106   : > { %v899_v23 = vmax.f32 %v835_v13, 0.0  ;;  %v833_v25 = vadd.f32 %v1928_v36, %v762_v15  ;;  %1185 = vst.msk [vmem:[%s1941_s15 + $0xc] sm:$0xf] %vm1181_vm1, %v1430_v16  ;;  %1217 = vst.msk [vmem:[%s1941_s15 + $0x8c] sm:$0xf] %vm1181_vm1, %v1462_v17  ;;  %v733_v28 = vmul.f32 %v1536_v20, %v1923_v34  ;;  %v765_v29 = vmul.f32 %v1568_v21, %v1923_v34  ;;  %v483_v30 = vpop.f32.mrf.mxu0  ;;  %v611_v31 = vpop.f32.mrf.mxu1 }
 0x107   : > { %v1428_v26 = vpack.c.bf16 %v862_v18, %v862_v18  ;;  %v1460_v27 = vpack.c.bf16 %v894_v19, %v894_v19  ;;  %v1433_v32 = vpack.c.bf16 %v867_v22, %v867_v22  ;;  %v865_v35 = vmax.f32 %v801_v24, 0.0 }
 0x108   : > { %v1465_v33 = vpack.c.bf16 %v899_v23, %v899_v23  ;;  %v897_v37 = vmax.f32 %v833_v25, 0.0  ;;  %v804_v38 = vadd.f32 %v1928_v36, %v733_v28  ;;  %v836_v39 = vadd.f32 %v1928_v36, %v765_v29  ;;  %v1539_v42 = vpop.f32.mrf.mxu0  ;;  %v1571_v43 = vpop.f32.mrf.mxu1 }
 0x109   : > { %1183 = vst.msk [vmem:[%s1941_s15 + $0x4] sm:$0xf] %vm1181_vm1, %v1428_v26  ;;  %1215 = vst.msk [vmem:[%s1941_s15 + $0x84] sm:$0xf] %vm1181_vm1, %v1460_v27  ;;  %v731_v40 = vmul.f32 %v1923_v34, %v483_v30  ;;  %v763_v41 = vmul.f32 %v1923_v34, %v611_v31  ;;  %v1431_v44 = vpack.c.bf16 %v865_v35, %v865_v35 }
 0x10a   : > { %1188 = vst.msk [vmem:[%s1941_s15 + $0x18] sm:$0xf] %vm1181_vm1, %v1433_v32  ;;  %1220 = vst.msk [vmem:[%s1941_s15 + $0x98] sm:$0xf] %vm1181_vm1, %v1465_v33  ;;  %v1463_v45 = vpack.c.bf16 %v897_v37, %v897_v37  ;;  %v736_v46 = vmul.f32 %v1539_v42, %v1923_v34  ;;  %v768_v47 = vmul.f32 %v1571_v43, %v1923_v34  ;;  %v868_v48 = vmax.f32 %v804_v38, 0.0  ;;  %v496_v52 = vpop.f32.mrf.mxu0  ;;  %v624_v53 = vpop.f32.mrf.mxu1 }
 0x10b   : > { %v900_v49 = vmax.f32 %v836_v39, 0.0  ;;  %v802_v50 = vadd.f32 %v1928_v36, %v731_v40  ;;  %v834_v51 = vadd.f32 %v1928_v36, %v763_v41  ;;  %1186 = vst.msk [vmem:[%s1941_s15 + $0x10] sm:$0xf] %vm1181_vm1, %v1431_v44  ;;  %v734_v56 = vmul.f32 %v1923_v34, %v496_v52 }
 0x10c   : > { %1218 = vst.msk [vmem:[%s1941_s15 + $0x90] sm:$0xf] %vm1181_vm1, %v1463_v45  ;;  %v807_v54 = vadd.f32 %v1928_v36, %v736_v46  ;;  %v839_v55 = vadd.f32 %v1928_v36, %v768_v47  ;;  %v766_v57 = vmul.f32 %v1923_v34, %v624_v53  ;;  %v1434_v58 = vpack.c.bf16 %v868_v48, %v868_v48  ;;  %v1540_v62 = vpop.f32.mrf.mxu0  ;;  %v1572_v63 = vpop.f32.mrf.mxu1 }
 0x10d   : > { %v1466_v59 = vpack.c.bf16 %v900_v49, %v900_v49  ;;  %v866_v60 = vmax.f32 %v802_v50, 0.0  ;;  %v898_v61 = vmax.f32 %v834_v51, 0.0  ;;  %v805_v2 = vadd.f32 %v1928_v36, %v734_v56 }
 0x10e   : > { %v871_v0 = vmax.f32 %v807_v54, 0.0  ;;  %v903_v1 = vmax.f32 %v839_v55, 0.0  ;;  %v837_v3 = vadd.f32 %v1928_v36, %v766_v57  ;;  %1189 = vst.msk [vmem:[%s1941_s15 + $0x1c] sm:$0xf] %vm1181_vm1, %v1434_v58  ;;  %v737_v6 = vmul.f32 %v1540_v62, %v1923_v34  ;;  %v499_v8 = vpop.f32.mrf.mxu0  ;;  %v627_v9 = vpop.f32.mrf.mxu1 }
 0x10f   : > { %1221 = vst.msk [vmem:[%s1941_s15 + $0x9c] sm:$0xf] %vm1181_vm1, %v1466_v59  ;;  %v1432_v4 = vpack.c.bf16 %v866_v60, %v866_v60  ;;  %v1464_v5 = vpack.c.bf16 %v898_v61, %v898_v61  ;;  %v769_v7 = vmul.f32 %v1572_v63, %v1923_v34  ;;  %v869_v12 = vmax.f32 %v805_v2, 0.0 }
 0x110   : > { %v1437_v10 = vpack.c.bf16 %v871_v0, %v871_v0  ;;  %v1469_v11 = vpack.c.bf16 %v903_v1, %v903_v1  ;;  %v901_v13 = vmax.f32 %v837_v3, 0.0  ;;  %v808_v14 = vadd.f32 %v1928_v36, %v737_v6  ;;  %v1543_v18 = vpop.f32.mrf.mxu0  ;;  %v1575_v19 = vpop.f32.mrf.mxu1 }
 0x111   : > { %1187 = vst.msk [vmem:[%s1941_s15 + $0x14] sm:$0xf] %vm1181_vm1, %v1432_v4  ;;  %1219 = vst.msk [vmem:[%s1941_s15 + $0x94] sm:$0xf] %vm1181_vm1, %v1464_v5  ;;  %v840_v15 = vadd.f32 %v1928_v36, %v769_v7  ;;  %v735_v16 = vmul.f32 %v1923_v34, %v499_v8  ;;  %v767_v17 = vmul.f32 %v1923_v34, %v627_v9 }
 0x112   : > { %1192 = vst.msk [vmem:[%s1941_s15 + $0x28] sm:$0xf] %vm1181_vm1, %v1437_v10  ;;  %1224 = vst.msk [vmem:[%s1941_s15 + $0xa8] sm:$0xf] %vm1181_vm1, %v1469_v11  ;;  %v1435_v20 = vpack.c.bf16 %v869_v12, %v869_v12  ;;  %v1467_v21 = vpack.c.bf16 %v901_v13, %v901_v13  ;;  %v740_v22 = vmul.f32 %v1543_v18, %v1923_v34  ;;  %v872_v24 = vmax.f32 %v808_v14, 0.0  ;;  %v512_v28 = vpop.f32.mrf.mxu0  ;;  %v640_v29 = vpop.f32.mrf.mxu1 }
 0x113   : > { %v772_v23 = vmul.f32 %v1575_v19, %v1923_v34  ;;  %v904_v25 = vmax.f32 %v840_v15, 0.0  ;;  %v806_v26 = vadd.f32 %v1928_v36, %v735_v16  ;;  %v838_v27 = vadd.f32 %v1928_v36, %v767_v17 }
 0x114   : > { %1190 = vst.msk [vmem:[%s1941_s15 + $0x20] sm:$0xf] %vm1181_vm1, %v1435_v20  ;;  %1222 = vst.msk [vmem:[%s1941_s15 + $0xa0] sm:$0xf] %vm1181_vm1, %v1467_v21  ;;  %v811_v30 = vadd.f32 %v1928_v36, %v740_v22  ;;  %v738_v32 = vmul.f32 %v1923_v34, %v512_v28  ;;  %v770_v33 = vmul.f32 %v1923_v34, %v640_v29  ;;  %v1544_v40 = vpop.f32.mrf.mxu0  ;;  %v1576_v41 = vpop.f32.mrf.mxu1 }
 0x115   : > { %v843_v31 = vadd.f32 %v1928_v36, %v772_v23  ;;  %v1438_v35 = vpack.c.bf16 %v872_v24, %v872_v24  ;;  %v1470_v37 = vpack.c.bf16 %v904_v25, %v904_v25  ;;  %v870_v38 = vmax.f32 %v806_v26, 0.0 }
 0x116   : > { %v902_v39 = vmax.f32 %v838_v27, 0.0  ;;  %v875_v42 = vmax.f32 %v811_v30, 0.0  ;;  %v809_v44 = vadd.f32 %v1928_v36, %v738_v32  ;;  %v841_v45 = vadd.f32 %v1928_v36, %v770_v33  ;;  %v515_v50 = vpop.f32.mrf.mxu0  ;;  %v643_v51 = vpop.f32.mrf.mxu1 }
 0x117   : > { %v907_v43 = vmax.f32 %v843_v31, 0.0  ;;  %1193 = vst.msk [vmem:[%s1941_s15 + $0x2c] sm:$0xf] %vm1181_vm1, %v1438_v35  ;;  %1225 = vst.msk [vmem:[%s1941_s15 + $0xac] sm:$0xf] %vm1181_vm1, %v1470_v37  ;;  %v1436_v46 = vpack.c.bf16 %v870_v38, %v870_v38  ;;  %v741_v48 = vmul.f32 %v1544_v40, %v1923_v34  ;;  %v773_v49 = vmul.f32 %v1576_v41, %v1923_v34 }
 0x118   : > { %v1468_v47 = vpack.c.bf16 %v902_v39, %v902_v39  ;;  %v1441_v52 = vpack.c.bf16 %v875_v42, %v875_v42  ;;  %v873_v54 = vmax.f32 %v809_v44, 0.0  ;;  %v905_v55 = vmax.f32 %v841_v45, 0.0  ;;  %v1547_v60 = vpop.f32.mrf.mxu0  ;;  %v1579_v61 = vpop.f32.mrf.mxu1 }
 0x119   : > { %v1473_v53 = vpack.c.bf16 %v907_v43, %v907_v43  ;;  %1191 = vst.msk [vmem:[%s1941_s15 + $0x24] sm:$0xf] %vm1181_vm1, %v1436_v46  ;;  %v812_v56 = vadd.f32 %v1928_v36, %v741_v48  ;;  %v844_v57 = vadd.f32 %v1928_v36, %v773_v49  ;;  %v739_v58 = vmul.f32 %v1923_v34, %v515_v50 }
 0x11a   : > { %1223 = vst.msk [vmem:[%s1941_s15 + $0xa4] sm:$0xf] %vm1181_vm1, %v1468_v47  ;;  %v771_v59 = vmul.f32 %v1923_v34, %v643_v51  ;;  %1196 = vst.msk [vmem:[%s1941_s15 + $0x38] sm:$0xf] %vm1181_vm1, %v1441_v52  ;;  %v1439_v62 = vpack.c.bf16 %v873_v54, %v873_v54  ;;  %v1471_v63 = vpack.c.bf16 %v905_v55, %v905_v55  ;;  %v528_v6 = vpop.f32.mrf.mxu0  ;;  %v656_v7 = vpop.f32.mrf.mxu1 }
 0x11b   : > { %1228 = vst.msk [vmem:[%s1941_s15 + $0xb8] sm:$0xf] %vm1181_vm1, %v1473_v53  ;;  %v744_v0 = vmul.f32 %v1547_v60, %v1923_v34  ;;  %v776_v1 = vmul.f32 %v1579_v61, %v1923_v34  ;;  %v876_v2 = vmax.f32 %v812_v56, 0.0  ;;  %v908_v3 = vmax.f32 %v844_v57, 0.0 }
 0x11c   : > { %v810_v4 = vadd.f32 %v1928_v36, %v739_v58  ;;  %v842_v5 = vadd.f32 %v1928_v36, %v771_v59  ;;  %1194 = vst.msk [vmem:[%s1941_s15 + $0x30] sm:$0xf] %vm1181_vm1, %v1439_v62  ;;  %1226 = vst.msk [vmem:[%s1941_s15 + $0xb0] sm:$0xf] %vm1181_vm1, %v1471_v63  ;;  %v742_v10 = vmul.f32 %v1923_v34, %v528_v6  ;;  %v1548_v16 = vpop.f32.mrf.mxu0  ;;  %v1580_v17 = vpop.f32.mrf.mxu1 }
 0x11d   : > { %v815_v8 = vadd.f32 %v1928_v36, %v744_v0  ;;  %v847_v9 = vadd.f32 %v1928_v36, %v776_v1  ;;  %v774_v11 = vmul.f32 %v1923_v34, %v656_v7  ;;  %v1442_v12 = vpack.c.bf16 %v876_v2, %v876_v2 }
 0x11e   : > { %v1474_v13 = vpack.c.bf16 %v908_v3, %v908_v3  ;;  %v874_v14 = vmax.f32 %v810_v4, 0.0  ;;  %v906_v15 = vmax.f32 %v842_v5, 0.0  ;;  %v813_v20 = vadd.f32 %v1928_v36, %v742_v10  ;;  %v531_v26 = vpop.f32.mrf.mxu0  ;;  %v659_v27 = vpop.f32.mrf.mxu1 }
 0x11f   : > { %v879_v18 = vmax.f32 %v815_v8, 0.0  ;;  %v911_v19 = vmax.f32 %v847_v9, 0.0  ;;  %v845_v21 = vadd.f32 %v1928_v36, %v774_v11  ;;  %1197 = vst.msk [vmem:[%s1941_s15 + $0x3c] sm:$0xf] %vm1181_vm1, %v1442_v12  ;;  %v745_v24 = vmul.f32 %v1548_v16, %v1923_v34 }
 0x120   : > { %1229 = vst.msk [vmem:[%s1941_s15 + $0xbc] sm:$0xf] %vm1181_vm1, %v1474_v13  ;;  %v1440_v22 = vpack.c.bf16 %v874_v14, %v874_v14  ;;  %v1472_v23 = vpack.c.bf16 %v906_v15, %v906_v15  ;;  %v777_v25 = vmul.f32 %v1580_v17, %v1923_v34  ;;  %v877_v30 = vmax.f32 %v813_v20, 0.0  ;;  %v1551_v38 = vpop.f32.mrf.mxu0  ;;  %v1583_v39 = vpop.f32.mrf.mxu1 }
 0x121   : > { %v1445_v28 = vpack.c.bf16 %v879_v18, %v879_v18  ;;  %v1477_v29 = vpack.c.bf16 %v911_v19, %v911_v19  ;;  %v909_v31 = vmax.f32 %v845_v21, 0.0  ;;  %v816_v32 = vadd.f32 %v1928_v36, %v745_v24 }
 0x122   : > { %1195 = vst.msk [vmem:[%s1941_s15 + $0x34] sm:$0xf] %vm1181_vm1, %v1440_v22  ;;  %1227 = vst.msk [vmem:[%s1941_s15 + $0xb4] sm:$0xf] %vm1181_vm1, %v1472_v23  ;;  %v848_v33 = vadd.f32 %v1928_v36, %v777_v25  ;;  %v743_v35 = vmul.f32 %v1923_v34, %v531_v26  ;;  %v775_v37 = vmul.f32 %v1923_v34, %v659_v27  ;;  %v544_v48 = vpop.f32.mrf.mxu0  ;;  %v672_v49 = vpop.f32.mrf.mxu1 }
 0x123   : > { %1200 = vst.msk [vmem:[%s1941_s15 + $0x48] sm:$0xf] %vm1181_vm1, %v1445_v28  ;;  %1232 = vst.msk [vmem:[%s1941_s15 + $0xc8] sm:$0xf] %vm1181_vm1, %v1477_v29  ;;  %v1443_v40 = vpack.c.bf16 %v877_v30, %v877_v30  ;;  %v1475_v41 = vpack.c.bf16 %v909_v31, %v909_v31  ;;  %v748_v42 = vmul.f32 %v1551_v38, %v1923_v34  ;;  %v880_v44 = vmax.f32 %v816_v32, 0.0 }
 0x124   : > { %v780_v43 = vmul.f32 %v1583_v39, %v1923_v34  ;;  %v912_v45 = vmax.f32 %v848_v33, 0.0  ;;  %v814_v46 = vadd.f32 %v1928_v36, %v743_v35  ;;  %v846_v47 = vadd.f32 %v1928_v36, %v775_v37  ;;  %v1552_v58 = vpop.f32.mrf.mxu0  ;;  %v1584_v59 = vpop.f32.mrf.mxu1 }
 0x125   : > { %1198 = vst.msk [vmem:[%s1941_s15 + $0x40] sm:$0xf] %vm1181_vm1, %v1443_v40  ;;  %1230 = vst.msk [vmem:[%s1941_s15 + $0xc0] sm:$0xf] %vm1181_vm1, %v1475_v41  ;;  %v819_v50 = vadd.f32 %v1928_v36, %v748_v42  ;;  %v746_v52 = vmul.f32 %v1923_v34, %v544_v48  ;;  %v778_v53 = vmul.f32 %v1923_v34, %v672_v49 }
 0x126   : > { %v851_v51 = vadd.f32 %v1928_v36, %v780_v43  ;;  %v1446_v54 = vpack.c.bf16 %v880_v44, %v880_v44  ;;  %v1478_v55 = vpack.c.bf16 %v912_v45, %v912_v45  ;;  %v878_v56 = vmax.f32 %v814_v46, 0.0  ;;  %v547_v4 = vpop.f32.mrf.mxu0  ;;  %v675_v5 = vpop.f32.mrf.mxu1 }
 0x127   : > { %v910_v57 = vmax.f32 %v846_v47, 0.0  ;;  %v883_v60 = vmax.f32 %v819_v50, 0.0  ;;  %v817_v62 = vadd.f32 %v1928_v36, %v746_v52  ;;  %v849_v63 = vadd.f32 %v1928_v36, %v778_v53 }
 0x128   : > { %v915_v61 = vmax.f32 %v851_v51, 0.0  ;;  %1201 = vst.msk [vmem:[%s1941_s15 + $0x4c] sm:$0xf] %vm1181_vm1, %v1446_v54  ;;  %1233 = vst.msk [vmem:[%s1941_s15 + $0xcc] sm:$0xf] %vm1181_vm1, %v1478_v55  ;;  %v1444_v0 = vpack.c.bf16 %v878_v56, %v878_v56  ;;  %v749_v2 = vmul.f32 %v1552_v58, %v1923_v34  ;;  %v781_v3 = vmul.f32 %v1584_v59, %v1923_v34  ;;  %v1555_v14 = vpop.f32.mrf.mxu0  ;;  %v1587_v15 = vpop.f32.mrf.mxu1 }
 0x129   : > { %v1476_v1 = vpack.c.bf16 %v910_v57, %v910_v57  ;;  %v1449_v6 = vpack.c.bf16 %v883_v60, %v883_v60  ;;  %v881_v8 = vmax.f32 %v817_v62, 0.0  ;;  %v913_v9 = vmax.f32 %v849_v63, 0.0 }
 0x12a   : > { %v1481_v7 = vpack.c.bf16 %v915_v61, %v915_v61  ;;  %1199 = vst.msk [vmem:[%s1941_s15 + $0x44] sm:$0xf] %vm1181_vm1, %v1444_v0  ;;  %v820_v10 = vadd.f32 %v1928_v36, %v749_v2  ;;  %v852_v11 = vadd.f32 %v1928_v36, %v781_v3  ;;  %v747_v12 = vmul.f32 %v1923_v34, %v547_v4  ;;  %v560_v24 = vpop.f32.mrf.mxu0  ;;  %v688_v25 = vpop.f32.mrf.mxu1 }
 0x12b   : > { %1231 = vst.msk [vmem:[%s1941_s15 + $0xc4] sm:$0xf] %vm1181_vm1, %v1476_v1  ;;  %v779_v13 = vmul.f32 %v1923_v34, %v675_v5  ;;  %1204 = vst.msk [vmem:[%s1941_s15 + $0x58] sm:$0xf] %vm1181_vm1, %v1449_v6  ;;  %v1447_v16 = vpack.c.bf16 %v881_v8, %v881_v8  ;;  %v1479_v17 = vpack.c.bf16 %v913_v9, %v913_v9 }
 0x12c   : > { %1236 = vst.msk [vmem:[%s1941_s15 + $0xd8] sm:$0xf] %vm1181_vm1, %v1481_v7  ;;  %v752_v18 = vmul.f32 %v1555_v14, %v1923_v34  ;;  %v784_v19 = vmul.f32 %v1587_v15, %v1923_v34  ;;  %v884_v20 = vmax.f32 %v820_v10, 0.0  ;;  %v916_v21 = vmax.f32 %v852_v11, 0.0  ;;  %v1556_v35 = vpop.f32.mrf.mxu0  ;;  %v1588_v37 = vpop.f32.mrf.mxu1 }
 0x12d   : > { %v818_v22 = vadd.f32 %v1928_v36, %v747_v12  ;;  %v850_v23 = vadd.f32 %v1928_v36, %v779_v13  ;;  %1202 = vst.msk [vmem:[%s1941_s15 + $0x50] sm:$0xf] %vm1181_vm1, %v1447_v16  ;;  %1234 = vst.msk [vmem:[%s1941_s15 + $0xd0] sm:$0xf] %vm1181_vm1, %v1479_v17  ;;  %v750_v28 = vmul.f32 %v1923_v34, %v560_v24 }
 0x12e   : > { %v823_v26 = vadd.f32 %v1928_v36, %v752_v18  ;;  %v855_v27 = vadd.f32 %v1928_v36, %v784_v19  ;;  %v782_v29 = vmul.f32 %v1923_v34, %v688_v25  ;;  %v1450_v30 = vpack.c.bf16 %v884_v20, %v884_v20  ;;  %v563_v46 = vpop.f32.mrf.mxu0  ;;  %v691_v47 = vpop.f32.mrf.mxu1 }
 0x12f   : > { %v1482_v31 = vpack.c.bf16 %v916_v21, %v916_v21  ;;  %v882_v32 = vmax.f32 %v818_v22, 0.0  ;;  %v914_v33 = vmax.f32 %v850_v23, 0.0  ;;  %v821_v40 = vadd.f32 %v1928_v36, %v750_v28 }
 0x130   : > { %v887_v38 = vmax.f32 %v823_v26, 0.0  ;;  %v919_v39 = vmax.f32 %v855_v27, 0.0  ;;  %v853_v41 = vadd.f32 %v1928_v36, %v782_v29  ;;  %1205 = vst.msk [vmem:[%s1941_s15 + $0x5c] sm:$0xf] %vm1181_vm1, %v1450_v30  ;;  %v753_v44 = vmul.f32 %v1556_v35, %v1923_v34  ;;  %v1559_v56 = vpop.f32.mrf.mxu0  ;;  %v1591_v57 = vpop.f32.mrf.mxu1 }
 0x131   : > { %1237 = vst.msk [vmem:[%s1941_s15 + $0xdc] sm:$0xf] %vm1181_vm1, %v1482_v31  ;;  %v1448_v42 = vpack.c.bf16 %v882_v32, %v882_v32  ;;  %v1480_v43 = vpack.c.bf16 %v914_v33, %v914_v33  ;;  %v785_v45 = vmul.f32 %v1588_v37, %v1923_v34  ;;  %v885_v50 = vmax.f32 %v821_v40, 0.0 }
 0x132   : > { %v1453_v48 = vpack.c.bf16 %v887_v38, %v887_v38  ;;  %v1485_v49 = vpack.c.bf16 %v919_v39, %v919_v39  ;;  %v917_v51 = vmax.f32 %v853_v41, 0.0  ;;  %v824_v52 = vadd.f32 %v1928_v36, %v753_v44  ;;  %v576_v2 = vpop.f32.mrf.mxu0  ;;  %v704_v3 = vpop.f32.mrf.mxu1 }
 0x133   : > { %1203 = vst.msk [vmem:[%s1941_s15 + $0x54] sm:$0xf] %vm1181_vm1, %v1448_v42  ;;  %1235 = vst.msk [vmem:[%s1941_s15 + $0xd4] sm:$0xf] %vm1181_vm1, %v1480_v43  ;;  %v856_v53 = vadd.f32 %v1928_v36, %v785_v45  ;;  %v751_v54 = vmul.f32 %v1923_v34, %v563_v46  ;;  %v783_v55 = vmul.f32 %v1923_v34, %v691_v47 }
 0x134   : > { %1208 = vst.msk [vmem:[%s1941_s15 + $0x68] sm:$0xf] %vm1181_vm1, %v1453_v48  ;;  %1240 = vst.msk [vmem:[%s1941_s15 + $0xe8] sm:$0xf] %vm1181_vm1, %v1485_v49  ;;  %v1451_v58 = vpack.c.bf16 %v885_v50, %v885_v50  ;;  %v1483_v59 = vpack.c.bf16 %v917_v51, %v917_v51  ;;  %v756_v60 = vmul.f32 %v1559_v56, %v1923_v34  ;;  %v888_v62 = vmax.f32 %v824_v52, 0.0  ;;  %v1560_v12 = vpop.f32.mrf.mxu0  ;;  %v1592_v13 = vpop.f32.mrf.mxu1 }
 0x135   : > { %v788_v61 = vmul.f32 %v1591_v57, %v1923_v34  ;;  %v920_v63 = vmax.f32 %v856_v53, 0.0  ;;  %v822_v0 = vadd.f32 %v1928_v36, %v751_v54  ;;  %v854_v1 = vadd.f32 %v1928_v36, %v783_v55 }
 0x136   : > { %1206 = vst.msk [vmem:[%s1941_s15 + $0x60] sm:$0xf] %vm1181_vm1, %v1451_v58  ;;  %1238 = vst.msk [vmem:[%s1941_s15 + $0xe0] sm:$0xf] %vm1181_vm1, %v1483_v59  ;;  %v827_v4 = vadd.f32 %v1928_v36, %v756_v60  ;;  %v754_v6 = vmul.f32 %v1923_v34, %v576_v2  ;;  %v786_v7 = vmul.f32 %v1923_v34, %v704_v3  ;;  %v579_v22 = vpop.f32.mrf.mxu0  ;;  %v707_v23 = vpop.f32.mrf.mxu1 }
 0x137   : > { %v859_v5 = vadd.f32 %v1928_v36, %v788_v61  ;;  %v1454_v8 = vpack.c.bf16 %v888_v62, %v888_v62  ;;  %v1486_v9 = vpack.c.bf16 %v920_v63, %v920_v63  ;;  %v886_v10 = vmax.f32 %v822_v0, 0.0 }
 0x138   : > { %v918_v11 = vmax.f32 %v854_v1, 0.0  ;;  %v891_v14 = vmax.f32 %v827_v4, 0.0  ;;  %v825_v16 = vadd.f32 %v1928_v36, %v754_v6  ;;  %v857_v17 = vadd.f32 %v1928_v36, %v786_v7 }
 0x139   : > { %v923_v15 = vmax.f32 %v859_v5, 0.0  ;;  %1209 = vst.msk [vmem:[%s1941_s15 + $0x6c] sm:$0xf] %vm1181_vm1, %v1454_v8  ;;  %1241 = vst.msk [vmem:[%s1941_s15 + $0xec] sm:$0xf] %vm1181_vm1, %v1486_v9  ;;  %v1452_v18 = vpack.c.bf16 %v886_v10, %v886_v10  ;;  %v757_v20 = vmul.f32 %v1560_v12, %v1923_v34  ;;  %v789_v21 = vmul.f32 %v1592_v13, %v1923_v34 }
 0x13a   : > { %v1484_v19 = vpack.c.bf16 %v918_v11, %v918_v11  ;;  %v1457_v24 = vpack.c.bf16 %v891_v14, %v891_v14  ;;  %v889_v26 = vmax.f32 %v825_v16, 0.0  ;;  %v921_v27 = vmax.f32 %v857_v17, 0.0 }
 0x13b   : > { %v1489_v25 = vpack.c.bf16 %v923_v15, %v923_v15  ;;  %1207 = vst.msk [vmem:[%s1941_s15 + $0x64] sm:$0xf] %vm1181_vm1, %v1452_v18  ;;  %v828_v28 = vadd.f32 %v1928_v36, %v757_v20  ;;  %v860_v29 = vadd.f32 %v1928_v36, %v789_v21  ;;  %v755_v30 = vmul.f32 %v1923_v34, %v579_v22 }
 0x13c   : > { %1239 = vst.msk [vmem:[%s1941_s15 + $0xe4] sm:$0xf] %vm1181_vm1, %v1484_v19  ;;  %v787_v31 = vmul.f32 %v1923_v34, %v707_v23  ;;  %1212 = vst.msk [vmem:[%s1941_s15 + $0x78] sm:$0xf] %vm1181_vm1, %v1457_v24  ;;  %v1455_v32 = vpack.c.bf16 %v889_v26, %v889_v26  ;;  %v1487_v33 = vpack.c.bf16 %v921_v27, %v921_v27 }
 0x13d   : > { %1244 = vst.msk [vmem:[%s1941_s15 + $0xf8] sm:$0xf] %vm1181_vm1, %v1489_v25  ;;  %v892_v35 = vmax.f32 %v828_v28, 0.0  ;;  %v924_v37 = vmax.f32 %v860_v29, 0.0  ;;  %v826_v38 = vadd.f32 %v1928_v36, %v755_v30 }
 0x13e   : > { %v858_v39 = vadd.f32 %v1928_v36, %v787_v31  ;;  %1210 = vst.msk [vmem:[%s1941_s15 + $0x70] sm:$0xf] %vm1181_vm1, %v1455_v32  ;;  %1242 = vst.msk [vmem:[%s1941_s15 + $0xf0] sm:$0xf] %vm1181_vm1, %v1487_v33 }
 0x13f   : > { %v1458_v34 = vpack.c.bf16 %v892_v35, %v892_v35  ;;  %v1490_v40 = vpack.c.bf16 %v924_v37, %v924_v37  ;;  %v890_v41 = vmax.f32 %v826_v38, 0.0 }
 0x140   : > { %v922_v42 = vmax.f32 %v858_v39, 0.0 }
 0x141   : > { %1213 = vst.msk [vmem:[%s1941_s15 + $0x7c] sm:$0xf] %vm1181_vm1, %v1458_v34  ;;  %1245 = vst.msk [vmem:[%s1941_s15 + $0xfc] sm:$0xf] %vm1181_vm1, %v1490_v40  ;;  %v1456_v43 = vpack.c.bf16 %v890_v41, %v890_v41 }
 0x142   : > { %v1488_v44 = vpack.c.bf16 %v922_v42, %v922_v42 }
 0x143   : > { %1211 = vst.msk [vmem:[%s1941_s15 + $0x74] sm:$0xf] %vm1181_vm1, %v1456_v43 }
 0x144   : > { %1243 = vst.msk [vmem:[%s1941_s15 + $0xf4] sm:$0xf] %vm1181_vm1, %v1488_v44 }
 0x145 PF: > { %p14_p9 = scmp.ge.s32.totalorder %s1752_s20, 4   ;;  %s2214_s15 = smov %s1694_s16 }
 0x146   : > { %s2215_s16 = smov %s1698_s17  ;;  %s2216_s17 = smov %s1762_s23 }
 0x147   : > { %s2217_s18 = smov %s1752_s20  ;;  %16 = sbr.rel (!%p14_p9) target bundleno = 3 (0x3), region = 76 }
 0x14c   :  { %1268 = vsyncpa [#allocation3], 1 }
 0x14d   :  { %1270 = vsyncpa [#allocation3 + $0x1], 1 }

// kernel: bottleneck_forward.3
= control target key start
LH: loop header
LB: loop body
LE: loop exit
PB: predicated region body
PF: predicated region fallthrough
CT: control target
= control target key end

     0   :  { %s4253_s0 = inlined_call_operand.vmem [shape: bf16[2,10,10,10,8], index: 0, kind: input, shape index: {}, may-alias: {0,1,2}]   ;;  %s4254_s1 = inlined_call_operand.vmem [shape: bf16[2,10,10,10,8], index: 1, kind: input, shape index: {}, may-alias: {0,1,2}]   ;;  %s4255_s2 = inlined_call_operand.vmem [shape: bf16[2,10,10,10,8], index: 2, kind: input, shape index: {}, may-alias: {0,1,2}]   ;;  %s4256_s3 = inlined_call_operand.vmem [shape: f32[2,8,64,32], index: 3, kind: input, shape index: {}]   ;;  %s4257_s4 = inlined_call_operand.vmem [shape: bf16[3,72,8], index: 4, kind: input, shape index: {}]   ;;  %s4258_s5 = inlined_call_operand.vmem [shape: bf16[8,32], index: 5, kind: input, shape index: {}]   ;;  %s4259_s6 = inlined_call_operand.vmem [shape: f32[1,8], index: 6, kind: input, shape index: {}]   ;;  %s4260_s7 = inlined_call_operand.vmem [shape: f32[1,8], index: 7, kind: input, shape index: {}]   ;;  %s4261_s8 = inlined_call_operand.vmem [shape: f32[1,32], index: 8, kind: input, shape index: {}]   ;;  %s4262_s9 = inlined_call_operand.vmem [shape: f32[1,32], index: 9, kind: input, shape index: {}]   ;;  %s4263_s10 = inlined_call_operand.hbm [shape: f32[2,8,64,32], index: 10, kind: output, shape index: {}]  }
   0x1   :  { %4285 = sst [smem:[#allocation11_spill]] %s4253_s0 }
   0x2   :  { %4286 = sst [smem:[#allocation12_spill]] %s4254_s1 }
   0x3   :  { %4287 = sst [smem:[#allocation13_spill]] %s4255_s2 }
   0x4   :  { %15 = vsyncpa [#allocation3], 0 }
   0x5   :  { %17 = vsyncpa [#allocation3 + $0x1], 0  ;;  %s3012_s13 = smov 0   ;;  %s3014_s14 = smov 0  }
   0x6   :  { %s3016_s15 = smov 0   ;;  %s3018_s16 = smov 0  }
   0x7   :  { %s3020_s17 = smov 0   ;;  %s3022_s18 = smov 0  }
   0x8   :  { %s3024_s19 = smov 0   ;;  %s3026_s20 = smov 0  }
   0x9 LB: > { %4288 = sst [smem:[#allocation5_spill]] %s2925_s15  ;;  %s2441_s21 = sadd.s32 4294967295, %s2945_s20   ;;  %s2945_s20 = sphi %s3026_s20, %s23_s20   ;;  %s2941_s19 = sphi %s3024_s19, %s4317_s19   ;;  %s2937_s18 = sphi %s3022_s18, %s4316_s18   ;;  %s2933_s17 = sphi %s3020_s17, %s4315_s17   ;;  %s2929_s16 = sphi %s3018_s16, %s4314_s16   ;;  %s2925_s15 = sphi %s3016_s15, %s4313_s15   ;;  %s2921_s14 = sphi %s3014_s14, %s4319_s14   ;;  %s2917_s13 = sphi %s3012_s13, %s4318_s13  }
   0xa   : > { %4289 = sst [smem:[#allocation6_spill]] %s2937_s18  ;;  %s2442_s22 = sadd.s32 4294967294, %s2945_s20  }
   0xb   : > { %4290 = sst [smem:[#allocation7_spill]] %s2941_s19  ;;  %s32_s23 = sadd.s32 1, %s2937_s18 }
   0xc   : > { %p33_p0 = scmp.ge.s32.totalorder %s32_s23, 8  ;;  %s35_s24 = sadd.s32 1, %s2941_s19 }
   0xd   : > { %p296_p1 = scmp.ne.s32.totalorder %s2925_s15, %s2921_s14  ;;  %p297_p2 = scmp.eq.s32.totalorder %s2441_s21, 15 }
   0xe   : > { %s4321_s23 = smov (%p33_p0, %s32_s23), 0  ;;  %s4323_s24 = smov (!%p33_p0, %s35_s24), %s2941_s19 }
   0xf   : > { %4291 = sst [smem:[#allocation8_spill]] %s4321_s23  ;;  %s282_s25 = ssub.s32 %s2937_s18, %s4321_s23 }
  0x10   : > { %p3063_p3 = por %p297_p2, %p296_p1  ;;  %p37_p4 = scmp.ge.s32.totalorder %s4323_s24, 2 }
  0x11   : > { %p302_p5 = scmp.ne.s32.totalorder %s2921_s14, %s2917_s13  ;;  %p303_p6 = scmp.eq.s32.totalorder %s2442_s22, 15 }
  0x12   : > { %p2445_p7 = scmp.ge.s32.totalorder %s2945_s20, 1  ;;  %s4325_s24 = smov (%p37_p4, %s4323_s24), 0 }
  0x13   : > { %4293 = sst [smem:[#allocation9_spill]] %s4325_s24  ;;  %p3072_p8 = por %p303_p6, %p302_p5 }
  0x14   : > { %p391_p9 = scmp.lt.s32.totalorder %s2945_s20, 17  ;;  %s281_s28 = ssub.s32 %s2941_s19, %s4325_s24 }
  0x15   : > { %s286_s29 = sadd.s32 1, %s2925_s15  ;;  %s283_s30 = sor.u32 %s282_s25, %s281_s28 }
  0x16   : > { %p392_p10 = pnand %p2445_p7, %p391_p9  ;;  %p284_p11 = scmp.eq.s32.totalorder %s283_s30, 0 }
  0x17   : > { %p462_p12 = scmp.lt.s32.totalorder (!%p392_p10), %s2933_s17, 1  ;;  %s471_s12 = sadd.s32 (!%p392_p10), 1, %s2929_s16 }
  0x18   : > { %s3081_s11 = scalar_select %p284_p11, %s2925_s15, %s286_s29  }
  0x19   : > { %395 = sbr.rel (%p392_p10) target bundleno = 782 (0x30e), region = 60  ;;  %p474_p13 = scmp.lt.s32.totalorder (!%p392_p10), %s471_s12, 9 }
  0x1a   : > { %4295 = sst [smem:[#allocation10_spill]] %s3081_s11  ;;  %p464_p0 = scmp.lt.s32.totalorder (!%p392_p10), %s2929_s16, 9 }
  0x1b   : > { %s4296_s1 = sld [smem:[#allocation12_spill]] (!%p392_p10)  ;;  %s4279_s19 = smov (!%p392_p10), 56  }
  0x1c   : > { %s4301_s0 = sld [smem:[#allocation11_spill]] (!%p392_p10)  ;;  %s4311_s15 = smov (!%p392_p10), 32  }
  0x1d   : > { %s4306_s2 = sld [smem:[#allocation13_spill]] (!%p392_p10)  ;;  %p495_p2 = scmp.lt.s32.totalorder (!%p392_p10), %s2929_s16, 7 }
  0x1e   : > { %s3086_s21 = scalar_select %p462_p12, %s2933_s17, 1  ;;  %vm654_vm0 = vcmask 1042432   ;;  %vm523_vm1 = vsmask.f32 3328  ;;  %vm655_vm2 = vcmask 1046532   ;;  %vm1390_vm6 = vcmask 1043456  }
  0x1f   : > { %s4327_s12 = smov (!%p474_p13, %s471_s12), 9  ;;  %vm3122_vm3 = vmor %vm654_vm0, %vm655_vm2  ;;  %vm524_vm4 = vsmask.f32 7440  ;;  %vm850_vm7 = vcmask 64512   ;;  %vm863_vm8 = vcmask 130048   ;;  %vm872_vm9 = vcmask 195584  }
  0x20   : > { %s3089_s22 = smul.u32 200, %s3086_s21  ;;  %vm3155_vm5 = vmor %vm523_vm1, %vm524_vm4  ;;  %vm881_vm10 = vcmask 261120   ;;  %vm890_vm11 = vcmask 326656   ;;  %vm899_vm12 = vcmask 392192   ;;  %vm908_vm13 = vcmask 457728   ;;  %s2451_s11 = sshll.u32 %s3086_s21, 6 }
  0x21   : > { %s2725_s24 = smul.u32 20, %s4327_s12  ;;  %s4266_s12 = smov 48   ;;  %vm917_vm14 = vcmask 523264   ;;  %vm1381_vm15 = vcmask 588800  }
  0x22   : > { %s3181_s29 = scalar_select %p464_p0, %s2929_s16, 9 }
  0x23   : > { %s478_s25 = sadd.s32 %s2725_s24, %s3089_s22  ;;  %s4270_s24 = smov 24  }
  0x24   : > { %s2448_s28 = sshll.u32 %s478_s25, 2  ;;  %s4272_s25 = smov 16  }
  0x25   : > { %s3095_s23 = scalar_lea.vmem %s4296_s1, %s2448_s28  ;;  %s4268_s28 = smov 40  }
  0x26   : > { %v3098_v0 = vld [vmem:[%s3095_s23 + $0x18] sm:$0xf]  ;;  %v3101_v1 = vld [vmem:[%s3095_s23 + $0x20] sm:$0xf]  ;;  %v937_v2 = vld [vmem:[%s3095_s23 + $0x8] sm:$0xf] }
  0x27   : > { %v2513_v3 = vcombine.low %v3098_v0, %v3101_v1  ;;  %v3107_v4 = vld [vmem:[%s3095_s23 + $0x10] sm:$0xf]  ;;  %v3110_v5 = vld [vmem:[%s3095_s23 + $0x28] sm:$0xf]  ;;  %v938_v6 = vld [vmem:[%s3095_s23 + $0xc] sm:$0x1] }
  0x28   : > { %v2512_v7 = vcombine.low %v937_v2, %v3107_v4  ;;  %v3116_v8 = vcombine.low %v3101_v1, %v3110_v5  ;;  %v3120_v9 = vcombine.low %v3107_v4, %v3098_v0  ;;  %v3127_v11 = vld [vmem:[%s3095_s23 + $0x14] sm:$0x1]  ;;  %v2491_v12 = vrot.slane %v937_v2, 9  ;;  %v935_v13 = vld [vmem:[%s3095_s23] sm:$0xf]  ;;  %s2723_s30 = smul.u32 20, %s3181_s29 }
  0x29   : > { %1214 = vrot.lane.b32.xlu1 %v2513_v3, %s4270_s24  ;;  %v1089_v14 = vrot.slane %v938_v6, 5  ;;  %v2492_v15 = vrot.slane %v3107_v4, 9  ;;  %v1093_v16 = vrot.slane %v3127_v11, 5  ;;  %v936_v17 = vld [vmem:[%s3095_s23 + $0x4] sm:$0x1]  ;;  %v2490_v18 = vrot.slane %v935_v13, 9 }
  0x2a   : > { %1212 = vrot.lane.b32.xlu0 %v2512_v7, %s4270_s24  ;;  %v1085_v19 = vrot.slane %v936_v17, 5  ;;  %v3136_v20 = vld [vmem:[%s3095_s23 + $0x1c] sm:$0x1]  ;;  %v2493_v21 = vrot.slane %v3098_v0, 9  ;;  %v956_v22 = vshrl.u32 %v935_v13, 16  ;;  %v959_v23 = vshll.u32 %v935_v13, 16  ;;  %s468_s29 = sadd.s32 %s3089_s22, %s2723_s30 }
  0x2b   : > { %v1090_v24 = vsel %vm3122_vm3, %v2491_v12, %v1089_v14  ;;  %v1094_v25 = vsel %vm3122_vm3, %v2492_v15, %v1093_v16  ;;  %v1097_v26 = vrot.slane %v3136_v20, 5  ;;  %v965_v27 = vshll.u32 %v936_v17, 16  ;;  %v944_v31 = vld [vmem:[%s3095_s23 + $0x24] sm:$0x1]  ;;  %s2447_s30 = sshll.u32 %s468_s29, 2  ;;  %s482_s24 = sadd.s32 2, %s2929_s16 }
  0x2c   : > { %v1086_v28 = vsel %vm3122_vm3, %v2490_v18, %v1085_v19  ;;  %v958_v29 = vrot.slane %v956_v22, 4  ;;  %v961_v30 = vrot.slane %v959_v23, 5  ;;  %v2520_v32 = vcombine.low %v1090_v24, %v1094_v25  ;;  %v3192_v18 = vld [vmem:[%s3095_s23 + $0x30] sm:$0xf]  ;;  %p3244_p1 = scmp.lt.s32.totalorder %s482_s24, 9  ;;  %s4304_s29 = smov 16  }
  0x2d   : > { %1250 = vrot.lane.b32.xlu1 %v3116_v8, %s4266_s12  ;;  %v2508_v33 = vcombine.low %v1086_v28, %v1090_v24  ;;  %v1098_v34 = vsel %vm3122_vm3, %v2493_v21, %v1097_v26  ;;  %v970_v35 = vshrl.u32 %v937_v2, 16  ;;  %v967_v37 = vrot.slane %v965_v27, 5 }
  0x2e   : > { %1248 = vrot.lane.b32.xlu0 %v3120_v9, %s4266_s12  ;;  %v962_v36 = vor.u32 %v961_v30, %v958_v29  ;;  %v973_v38 = vshll.u32 %v937_v2, 16  ;;  %v979_v39 = vshll.u32 %v938_v6, 16  ;;  %v2494_v42 = vrot.slane %v3101_v1, 9  ;;  %s4274_s12 = smov 8   ;;  %v3205_v29 = vld [vmem:[%s3095_s23 + $0x38] sm:$0xf] }
  0x2f   : > { %v972_v41 = vrot.slane %v970_v35, 4  ;;  %v1101_v43 = vrot.slane %v944_v31, 5  ;;  %v984_v44 = vshrl.u32 %v3107_v4, 16  ;;  %v3162_v45 = vcombine.low %v1094_v25, %v1098_v34  ;;  %v3201_v25 = vld [vmem:[%s3095_s23 + $0x34] sm:$0x1]  ;;  %s4329_s24 = smov (!%p3244_p1, %s482_s24), 9 }
  0x30   : > { %v963_v46 = vrot.slane %v962_v36, 4  ;;  %v975_v47 = vrot.slane %v973_v38, 5  ;;  %v987_v48 = vshll.u32 %v3107_v4, 16  ;;  %v993_v51 = vshll.u32 %v3127_v11, 16  ;;  %s2726_s1 = smul.u32 20, %s4329_s24 }
  0x31   : > { %1199 = vrot.lane.b32.xlu1 %v2508_v33, %s4272_s25  ;;  %v3168_v49 = vsel %vm3122_vm3, %v2494_v42, %v1101_v43  ;;  %v986_v50 = vrot.slane %v984_v44, 4  ;;  %v998_v52 = vshrl.u32 %v3098_v0, 16  ;;  %v981_v55 = vrot.slane %v979_v39, 5 }
  0x32   : > { %1238 = vrot.lane.b32.xlu0 %v2520_v32, %s4268_s28  ;;  %v968_v53 = vsel %vm3155_vm5, %v963_v46, %v967_v37  ;;  %v976_v54 = vor.u32 %v975_v47, %v972_v41  ;;  %v989_v56 = vrot.slane %v987_v48, 5  ;;  %v2521_v57 = vcombine.low %v1098_v34, %v3168_v49  ;;  %v950_v34 = vld [vmem:[%s3095_s23 + $0x3c] sm:$0x1]  ;;  %s3309_s24 = sadd.s32 %s2726_s1, %s3089_s22  ;;  %s4305_s1 = smov 24  }
  0x33   : > { %v1000_v58 = vrot.slane %v998_v52, 4  ;;  %v1001_v59 = vshll.u32 %v3098_v0, 16  ;;  %v1007_v60 = vshll.u32 %v3136_v20, 16  ;;  %v1012_v63 = vshrl.u32 %v3101_v1, 16  ;;  %v946_v0 = vld [vmem:[%s3095_s23 + $0x2c] sm:$0x1] }
  0x34   : > { %v977_v61 = vrot.slane %v976_v54, 4  ;;  %v990_v62 = vor.u32 %v989_v56, %v986_v50  ;;  %v1015_v2 = vshll.u32 %v3101_v1, 16  ;;  %v995_v3 = vrot.slane %v993_v51, 5  ;;  %s2449_s22 = sshll.u32 %s3309_s24, 2  ;;  %s4309_s24 = smov 56  }
  0x35   : > { %1201 = vrot.lane.b32.xlu1 %v3162_v45, %s4272_s25  ;;  %v1003_v4 = vrot.slane %v1001_v59, 5  ;;  %v1021_v6 = vshll.u32 %v944_v31, 16  ;;  %v1026_v7 = vshrl.u32 %v3110_v5, 16  ;;  %v1014_v13 = vrot.slane %v1012_v63, 4  ;;  %s4277_s25 = smov 64  }
  0x36   : > { %v982_v11 = vsel %vm3155_vm5, %v977_v61, %v981_v55  ;;  %v991_v12 = vrot.slane %v990_v62, 4  ;;  %v1017_v14 = vrot.slane %v1015_v2, 5  ;;  %v1009_v1 = vrot.slane %v1007_v60, 5 }
  0x37   : > { %v2504_v15 = vcombine.low %v968_v53, %v982_v11  ;;  %v1004_v16 = vor.u32 %v1003_v4, %v1000_v58  ;;  %v1023_v17 = vrot.slane %v1021_v6, 5  ;;  %v1028_v20 = vrot.slane %v1026_v7, 4  ;;  %v3225_v53 = vld [vmem:[%s3095_s23 + $0x40] sm:$0xf]  ;;  %v952_v4 = vld [vmem:[%s3095_s23 + $0x44] sm:$0x1] }
  0x38   : > { %v1018_v19 = vor.u32 %v1017_v14, %v1014_v13  ;;  %v1029_v21 = vshll.u32 %v3110_v5, 16  ;;  %v1035_v22 = vshll.u32 %v946_v0, 16  ;;  %v996_v23 = vsel %vm3155_vm5, %v991_v12, %v995_v3 }
  0x39   : > { %1179 = vrot.lane.b32.xlu0 %v2504_v15, %s4274_s12  ;;  %1240 = vrot.lane.b32.xlu1 %v2521_v57, %s4268_s28  ;;  %v1005_v24 = vrot.slane %v1004_v16, 4  ;;  %v2495_v28 = vrot.slane %v3110_v5, 9  ;;  %v1040_v30 = vshrl.u32 %v3192_v18, 16  ;;  %v1105_v33 = vrot.slane %v946_v0, 5  ;;  %s4281_s28 = smov 32  }
  0x3a   : > { %v1019_v26 = vrot.slane %v1018_v19, 4  ;;  %v1031_v27 = vrot.slane %v1029_v21, 5  ;;  %v1037_v32 = vrot.slane %v1035_v22, 5  ;;  %v1043_v35 = vshll.u32 %v3192_v18, 16 }
  0x3b   : > { %v1010_v31 = vsel %vm3155_vm5, %v1005_v24, %v1009_v1  ;;  %v1049_v39 = vshll.u32 %v3201_v25, 16  ;;  %v2516_v42 = vcombine.low %v982_v11, %v996_v23  ;;  %v1042_v43 = vrot.slane %v1040_v30, 4 }
  0x3c   : > { %v2505_v36 = vcombine.low %v996_v23, %v1010_v31  ;;  %v1024_v37 = vsel %vm3155_vm5, %v1019_v26, %v1023_v17  ;;  %v1032_v38 = vor.u32 %v1031_v27, %v1028_v20  ;;  %v1045_v44 = vrot.slane %v1043_v35, 5 }
  0x3d   : > { %v2517_v41 = vcombine.low %v1010_v31, %v1024_v37  ;;  %v1054_v47 = vshrl.u32 %v3205_v29, 16  ;;  %v1057_v48 = vshll.u32 %v3205_v29, 16  ;;  %v1063_v50 = vshll.u32 %v950_v34, 16 }
  0x3e   : > { %1181 = vrot.lane.b32.xlu0 %v2505_v36, %s4274_s12  ;;  %v1033_v46 = vrot.slane %v1032_v38, 4  ;;  %v3222_v51 = vsel %vm3122_vm3, %v2495_v28, %v1105_v33  ;;  %v1046_v52 = vor.u32 %v1045_v44, %v1042_v43  ;;  %v1051_v55 = vrot.slane %v1049_v39, 5  ;;  %s3236_s12 = scalar_lea.vmem %s4301_s0, %s2447_s30  ;;  %s4303_s30 = smov 8  }
  0x3f   : > { %1227 = vrot.lane.b32.xlu1 %v2517_v41, %s4281_s28  ;;  %v1056_v56 = vrot.slane %v1054_v47, 4  ;;  %v1059_v57 = vrot.slane %v1057_v48, 5  ;;  %v2510_v60 = vcombine.low %v3168_v49, %v3222_v51  ;;  %v1065_v62 = vrot.slane %v1063_v50, 5  ;;  %v3259_v13 = vld [vmem:[%s3236_s12] sm:$0xf] }
  0x40   : > { %v3230_v54 = vsel %vm3155_vm5, %v1033_v46, %v1037_v32  ;;  %v1047_v59 = vrot.slane %v1046_v52, 4  ;;  %v1116_v63 = vshrl.u32 %v3225_v53, 16  ;;  %v2496_v2 = vrot.slane %v3192_v18, 9  ;;  %v3262_v15 = vld [vmem:[%s3236_s12 + $0x8] sm:$0xf] }
  0x41   : > { %v2506_v58 = vcombine.low %v1024_v37, %v3230_v54  ;;  %v1060_v61 = vor.u32 %v1059_v57, %v1056_v56  ;;  %v1109_v49 = vrot.slane %v3201_v25, 5  ;;  %v2497_v3 = vrot.slane %v3205_v29, 9  ;;  %v3299_v28 = vld [vmem:[%s3236_s12 + $0x4] sm:$0x1]  ;;  %v3302_v32 = vld [vmem:[%s3236_s12 + $0xc] sm:$0x1] }
  0x42   : > { %1225 = vrot.lane.b32.xlu0 %v2516_v42, %s4281_s28  ;;  %v1119_v6 = vshll.u32 %v3225_v53, 16  ;;  %v3256_v0 = vsel %vm3155_vm5, %v1047_v59, %v1051_v55  ;;  %v1113_v11 = vrot.slane %v950_v34, 5  ;;  %v1118_v12 = vrot.slane %v1116_v63, 4  ;;  %v3306_v35 = vld [vmem:[%s3236_s12 + $0x10] sm:$0xf] }
  0x43   : > { %1260 = vrot.lane.b32.xlu1 %v2506_v58, %s4279_s19  ;;  %v1061_v7 = vrot.slane %v1060_v61, 4  ;;  %v3280_v17 = vsel %vm3122_vm3, %v2496_v2, %v1109_v49  ;;  %v1125_v19 = vshll.u32 %v952_v4, 16  ;;  %v527_v20 = vshrl.u32 %v3259_v13, 16  ;;  %v3319_v41 = vld [vmem:[%s3236_s12 + $0x18] sm:$0xf] }
  0x44   : > { %v1121_v14 = vrot.slane %v1119_v6, 5  ;;  %v3285_v21 = vsel %vm3122_vm3, %v2497_v3, %v1113_v11  ;;  %v530_v23 = vshll.u32 %v3259_v13, 16  ;;  %v541_v24 = vshrl.u32 %v3262_v15, 16  ;;  %v3328_v48 = vld [vmem:[%s3095_s23 + $0x48] sm:$0xf] }
  0x45   : > { %v3267_v16 = vsel %vm3155_vm5, %v1061_v7, %v1065_v62  ;;  %v544_v25 = vshll.u32 %v3262_v15, 16  ;;  %v3296_v26 = vcombine.low %v3280_v17, %v3285_v21  ;;  %v1127_v27 = vrot.slane %v1125_v19, 5  ;;  %v3354_v49 = vld [vmem:[%s3236_s12 + $0x14] sm:$0x1] }
  0x46   : > { %1258 = vrot.lane.b32.xlu0 %v2505_v36, %s4279_s19  ;;  %v3276_v1 = vcombine.low %v3256_v0, %v3267_v16  ;;  %v1122_v22 = vor.u32 %v1121_v14, %v1118_v12  ;;  %v529_v30 = vrot.slane %v527_v20, 4  ;;  %v532_v33 = vrot.slane %v530_v23, 5  ;;  %s3350_s19 = scalar_lea.vmem %s4306_s2, %s2449_s22  ;;  %s4308_s22 = smov 48  }
  0x47   : > { %1270 = vrot.lane.b32.xlu1 %v2510_v60, %s4277_s25  ;;  %v543_v34 = vrot.slane %v541_v24, 4  ;;  %v2515_v36 = vcombine.low %v3205_v29, %v3225_v53  ;;  %v2498_v37 = vrot.slane %v3225_v53, 9  ;;  %v536_v38 = vshll.u32 %v3299_v28, 16  ;;  %v3369_v14 = vld [vmem:[%s3350_s19] sm:$0xf] }
  0x48   : > { %v1123_v31 = vrot.slane %v1122_v22, 4  ;;  %v550_v39 = vshll.u32 %v3302_v32, 16  ;;  %v1133_v43 = vrot.slane %v952_v4, 5  ;;  %v533_v44 = vor.u32 %v532_v33, %v529_v30  ;;  %v3375_v23 = vld [vmem:[%s3350_s19 + $0x8] sm:$0xf] }
  0x49   : > { %v2514_v47 = vcombine.low %v3110_v5, %v3192_v18  ;;  %v555_v50 = vshrl.u32 %v3306_v35, 16  ;;  %v558_v52 = vshll.u32 %v3306_v35, 16  ;;  %v569_v55 = vshrl.u32 %v3319_v41, 16  ;;  %v3381_v30 = vld [vmem:[%s3095_s23 + $0x4c] sm:$0x1] }
  0x4a   : > { %1268 = vrot.lane.b32.xlu0 %v3162_v45, %s4277_s25  ;;  %v546_v45 = vrot.slane %v544_v25, 5  ;;  %v3323_v42 = vsel %vm3155_vm5, %v1123_v31, %v1127_v27  ;;  %v572_v56 = vshll.u32 %v3319_v41, 16  ;;  %v538_v5 = vrot.slane %v536_v38, 5  ;;  %s4307_s25 = smov 40  }
  0x4b   : > { %1185 = vrot.lane.b32.xlu1 %v3276_v1, %s4303_s30  ;;  %v2519_v57 = vcombine.low %v3267_v16, %v3323_v42  ;;  %v3341_v59 = vsel %vm3122_vm3, %v2498_v37, %v1133_v43  ;;  %v2518_v62 = vcombine.low %v3230_v54, %v3256_v0  ;;  %v1136_v63 = vshrl.u32 %v3328_v48, 16  ;;  %v3360_v0 = vld [vmem:[%s3236_s12 + $0x1c] sm:$0x1] }
  0x4c   : > { %v547_v46 = vor.u32 %v546_v45, %v543_v34  ;;  %v1139_v2 = vshll.u32 %v3328_v48, 16  ;;  %v557_v3 = vrot.slane %v555_v50, 4  ;;  %v560_v4 = vrot.slane %v558_v52, 5 }
  0x4d   : > { %v571_v6 = vrot.slane %v569_v55, 4  ;;  %v574_v7 = vrot.slane %v572_v56, 5  ;;  %v2523_v54 = vcombine.low %v3285_v21, %v3341_v59  ;;  %v2522_v16 = vcombine.low %v3222_v51, %v3280_v17 }
  0x4e   : > { %1183 = vrot.lane.b32.xlu0 %v2506_v58, %s4303_s30  ;;  %v552_v58 = vrot.slane %v550_v39, 5  ;;  %v548_v61 = vrot.slane %v547_v46, 4  ;;  %v564_v19 = vshll.u32 %v3354_v49, 16  ;;  %v1138_v20 = vrot.slane %v1136_v63, 4 }
  0x4f   : > { %1205 = vrot.lane.b32.xlu1 %v3296_v26, %s4304_s29  ;;  %v1141_v22 = vrot.slane %v1139_v2, 5  ;;  %v561_v21 = vor.u32 %v560_v4, %v557_v3  ;;  %v575_v24 = vor.u32 %v574_v7, %v571_v6  ;;  %v578_v25 = vshll.u32 %v3360_v0, 16  ;;  %v3429_v3 = vld [vmem:[%s3350_s19 + $0x10] sm:$0xf] }
  0x50   : > { %v3366_v12 = vsel %vm3155_vm5, %v548_v61, %v552_v58  ;;  %v2453_v27 = vrot.slane %v3259_v13, 9  ;;  %v659_v17 = vrot.slane %v3299_v28, 5  ;;  %v2454_v31 = vrot.slane %v3262_v15, 9 }
  0x51   : > { %v663_v33 = vrot.slane %v3302_v32, 5  ;;  %v1583_v34 = vshrl.u32 %v3369_v14, 16  ;;  %v1586_v45 = vshll.u32 %v3369_v14, 16  ;;  %v1600_v13 = vshll.u32 %v3375_v23, 16 }
  0x52   : > { %1203 = vrot.lane.b32.xlu0 %v2510_v60, %s4304_s29  ;;  %v534_v60 = vrot.slane %v533_v44, 4  ;;  %v3394_v37 = vcombine.low %v3192_v18, %v3205_v29  ;;  %v1142_v38 = vor.u32 %v1141_v22, %v1138_v20  ;;  %v1145_v28 = vshll.u32 %v3381_v30, 16 }
  0x53   : > { %1218 = vrot.lane.b32.xlu1 %v2515_v36, %s4305_s1  ;;  %v1597_v36 = vshrl.u32 %v3375_v23, 16  ;;  %v562_v32 = vrot.slane %v561_v21, 4  ;;  %v566_v39 = vrot.slane %v564_v19, 5  ;;  %v576_v43 = vrot.slane %v575_v24, 4 }
  0x54   : > { %v539_v11 = vsel %vm3155_vm5, %v534_v60, %v538_v5  ;;  %v580_v44 = vrot.slane %v578_v25, 5  ;;  %v660_v46 = vsel %vm3122_vm3, %v2453_v27, %v659_v17  ;;  %v3403_v18 = vsel %vm3122_vm3, %v2454_v31, %v663_v33  ;;  %v3409_v5 = vld [vmem:[%s3350_s19 + $0xc] sm:$0x1]  ;;  %v3452_v17 = vld [vmem:[%s3236_s12 + $0x20] sm:$0xf] }
  0x55   : > { %v2467_v51 = vcombine.low %v539_v11, %v3366_v12  ;;  %v1585_v29 = vrot.slane %v1583_v34, 4  ;;  %v1599_v50 = vrot.slane %v1597_v36, 4  ;;  %v1602_v52 = vrot.slane %v1600_v13, 5  ;;  %v3465_v36 = vld [vmem:[%s3350_s19 + $0x14] sm:$0x1] }
  0x56   : > { %1216 = vrot.lane.b32.xlu0 %v2514_v47, %s4305_s1  ;;  %v1588_v47 = vrot.slane %v1586_v45, 5  ;;  %v1143_v55 = vrot.slane %v1142_v38, 4  ;;  %v1147_v56 = vrot.slane %v1145_v28, 5  ;;  %v2524_v58 = vcombine.low %v3225_v53, %v3328_v48  ;;  %v3432_v53 = vld [vmem:[%s3350_s19 + $0x18] sm:$0xf] }
  0x57   : > { %1231 = vrot.lane.b32.xlu1 %v2519_v57, %s4281_s28  ;;  %v3406_v57 = vld [vmem:[%s3350_s19 + $0x4] sm:$0x1]  ;;  %v3417_v60 = vsel %vm3155_vm5, %v562_v32, %v566_v39  ;;  %v3421_v61 = vsel %vm3155_vm5, %v576_v43, %v580_v44  ;;  %v2455_v63 = vrot.slane %v3306_v35, 9  ;;  %v667_v2 = vrot.slane %v3354_v49, 5 }
  0x58   : > { %v1589_v4 = vor.u32 %v1588_v47, %v1585_v29  ;;  %v1592_v6 = vshll.u32 %v3406_v57, 16  ;;  %v1603_v7 = vor.u32 %v1602_v52, %v1599_v50  ;;  %v1148_v11 = vsel %vm3155_vm5, %v1143_v55, %v1147_v56 }
  0x59   : > { %v2456_v49 = vrot.slane %v3319_v41, 9  ;;  %v1611_v19 = vshrl.u32 %v3429_v3, 16  ;;  %v1614_v20 = vshll.u32 %v3429_v3, 16  ;;  %v1625_v22 = vshrl.u32 %v3432_v53, 16 }
  0x5a   : > { %1229 = vrot.lane.b32.xlu0 %v2518_v62, %s4281_s28  ;;  %v2471_v62 = vcombine.low %v660_v46, %v3403_v18  ;;  %v1628_v21 = vshll.u32 %v3432_v53, 16  ;;  %v2499_v24 = vrot.slane %v3328_v48, 9  ;;  %v1590_v25 = vrot.slane %v1589_v4, 4  ;;  %v3470_v48 = vld [vmem:[%s3350_s19 + $0x1c] sm:$0x1]  ;;  %s4310_s28 = smov 64  }
  0x5b   : > { %1244 = vrot.lane.b32.xlu1 %v2523_v54, %s4307_s25  ;;  %v1606_v54 = vshll.u32 %v3409_v5, 16  ;;  %v1594_v27 = vrot.slane %v1592_v6, 5  ;;  %v2525_v31 = vcombine.low %v3323_v42, %v1148_v11  ;;  %v3457_v33 = vsel %vm3122_vm3, %v2455_v63, %v667_v2  ;;  %v3500_v4 = vld [vmem:[%s3236_s12 + $0x24] sm:$0x1] }
  0x5c   : > { %v1153_v45 = vrot.slane %v3381_v30, 5  ;;  %v1613_v13 = vrot.slane %v1611_v19, 4  ;;  %v1616_v38 = vrot.slane %v1614_v20, 5  ;;  %v1627_v42 = vrot.slane %v1625_v22, 4 }
  0x5d   : > { %v1630_v28 = vrot.slane %v1628_v21, 5  ;;  %v2475_v32 = vcombine.low %v3262_v15, %v3306_v35  ;;  %v583_v39 = vshrl.u32 %v3452_v17, 16  ;;  %v586_v30 = vshll.u32 %v3452_v17, 16 }
  0x5e   : > { %1242 = vrot.lane.b32.xlu0 %v2522_v16, %s4307_s25  ;;  %v671_v16 = vrot.slane %v3360_v0, 5  ;;  %v1608_v0 = vrot.slane %v1606_v54, 5  ;;  %v1595_v44 = vsel %vm3155_vm5, %v1590_v25, %v1594_v27  ;;  %v1620_v15 = vshll.u32 %v3465_v36, 16 }
  0x5f   : > { %753 = vrot.lane.b32.xlu1 %v2467_v51, %s4303_s30  ;;  %v1604_v51 = vrot.slane %v1603_v7, 4  ;;  %v1634_v29 = vshll.u32 %v3470_v48, 16  ;;  %v2554_v47 = vrot.slane %v3369_v14, 9  ;;  %v1617_v50 = vor.u32 %v1616_v38, %v1613_v13 }
  0x60   : > { %v3461_v34 = vsel %vm3122_vm3, %v2456_v49, %v671_v16  ;;  %v1631_v52 = vor.u32 %v1630_v28, %v1627_v42  ;;  %v1712_v55 = vrot.slane %v3406_v57, 5  ;;  %v2555_v56 = vrot.slane %v3375_v23, 9  ;;  %v2827_v42 = vld [vmem:[%s4257_s4 + $0x34] sm:$0xff]  }
  0x61   : > { %v3480_v43 = vcombine.low %v3457_v33, %v3461_v34  ;;  %v3486_v46 = vsel %vm3155_vm5, %v1604_v51, %v1608_v0  ;;  %v585_v63 = vrot.slane %v583_v39, 4  ;;  %v588_v2 = vrot.slane %v586_v30, 5 }
  0x62   : > { %1252 = vrot.lane.b32.xlu0 %v3394_v37, %s4308_s22  ;;  %v2479_v7 = vcombine.low %v3366_v12, %v3417_v60  ;;  %v1618_v57 = vrot.slane %v1617_v50, 4  ;;  %v1622_v54 = vrot.slane %v1620_v15, 5  ;;  %v1636_v11 = vrot.slane %v1634_v29, 5  ;;  %v2823_v12 = vld [vmem:[%s4257_s4 + $0x44] ss:$0 sps:$4 sm:$0xff]  }
  0x63   : > { %1262 = vrot.lane.b32.xlu1 %v3276_v1, %s4309_s24  ;;  %v3438_v1 = vcombine.low %v3417_v60, %v3421_v61  ;;  %v1713_v49 = vsel %vm3122_vm3, %v2554_v47, %v1712_v55  ;;  %v592_v19 = vshll.u32 %v3500_v4, 16  ;;  %v2825_v60 = vld [vmem:[%s4257_s4 + $0x3c] sm:$0xff]   ;;  %v2476_v20 = vcombine.low %v3319_v41, %v3452_v17  ;;  %2719 = vmatprep.subr.msk.bf16.mxu0 %vm1390_vm6, %v2823_v12 }
  0x64   : > { %v3526_v22 = vsel %vm3155_vm5, %v1618_v57, %v1622_v54  ;;  %v1392_v51 = vsel %vm1390_vm6, %v2823_v12, 0  ;;  %v2556_v0 = vrot.slane %v3429_v3, 9  ;;  %v2557_v13 = vrot.slane %v3432_v53, 9  ;;  %v2830_v54 = vld [vmem:[%s4257_s4 + $0x24] sm:$0xff]  }
  0x65   : > { %v594_v27 = vrot.slane %v592_v19, 5  ;;  %2656 = vmatpush3.bf16.msra.mxu0 %v1392_v51  ;;  %v1724_v38 = vrot.slane %v3470_v48, 5  ;;  %v2483_v48 = vcombine.low %v3403_v18, %v3457_v33  ;;  %v2457_v15 = vrot.slane %v3452_v17, 9  ;;  %v2828_v33 = vld [vmem:[%s4257_s4 + $0x2c] sm:$0xff]   ;;  %v3622_v19 = vld [vmem:[%s3350_s19 + $0x24] sm:$0x1] }
  0x66   : > { %1254 = vrot.lane.b32.xlu0 %v2524_v58, %s4308_s22  ;;  %v2568_v58 = vcombine.low %v1595_v44, %v3486_v46  ;;  %2657 = vmatprep.subr.bf16.mxu0 %v2825_v60  ;;  %v675_v29 = vrot.slane %v3500_v4, 5  ;;  %v2576_v55 = vcombine.low %v3375_v23, %v3429_v3  ;;  %v1575_v4 = vld [vmem:[%s3350_s19 + $0x34] sm:$0x1] }
  0x67   : > { %773 = vrot.lane.b32.xlu1 %v2471_v62, %s4304_s29  ;;  %v1716_v62 = vrot.slane %v3409_v5, 5  ;;  %v1632_v5 = vrot.slane %v1631_v52, 4  ;;  %v3583_v52 = vld [vmem:[%s3350_s19 + $0x30] sm:$0xf] }
  0x69   : > { %v3512_v16 = vsel %vm3122_vm3, %v2555_v56, %v1716_v62  ;;  %2658 = vmatpush3.bf16.msra.mxu0 %v2825_v60  ;;  %v3589_v56 = vld [vmem:[%s3236_s12 + $0x28] sm:$0xf] }
  0x6a   : > { %755 = vrot.lane.b32.xlu0 %v3438_v1, %s4303_s30  ;;  %v2572_v21 = vcombine.low %v1713_v49, %v3512_v16  ;;  %2659 = vmatprep.subr.bf16.mxu0 %v2827_v42  ;;  %v597_v49 = vshrl.u32 %v3589_v56, 16 }
  0x6b   : > { %1272 = vrot.lane.b32.xlu1 %v3296_v26, %s4310_s28  ;;  %v1154_v26 = vsel %vm3122_vm3, %v2499_v24, %v1153_v45  ;;  %v3532_v24 = vsel %vm3155_vm5, %v1632_v5, %v1636_v11  ;;  %v3539_v45 = vld [vmem:[%s3350_s19 + $0x28] sm:$0xf]  ;;  %v600_v5 = vshll.u32 %v3589_v56, 16 }
  0x6c   : > { %v2526_v6 = vcombine.low %v3341_v59, %v1154_v26  ;;  %v589_v59 = vor.u32 %v588_v2, %v585_v63  ;;  %v3549_v28 = vcombine.low %v3526_v22, %v3532_v24  ;;  %v1653_v39 = vshrl.u32 %v3539_v45, 16 }
  0x6d   : > { %v1656_v30 = vshll.u32 %v3539_v45, 16  ;;  %v3569_v26 = vsel %vm3122_vm3, %v2557_v13, %v1724_v38  ;;  %2660 = vmatpush3.bf16.msra.mxu0 %v2827_v42  ;;  %v599_v13 = vrot.slane %v597_v49, 4  ;;  %v602_v38 = vrot.slane %v600_v5, 5  ;;  %v514_v42 = vld [vmem:[%s3236_s12 + $0x2c] sm:$0x1] }
  0x6e   : > { %1264 = vrot.lane.b32.xlu0 %v2525_v31, %s4309_s24  ;;  %v590_v25 = vrot.slane %v589_v59, 4  ;;  %v1720_v31 = vrot.slane %v3465_v36, 5  ;;  %v1655_v62 = vrot.slane %v1653_v39, 4  ;;  %2661 = vmatprep.subr.bf16.mxu0 %v2828_v33 }
  0x6f   : > { %786 = vrot.lane.b32.xlu1 %v2475_v32, %s4305_s1  ;;  %v3552_v32 = vld [vmem:[%s3350_s19 + $0x20] sm:$0xf]  ;;  %v1658_v63 = vrot.slane %v1656_v30, 5 }
  0x70   : > { %v3557_v36 = vsel %vm3155_vm5, %v590_v25, %v594_v27  ;;  %v3565_v44 = vsel %vm3122_vm3, %v2556_v0, %v1720_v31  ;;  %v1639_v18 = vshrl.u32 %v3552_v32, 16  ;;  %v1642_v50 = vshll.u32 %v3552_v32, 16 }
  0x71   : > { %v2480_v47 = vcombine.low %v3421_v61, %v3557_v36  ;;  %v3594_v2 = vcombine.low %v3565_v44, %v3569_v26  ;;  %v3598_v61 = vcombine.low %v3306_v35, %v3319_v41  ;;  %v1667_v35 = vshrl.u32 %v3583_v52, 16  ;;  %2662 = vmatpush3.bf16.msra.mxu0 %v2828_v33 }
  0x72   : > { %775 = vrot.lane.b32.xlu0 %v3480_v43, %s4304_s29  ;;  %v1641_v57 = vrot.slane %v1639_v18, 4  ;;  %v1670_v41 = vshll.u32 %v3583_v52, 16  ;;  %v1644_v11 = vrot.slane %v1642_v50, 5  ;;  %v1659_v12 = vor.u32 %v1658_v63, %v1655_v62  ;;  %2663 = vmatprep.subr.bf16.mxu0 %v2830_v54 }
  0x73   : > { %1806 = vrot.lane.b32.xlu1 %v2568_v58, %s4303_s30  ;;  %v1573_v58 = vld [vmem:[%s3350_s19 + $0x2c] sm:$0x1]  ;;  %v1669_v60 = vrot.slane %v1667_v35, 4  ;;  %v2580_v27 = vcombine.low %v3486_v46, %v3526_v22  ;;  %v1648_v31 = vshll.u32 %v3622_v19, 16  ;;  %v2578_v46 = vcombine.low %v3539_v45, %v3583_v52 }
  0x74   : > { %v1662_v59 = vshll.u32 %v1573_v58, 16  ;;  %v1645_v0 = vor.u32 %v1644_v11, %v1641_v57  ;;  %v2559_v22 = vrot.slane %v3539_v45, 9  ;;  %v1736_v18 = vrot.slane %v1575_v4, 5 }
  0x75   : > { %2664 = vmatpush3.bf16.msra.mxu0 %v2830_v54  ;;  %v2577_v33 = vcombine.low %v3432_v53, %v3552_v32  ;;  %v606_v50 = vshll.u32 %v514_v42, 16  ;;  %v603_v62 = vor.u32 %v602_v38, %v599_v13  ;;  %v3663_v35 = vcombine.low %v3452_v17, %v3589_v56 }
  0x76   : > { %1274 = vrot.lane.b32.xlu0 %v2526_v6, %s4310_s28  ;;  %v3604_v6 = vld [vmem:[%s4257_s4 + $0x20] ss:$0 sps:$4 sm:$0xff]   ;;  %v1664_v39 = vrot.slane %v1662_v59, 5  ;;  %v2584_v49 = vcombine.low %v3512_v16, %v3565_v44 }
  0x77   : > { %799 = vrot.lane.b32.xlu1 %v2479_v7, %s4311_s15  ;;  %v3608_v7 = vsel %vm3122_vm3, %v2457_v15, %v675_v29  ;;  %2720 = vmatprep.subr.msk.bf16.mxu1 %vm1390_vm6, %v3604_v6  ;;  %v1732_v15 = vrot.slane %v1573_v58, 5  ;;  %v2560_v29 = vrot.slane %v3583_v52, 9  ;;  %v604_v5 = vrot.slane %v603_v62, 4 }
  0x78   : > { %v2484_v25 = vcombine.low %v3461_v34, %v3608_v7  ;;  %v608_v59 = vrot.slane %v606_v50, 5 }
  0x79   : > { %v3654_v57 = vsel %vm3122_vm3, %v2559_v22, %v1732_v15  ;;  %v3658_v54 = vsel %vm3122_vm3, %v2560_v29, %v1736_v18  ;;  %v1495_v22 = vsel %vm1390_vm6, %v3604_v6, 0 }
  0x7a   : > { %788 = vrot.lane.b32.xlu0 %v2476_v20, %s4305_s1  ;;  %v1672_v20 = vrot.slane %v1670_v41, 5  ;;  %v2586_v41 = vcombine.low %v3654_v57, %v3658_v54  ;;  %v3691_v16 = vsel %vm3155_vm5, %v604_v5, %v608_v59  ;;  %2674 = vmatpush3.bf16.msra.mxu1 %v1495_v22  ;;  %v2849_v22 = vld [vmem:[%s3095_s23 + $0x8] sm:$0xf] }
  0x7b   : > { %1826 = vrot.lane.b32.xlu1 %v2572_v21, %s4304_s29  ;;  %v1676_v21 = vshll.u32 %v1575_v4, 16  ;;  %v2469_v13 = vcombine.low %v3557_v36, %v3691_v16 }
  0x7c   : > { %v1673_v51 = vor.u32 %v1672_v20, %v1669_v60  ;;  %v3679_v60 = vld [vmem:[%s3236_s12 + $0x38] sm:$0xf]  ;;  %v1728_v20 = vrot.slane %v3622_v19, 5  ;;  %v3700_v19 = vld [vmem:[%s4257_s4 + $0x68] ss:$0 sps:$4 sm:$0xff]  }
  0x7d   : > { %v1678_v30 = vrot.slane %v1676_v21, 5  ;;  %2721 = vmatprep.subr.msk.bf16.mxu0 %vm1390_vm6, %v3700_v19 }
  0x7e   : > { %1808 = vrot.lane.b32.xlu0 %v3549_v28, %s4303_s30  ;;  %v1674_v34 = vrot.slane %v1673_v51, 4  ;;  %v679_v51 = vrot.slane %v514_v42, 5  ;;  %v3716_v42 = vcombine.low %v3429_v3, %v3432_v53  ;;  %v518_v3 = vld [vmem:[%s3236_s12 + $0x3c] sm:$0x1]  ;;  %v2841_v53 = vld [vmem:[%s4257_s4 + $0x10] sm:$0xff]  }
  0x7f   : > { %812 = vrot.lane.b32.xlu1 %v2483_v48, %s4307_s25  ;;  %v1660_v48 = vrot.slane %v1659_v12, 4  ;;  %v3676_v12 = vld [vmem:[%s3236_s12 + $0x30] sm:$0xf]  ;;  %v634_v50 = vshll.u32 %v518_v3, 16 }
  0x80   : > { %v3648_v58 = vsel %vm3155_vm5, %v1674_v34, %v1678_v30  ;;  %v611_v21 = vshrl.u32 %v3676_v12, 16  ;;  %v614_v44 = vshll.u32 %v3676_v12, 16 }
  0x81   : > { %v3644_v63 = vsel %vm3155_vm5, %v1660_v48, %v1664_v39  ;;  %v3723_v39 = vld [vmem:[%s3236_s12 + $0x34] sm:$0x1]  ;;  %v636_v59 = vrot.slane %v634_v50, 5  ;;  %v3813_v50 = vld [vmem:[%s3350_s19 + $0x3c] sm:$0x1] }
  0x82   : > { %801 = vrot.lane.b32.xlu0 %v2480_v47, %s4311_s15  ;;  %v1650_v47 = vrot.slane %v1648_v31, 5  ;;  %v2582_v4 = vcombine.low %v3644_v63, %v3648_v58  ;;  %v2840_v31 = vld [vmem:[%s4257_s4 + $0x18] sm:$0xff]   ;;  %v613_v48 = vrot.slane %v611_v21, 4  ;;  %v616_v34 = vrot.slane %v614_v44, 5 }
  0x83   : > { %1839 = vrot.lane.b32.xlu1 %v2576_v55, %s4305_s1  ;;  %v1646_v55 = vrot.slane %v1645_v0, 4  ;;  %v2564_v0 = vcombine.low %v3369_v14, %v3375_v23  ;;  %2675 = vmatprep.subr.bf16.mxu1 %v2840_v31  ;;  %v620_v29 = vshll.u32 %v3723_v39, 16 }
  0x84   : > { %2676 = vmatpush3.bf16.msra.mxu1 %v2840_v31  ;;  %v2460_v31 = vrot.slane %v3679_v60, 9 }
  0x85   : > { %v3671_v11 = vsel %vm3155_vm5, %v1646_v55, %v1650_v47  ;;  %2677 = vmatprep.subr.bf16.mxu1 %v2841_v53 }
  0x86   : > { %1828 = vrot.lane.b32.xlu0 %v3594_v2, %s4304_s29  ;;  %v2581_v17 = vcombine.low %v3532_v24, %v3671_v11  ;;  %v2458_v24 = vrot.slane %v3589_v56, 9 }
  0x87   : > { %822 = vrot.lane.b32.xlu1 %v3598_v61, %s4308_s22 }
  0x88   : > { %v3729_v15 = vsel %vm3122_vm3, %v2458_v24, %v679_v51  ;;  %2678 = vmatpush3.bf16.msra.mxu1 %v2841_v53  ;;  %v683_v51 = vrot.slane %v3723_v39, 5  ;;  %v2850_v53 = vld [vmem:[%s3095_s23] sm:$0xf]  ;;  %v2570_v39 = vcombine.low %v3671_v11, %v3644_v63 }
  0x89   : > { %v2473_v18 = vcombine.low %v3608_v7, %v3729_v15  ;;  %v622_v7 = vrot.slane %v620_v29, 5 }
  0x8a   : > { %814 = vrot.lane.b32.xlu0 %v2484_v25, %s4307_s25  ;;  %v625_v25 = vshrl.u32 %v3679_v60, 16 }
  0x8b   : > { %1852 = vrot.lane.b32.xlu1 %v2580_v27, %s4311_s15  ;;  %v628_v27 = vshll.u32 %v3679_v60, 16 }
  0x8c   : > { %v627_v30 = vrot.slane %v625_v25, 4 }
  0x8d   : > { %v630_v36 = vrot.slane %v628_v27, 5  ;;  %v3775_v27 = vld [vmem:[%s3350_s19 + $0x38] sm:$0xf] }
  0x8e   : > { %1841 = vrot.lane.b32.xlu0 %v2577_v33, %s4305_s1  ;;  %v617_v33 = vor.u32 %v616_v34, %v613_v48  ;;  %v1681_v34 = vshrl.u32 %v3775_v27, 16 }
  0x8f   : > { %832 = vrot.lane.b32.xlu1 %v3438_v1, %s4309_s24  ;;  %v2558_v1 = vrot.slane %v3552_v32, 9  ;;  %v631_v47 = vor.u32 %v630_v36, %v627_v30  ;;  %v1684_v30 = vshll.u32 %v3775_v27, 16  ;;  %v3792_v36 = vld [vmem:[%s3236_s12 + $0x40] sm:$0xf] }
  0x90   : > { %v1683_v11 = vrot.slane %v1681_v34, 4 }
  0x91   : > { %v3712_v38 = vsel %vm3122_vm3, %v2558_v1, %v1728_v20  ;;  %v632_v5 = vrot.slane %v631_v47, 4  ;;  %v2843_v1 = vld [vmem:[%s4257_s4] sm:$0xff]   ;;  %v3762_v20 = vcombine.low %v3552_v32, %v3539_v45  ;;  %v2459_v32 = vrot.slane %v3676_v12, 9  ;;  %v2847_v45 = vld [vmem:[%s4257_s4 + $0x50] sm:$0xff]  }
  0x92   : > { %824 = vrot.lane.b32.xlu0 %v3663_v35, %s4308_s22 }
  0x93   : > { %1865 = vrot.lane.b32.xlu1 %v2584_v49, %s4307_s25  ;;  %v618_v49 = vrot.slane %v617_v33, 4  ;;  %v3772_v25 = vsel %vm3155_vm5, %v632_v5, %v636_v59  ;;  %v2574_v59 = vcombine.low %v3712_v38, %v3654_v57 }
  0x95   : > { %v3768_v44 = vsel %vm3155_vm5, %v618_v49, %v622_v7  ;;  %v690_v49 = vshrl.u32 %v3792_v36, 16  ;;  %v693_v7 = vshll.u32 %v3792_v36, 16 }
  0x96   : > { %1854 = vrot.lane.b32.xlu0 %v2581_v17, %s4311_s15 }
  0x97   : > { %842 = vrot.lane.b32.xlu1 %v3480_v43, %s4310_s28  ;;  %v2585_v43 = vcombine.low %v3569_v26, %v3712_v38  ;;  %v2842_v26 = vld [vmem:[%s4257_s4 + $0x8] sm:$0xff]   ;;  %v2481_v38 = vcombine.low %v3691_v16, %v3768_v44 }
  0x98   : > { %2679 = vmatprep.subr.bf16.mxu1 %v2842_v26 }
  0x99   : > { %2680 = vmatpush3.bf16.msra.mxu1 %v2842_v26  ;;  %v1686_v26 = vrot.slane %v1684_v30, 5 }
  0x9a   : > { %834 = vrot.lane.b32.xlu0 %v2469_v13, %s4309_s24  ;;  %2681 = vmatprep.subr.bf16.mxu1 %v2843_v1 }
  0x9b   : > { %1875 = vrot.lane.b32.xlu1 %v3716_v42, %s4308_s22  ;;  %v3741_v6 = vpop.permute.xlu1 %1214 }
  0x9c   : > { %v3745_v55 = vpop.permute.xlu0 %1212 }
  0x9d   : > { %2682 = vmatpush3.bf16.msra.mxu1 %v2843_v1  ;;  %v1687_v1 = vor.u32 %v1686_v26, %v1683_v11 }
  0x9e   : > { %1867 = vrot.lane.b32.xlu0 %v2585_v43, %s4307_s25  ;;  %v2500_v43 = vcombine.low %v2850_v53, %v2849_v22 }
  0x9f   : > { %844 = vrot.lane.b32.xlu1 %v2473_v18, %s4310_s28  ;;  %v3752_v62 = vpop.permute.xlu1 %1250 }
  0xa0   : > { %v3754_v17 = vpop.permute.xlu0 %1248 }
  0xa2   : > { %757 = vrot.lane.b32.xlu0 %v2469_v13, %s4303_s30  ;;  %v687_v13 = vrot.slane %v518_v3, 5  ;;  %v3802_v3 = vsel %vm3122_vm3, %v2459_v32, %v683_v51  ;;  %v692_v32 = vrot.slane %v690_v49, 4  ;;  %v695_v51 = vrot.slane %v693_v7, 5 }
  0xa3   : > { %1885 = vrot.lane.b32.xlu1 %v3549_v28, %s4309_s24  ;;  %v1200_v21 = vpop.permute.xlu1 %1199  ;;  %v3784_v28 = vcombine.low %v3768_v44, %v3772_v25  ;;  %v2478_v7 = vcombine.low %v3679_v60, %v3792_v36 }
  0xa4   : > { %v3777_v24 = vpop.permute.xlu0 %1238  ;;  %v3806_v29 = vsel %vm3122_vm3, %v2460_v31, %v687_v13  ;;  %v3828_v13 = vld [vmem:[%s3236_s12 + $0x44] sm:$0x1] }
  0xa6   : > { %1877 = vrot.lane.b32.xlu0 %v3762_v20, %s4308_s22 }
  0xa7   : > { %777 = vrot.lane.b32.xlu1 %v2473_v18, %s4304_s29  ;;  %v1202_v48 = vpop.permute.xlu1 %1201  ;;  %v2477_v18 = vcombine.low %v3589_v56, %v3676_v12  ;;  %v3821_v56 = vcombine.low %v3802_v3, %v3806_v29 }
  0xaa   : > { %759 = vrot.lane.b32.xlu0 %v3784_v28, %s4303_s30 }
  0xab   : > { %v1180_v33 = vpop.permute.xlu0 %1179  ;;  %1895 = vrot.lane.b32.xlu1 %v3594_v2, %s4310_s28  ;;  %v1241_v47 = vpop.permute.xlu1 %1240  ;;  %v1690_v2 = vshll.u32 %v3813_v50, 16 }
  0xac   : > { %v1278_v5 = vsel %vm850_vm7, %v2500_v43, %v1180_v33  ;;  %v699_v33 = vshll.u32 %v3828_v13, 16 }
  0xad   : > { %v1289_v34 = vsel %vm863_vm8, %v1278_v5, %v1200_v21  ;;  %v1692_v43 = vrot.slane %v1690_v2, 5  ;;  %v1688_v21 = vrot.slane %v1687_v1, 4 }
  0xae   : > { %1887 = vrot.lane.b32.xlu0 %v2570_v39, %s4309_s24 }
  0xaf   : > { %790 = vrot.lane.b32.xlu1 %v2477_v18, %s4305_s1 }
  0xb0   : > { %v1182_v31 = vpop.permute.xlu0 %1181 }
  0xb1   : > { %v1281_v30 = vsel %vm850_vm7, %v3120_v9, %v1182_v31  ;;  %v1228_v22 = vpop.permute.xlu1 %1227  ;;  %v696_v9 = vor.u32 %v695_v51, %v692_v32  ;;  %v2485_v51 = vcombine.low %v3729_v15, %v3802_v3 }
  0xb2   : > { %v1291_v53 = vsel %vm863_vm8, %v1281_v30, %v1202_v48  ;;  %779 = vrot.lane.b32.xlu0 %v3821_v56, %s4304_s29  ;;  %v1297_v48 = vsel %vm872_vm9, %v1289_v34, %v3745_v55  ;;  %v3855_v55 = vsel %vm3155_vm5, %v1688_v21, %v1692_v43  ;;  %v1740_v34 = vrot.slane %v3813_v50, 5  ;;  %v2845_v43 = vld [vmem:[%s4257_s4 + $0x60] sm:$0xff]  }
  0xb3   : > { %v1299_v18 = vsel %vm872_vm9, %v1291_v53, %v3741_v6  ;;  %1897 = vrot.lane.b32.xlu1 %v2574_v59, %s4310_s28  ;;  %v697_v5 = vrot.slane %v696_v9, 4  ;;  %v3864_v32 = vcombine.low %v3648_v58, %v3855_v55  ;;  %v707_v21 = vrot.slane %v3828_v13, 5  ;;  %v2846_v13 = vld [vmem:[%s4257_s4 + $0x58] sm:$0xff]  }
  0xb4   : > { %v1307_v11 = vsel %vm881_vm10, %v1299_v18, %v1228_v22  ;;  %v1226_v26 = vpop.permute.xlu0 %1225  ;;  %v2461_v18 = vrot.slane %v3792_v36, 9 }
  0xb5   : > { %v1315_v49 = vsel %vm890_vm11, %v1307_v11, %v1241_v47  ;;  %v1305_v16 = vsel %vm881_vm10, %v1297_v48, %v1226_v26  ;;  %v1261_v44 = vpop.permute.xlu1 %1260  ;;  %v701_v47 = vrot.slane %v699_v33, 5 }
  0xb6   : > { %v1313_v6 = vsel %vm890_vm11, %v1305_v16, %v3777_v24  ;;  %1810 = vrot.lane.b32.xlu0 %v2570_v39, %s4303_s30  ;;  %v1323_v2 = vsel %vm899_vm12, %v1315_v49, %v3752_v62  ;;  %v3921_v49 = vsel %vm3122_vm3, %v2461_v18, %v707_v21  ;;  %v3925_v16 = vcombine.low %v3676_v12, %v3679_v60 }
  0xb7   : > { %803 = vrot.lane.b32.xlu1 %v2481_v38, %s4311_s15  ;;  %v1321_v24 = vsel %vm899_vm12, %v1313_v6, %v3754_v17  ;;  %v1331_v31 = vsel %vm908_vm13, %v1323_v2, %v1261_v44  ;;  %v3872_v62 = vsel %vm3155_vm5, %v697_v5, %v701_v47  ;;  %v2561_v17 = vrot.slane %v3775_v27, 9  ;;  %v3879_v38 = vld [vmem:[%s3350_s19 + $0x40] sm:$0xf]  ;;  %v1579_v2 = vld [vmem:[%s3350_s19 + $0x44] sm:$0x1] }
  0xb8   : > { %v1259_v1 = vpop.permute.xlu0 %1258  ;;  %v2482_v50 = vcombine.low %v3772_v25, %v3872_v62  ;;  %v1743_v9 = vshrl.u32 %v3879_v38, 16  ;;  %v1746_v33 = vshll.u32 %v3879_v38, 16  ;;  %v3907_v25 = vld [vmem:[%s3236_s12 + $0x48] sm:$0xf]  ;;  %v1752_v60 = vshll.u32 %v1579_v2, 16 }
  0xb9   : > { %v1271_v39 = vpop.permute.xlu1 %1270  ;;  %v1329_v30 = vsel %vm908_vm13, %v1321_v24, %v1259_v1  ;;  %v710_v44 = vshrl.u32 %v3907_v25, 16  ;;  %v713_v6 = vshll.u32 %v3907_v25, 16  ;;  %v2487_v63 = vcombine.low %v3792_v36, %v3907_v25 }
  0xba   : > { %792 = vrot.lane.b32.xlu0 %v2478_v7, %s4305_s1  ;;  %v1339_v22 = vsel %vm917_vm14, %v1331_v31, %v1271_v39  ;;  %v1745_v7 = vrot.slane %v1743_v9, 4  ;;  %v1748_v5 = vrot.slane %v1746_v33, 5  ;;  %v522_v31 = vld [vmem:[%s3236_s12 + $0x4c] sm:$0x1]  ;;  %v2562_v36 = vrot.slane %v3879_v38, 9 }
  0xbb   : > { %1830 = vrot.lane.b32.xlu1 %v2574_v59, %s4304_s29  ;;  %v2017_v59 = vsel %vm1390_vm6, %v3700_v19, 0  ;;  %v3900_v19 = vsel %vm3122_vm3, %v2561_v17, %v1740_v34  ;;  %v712_v24 = vrot.slane %v710_v44, 4  ;;  %v715_v39 = vrot.slane %v713_v6, 5  ;;  %v3951_v34 = vld [vmem:[%s3350_s19 + $0x48] sm:$0xf] }
  0xbc   : > { %v1269_v53 = vpop.permute.xlu0 %1268  ;;  %v3917_v26 = vcombine.low %v3658_v54, %v3900_v19  ;;  %v1749_v12 = vor.u32 %v1748_v5, %v1745_v7  ;;  %v1766_v18 = vshll.u32 %v3951_v34, 16  ;;  %v1581_v7 = vld [vmem:[%s3350_s19 + $0x4c] sm:$0x1] }
  0xbd   : > { %v1337_v15 = vsel %vm917_vm14, %v1329_v30, %v1269_v53  ;;  %v3882_v3 = vpop.permute.xlu1 %1185  ;;  %v2848_v30 = vld [vmem:[%s4257_s4 + $0x48] sm:$0xff]   ;;  %v1754_v53 = vrot.slane %v1752_v60, 5  ;;  %v1772_v60 = vshll.u32 %v1581_v7, 16 }
  0xbe   : > { %2665 = vmatprep.mubr.msk.bf16.mxu0 %vm1381_vm15, %v1337_v15  ;;  %1812 = vrot.lane.b32.xlu0 %v3864_v32, %s4303_s30  ;;  %v716_v15 = vor.u32 %v715_v39, %v712_v24  ;;  %v1768_v44 = vrot.slane %v1766_v18, 5 }
  0xbf   : > { %2666 = vmatmul.mubr.msk.bf16.vlgmr.msra.gmra.mxu0 %vm1381_vm15, %v1339_v22  ;;  %816 = vrot.lane.b32.xlu1 %v2485_v51, %s4307_s25  ;;  %v1750_v22 = vrot.slane %v1749_v12, 4 }
  0xc0   : > { %v3904_v11 = vpop.permute.xlu0 %1183  ;;  %2692 = vmatpush3.bf16.msra.mxu0 %v2017_v59  ;;  %v719_v59 = vshll.u32 %v522_v31, 16 }
  0xc1   : > { %v3909_v48 = vpop.permute.xlu1 %1205  ;;  %2693 = vmatprep.subr.bf16.mxu0 %v2845_v43  ;;  %v1755_v58 = vsel %vm3155_vm5, %v1750_v22, %v1754_v53  ;;  %v1284_v57 = vsel %vm850_vm7, %v3116_v8, %v3904_v11 }
  0xc2   : > { %805 = vrot.lane.b32.xlu0 %v2482_v50, %s4311_s15  ;;  %v1763_v50 = vshrl.u32 %v3951_v34, 16  ;;  %v721_v9 = vrot.slane %v719_v59, 5  ;;  %v2583_v5 = vcombine.low %v3855_v55, %v1755_v58  ;;  %v3990_v55 = vcombine.low %v3583_v52, %v3775_v27 }
  0xc3   : > { %1843 = vrot.lane.b32.xlu1 %v2578_v46, %s4305_s1  ;;  %v2486_v46 = vcombine.low %v3806_v29, %v3921_v49  ;;  %v2579_v29 = vcombine.low %v3775_v27, %v3879_v38  ;;  %v1774_v52 = vrot.slane %v1772_v60, 5 }
  0xc4   : > { %v3933_v47 = vpop.permute.xlu0 %1203  ;;  %2694 = vmatpush3.bf16.msra.mxu0 %v2845_v43 }
  0xc5   : > { %v3936_v1 = vpop.permute.xlu1 %1218  ;;  %2695 = vmatprep.subr.bf16.mxu0 %v2846_v13 }
  0xc6   : > { %1832 = vrot.lane.b32.xlu0 %v3917_v26, %s4304_s29 }
  0xc7   : > { %826 = vrot.lane.b32.xlu1 %v3925_v16, %s4308_s22 }
  0xc8   : > { %v1217_v51 = vpop.permute.xlu0 %1216  ;;  %2696 = vmatpush3.bf16.msra.mxu0 %v2846_v13  ;;  %v1765_v13 = vrot.slane %v1763_v50, 4 }
  0xc9   : > { %v3948_v17 = vpop.permute.xlu1 %1231  ;;  %2697 = vmatprep.subr.bf16.mxu0 %v2847_v45 }
  0xca   : > { %818 = vrot.lane.b32.xlu0 %v2486_v46, %s4307_s25  ;;  %v1769_v12 = vor.u32 %v1768_v44, %v1765_v13 }
  0xcb   : > { %1856 = vrot.lane.b32.xlu1 %v2582_v4, %s4311_s15  ;;  %v717_v4 = vrot.slane %v716_v15, 4  ;;  %v2563_v15 = vrot.slane %v3951_v34, 9 }
  0xcc   : > { %v1230_v43 = vpop.permute.xlu0 %1229  ;;  %2698 = vmatpush3.bf16.msra.mxu0 %v2847_v45  ;;  %v1760_v45 = vrot.slane %v1579_v2, 5  ;;  %v727_v2 = vrot.slane %v522_v31, 5 }
  0xcd   : > { %v3965_v21 = vpop.permute.xlu1 %1244  ;;  %2699 = vmatprep.subr.bf16.mxu0 %v2848_v30 }
  0xce   : > { %1845 = vrot.lane.b32.xlu0 %v2579_v29, %s4305_s1  ;;  %v1761_v54 = vsel %vm3122_vm3, %v2562_v36, %v1760_v45  ;;  %v1770_v29 = vrot.slane %v1769_v12, 4 }
  0xcf   : > { %836 = vrot.lane.b32.xlu1 %v3784_v28, %s4309_s24  ;;  %v722_v28 = vsel %vm3155_vm5, %v717_v4, %v721_v9  ;;  %v1287_v4 = vsel %vm850_vm7, %v3394_v37, %v3882_v3 }
  0xd0   : > { %v1243_v33 = vpop.permute.xlu0 %1242  ;;  %2700 = vmatpush3.bf16.msra.mxu0 %v2848_v30  ;;  %v2488_v39 = vcombine.low %v3872_v62, %v722_v28  ;;  %v1293_v62 = vsel %vm863_vm8, %v1284_v57, %v3933_v47  ;;  %v2588_v47 = vcombine.low %v3879_v38, %v3951_v34  ;;  %v1775_v53 = vsel %vm3155_vm5, %v1770_v29, %v1774_v52 }
  0xd1   : > { %v3974_v6 = vpop.permute.xlu1 %753  ;;  %v1301_v27 = vsel %vm872_vm9, %v1293_v62, %v1217_v51  ;;  %v2589_v38 = vcombine.low %v1755_v58, %v1775_v53  ;;  %v1295_v9 = vsel %vm863_vm8, %v1287_v4, %v3909_v48 }
  0xd2   : > { %828 = vrot.lane.b32.xlu0 %v2487_v63, %s4308_s22  ;;  %v1309_v8 = vsel %vm881_vm10, %v1301_v27, %v1230_v43  ;;  %v1303_v58 = vsel %vm872_vm9, %v1295_v9, %v3936_v1 }
  0xd3   : > { %1869 = vrot.lane.b32.xlu1 %v2586_v41, %s4307_s25  ;;  %v2462_v41 = vrot.slane %v3907_v25, 9  ;;  %v1317_v11 = vsel %vm890_vm11, %v1309_v8, %v1243_v33  ;;  %v1311_v10 = vsel %vm881_vm10, %v1303_v58, %v3948_v17 }
  0xd4   : > { %v1253_v46 = vpop.permute.xlu0 %1252  ;;  %v1319_v44 = vsel %vm890_vm11, %v1311_v10, %v3965_v21 }
  0xd5   : > { %v1263_v24 = vpop.permute.xlu1 %1262  ;;  %v728_v25 = vsel %vm3122_vm3, %v2462_v41, %v727_v2  ;;  %v1325_v51 = vsel %vm899_vm12, %v1317_v11, %v1253_v46 }
  0xd6   : > { %1858 = vrot.lane.b32.xlu0 %v2583_v5, %s4311_s15  ;;  %v1333_v59 = vsel %vm908_vm13, %v1325_v51, %v1263_v24  ;;  %v2489_v18 = vcombine.low %v3921_v49, %v728_v25  ;;  %v2851_v24 = vld [vmem:[%s3236_s12] sm:$0xf]  ;;  %s2955_s15 = smov [#allocation2]  }
  0xd7   : > { %846 = vrot.lane.b32.xlu1 %v3821_v56, %s4310_s28  ;;  %v2587_v56 = vcombine.low %v3900_v19, %v1761_v54  ;;  %v1780_v19 = vrot.slane %v1581_v7, 5 }
  0xd8   : > { %v1255_v30 = vpop.permute.xlu0 %1254 }
  0xd9   : > { %v774_v22 = vpop.permute.xlu1 %773  ;;  %v1781_v40 = vsel %vm3122_vm3, %v2563_v15, %v1780_v19  ;;  %v1327_v37 = vsel %vm899_vm12, %v1319_v44, %v1255_v30 }
  0xda   : > { %838 = vrot.lane.b32.xlu0 %v2488_v39, %s4309_s24  ;;  %v2590_v49 = vcombine.low %v1761_v54, %v1781_v40  ;;  %v2852_v39 = vld [vmem:[%s3236_s12 + $0x8] sm:$0xf]  ;;  %s459_s12 = sand.u32 1, %s2921_s14  }
  0xdb   : > { %1879 = vrot.lane.b32.xlu1 %v3990_v55, %s4308_s22  ;;  %v2463_v57 = vcombine.low %v2851_v24, %v2852_v39  ;;  %s2446_s21 = sshll.u32 %s459_s12, 6  ;;  %s4201_s18 = scalar_lea.sflag [#allocation3], %s459_s12 }
  0xdc   : > { %v756_v31 = vpop.permute.xlu0 %755 }
  0xdd   : > { %v1273_v43 = vpop.permute.xlu1 %1272 }
  0xde   : > { %1871 = vrot.lane.b32.xlu0 %v2587_v56, %s4307_s25  ;;  %v1341_v50 = vsel %vm917_vm14, %v1333_v59, %v1273_v43  ;;  %s4167_s25 = scalar_lea.vmem [#allocation2], %s2446_s21 }
  0xdf   : > { %1881 = vrot.lane.b32.xlu1 %v2588_v47, %s4308_s22  ;;  %2669 = vmatprep.mubr.msk.bf16.mxu0 %vm1381_vm15, %v1341_v50  ;;  %s496_s22 = scalar_select %p495_p2, %s2929_s16, 7 }
  0xe0   : > { %v1265_v63 = vpop.permute.xlu0 %1264 }
  0xe1   : > { %v787_v34 = vpop.permute.xlu1 %786  ;;  %v1335_v3 = vsel %vm908_vm13, %v1327_v37, %v1265_v63 }
  0xe2   : > { %848 = vrot.lane.b32.xlu0 %v2489_v18, %s4310_s28 }
  0xe3   : > { %1891 = vrot.lane.b32.xlu1 %v2589_v38, %s4309_s24 }
  0xe4   : > { %v776_v33 = vpop.permute.xlu0 %775 }
  0xe5   : > { %v1807_v13 = vpop.permute.xlu1 %1806 }
  0xe6   : > { %1889 = vrot.lane.b32.xlu0 %v3864_v32, %s4309_s24  ;;  %v1905_v40 = vsel %vm850_vm7, %v2564_v0, %v1807_v13  ;;  %s2450_s24 = sshll.u32 %s496_s22, 3  ;;  %s2618_s22 = sshll.u32 %s2929_s16, 3 }
  0xe7   : > { %1901 = vrot.lane.b32.xlu1 %v2590_v49, %s4310_s28  ;;  %s499_s0 = sadd.s32 %s2451_s11, %s2450_s24  ;;  %s2619_s24 = sshll.u32 %s2933_s17, 6 }
  0xe8   : > { %v1275_v48 = vpop.permute.xlu0 %1274  ;;  %s2452_s2 = sshll.u32 %s499_s0, 3  ;;  %s2290_s11 = sadd.s32 %s2619_s24, %s2618_s22 }
  0xe9   : > { %v1343_v1 = vsel %vm917_vm14, %v1335_v3, %v1275_v48  ;;  %v800_v7 = vpop.permute.xlu1 %799  ;;  %s4155_s19 = scalar_lea.vmem %s4256_s3, %s2452_s2  ;;  %s2620_s16 = sshll.u32 %s2290_s11, 7 }
  0xea   : > { %1899 = vrot.lane.b32.xlu0 %v3917_v26, %s4310_s28  ;;  %2670 = vmatmul.mubr.msk.bf16.gmra.mxu0 %vm1381_vm15, %v1343_v1  ;;  %v853_v26 = vsel %vm850_vm7, %v2463_v57, %v3974_v6  ;;  %v856_v6 = vsel %vm850_vm7, %v3598_v61, %v756_v31  ;;  %s2293_s17 = sshll.u32 %s4167_s25, 4  ;;  %s4191_s23 = scalar_lea.hbm %s4263_s10, %s2620_s16  ;;  %s4195_s17 = int_to_ptr.vmem [resolvable:$true] %s2293_s17 }
  0xeb   : > { %v865_v2 = vsel %vm863_vm8, %v853_v26, %v774_v22  ;;  %v867_v22 = vsel %vm863_vm8, %v856_v6, %v776_v33  ;;  %s2853_s29 = scalar_lea.vmem %s4195_s17, 1024 }
  0xec   : > { %v789_v17 = vpop.permute.xlu0 %788  ;;  %v874_v30 = vsel %vm872_vm9, %v865_v2, %v787_v34  ;;  %p2854_p4 = scmp.ne.s32.totalorder %s4195_s17, %s2853_s29 }
  0xed   : > { %v1827_v21 = vpop.permute.xlu1 %1826  ;;  %v883_v52 = vsel %vm881_vm10, %v874_v30, %v800_v7  ;;  %v876_v53 = vsel %vm872_vm9, %v867_v22, %v789_v17 }
  0xee   : > { %v1916_v34 = vsel %vm863_vm8, %v1905_v40, %v1827_v21  ;;  %p2855_p5 = pnand %p2854_p4, %p3063_p3 }
  0xf0   : > { %v1809_v32 = vpop.permute.xlu0 %1808  ;;  %p2856_p6 = pneg %p2855_p5 }
  0xf1   : > { %v813_v5 = vpop.permute.xlu1 %812  ;;  %v1908_v23 = vsel %vm850_vm7, %v3716_v42, %v1809_v32 }
  0xf2   : > { %v892_v27 = vsel %vm890_vm11, %v883_v52, %v813_v5 }
  0xf4   : > { %v802_v28 = vpop.permute.xlu0 %801 }
  0xf5   : > { %v1840_v36 = vpop.permute.xlu1 %1839  ;;  %v885_v19 = vsel %vm881_vm10, %v876_v53, %v802_v28 }
  0xf6   : > { %v1924_v9 = vsel %vm872_vm9, %v1916_v34, %v1840_v36 }
  0xf8   : > { %v1829_v45 = vpop.permute.xlu0 %1828 }
  0xf9   : > { %v823_v46 = vpop.permute.xlu1 %822  ;;  %v1918_v0 = vsel %vm863_vm8, %v1908_v23, %v1829_v45 }
  0xfa   : > { %v901_v8 = vsel %vm899_vm12, %v892_v27, %v823_v46 }
  0xfc   : > { %v815_v12 = vpop.permute.xlu0 %814 }
  0xfd   : > { %v1853_v60 = vpop.permute.xlu1 %1852  ;;  %v894_v59 = vsel %vm890_vm11, %v885_v19, %v815_v12 }
  0xfe   : > { %v1932_v58 = vsel %vm881_vm10, %v1924_v9, %v1853_v60 }
 0x100   : > { %v1842_v54 = vpop.permute.xlu0 %1841 }
 0x101   : > { %v833_v41 = vpop.permute.xlu1 %832  ;;  %v1926_v48 = vsel %vm872_vm9, %v1918_v0, %v1842_v54 }
 0x102   : > { %v910_v11 = vsel %vm908_vm13, %v901_v8, %v833_v41 }
 0x104   : > { %v825_v62 = vpop.permute.xlu0 %824 }
 0x105   : > { %v1866_v29 = vpop.permute.xlu1 %1865  ;;  %v903_v43 = vsel %vm899_vm12, %v894_v59, %v825_v62 }
 0x106   : > { %v1940_v33 = vsel %vm890_vm11, %v1932_v58, %v1866_v29 }
 0x108   : > { %v1855_v56 = vpop.permute.xlu0 %1854 }
 0x109   : > { %v843_v25 = vpop.permute.xlu1 %842  ;;  %v1934_v7 = vsel %vm881_vm10, %v1926_v48, %v1855_v56 }
 0x10a   : > { %v919_v47 = vsel %vm917_vm14, %v910_v11, %v843_v25 }
 0x10b   : > { %2683 = vmatprep.mubr.msk.bf16.mxu1 %vm1381_vm15, %v919_v47 }
 0x10c   : > { %v835_v51 = vpop.permute.xlu0 %834 }
 0x10d   : > { %v1876_v15 = vpop.permute.xlu1 %1875  ;;  %v912_v18 = vsel %vm908_vm13, %v903_v43, %v835_v51 }
 0x10e   : > { %v1948_v10 = vsel %vm899_vm12, %v1940_v33, %v1876_v15 }
 0x110   : > { %v1868_v50 = vpop.permute.xlu0 %1867 }
 0x111   : > { %v845_v38 = vpop.permute.xlu1 %844  ;;  %v1942_v17 = vsel %vm890_vm11, %v1934_v7, %v1868_v50 }
 0x112   : > { %v921_v61 = vsel %vm917_vm14, %v912_v18, %v845_v38 }
 0x113   : > { %2684 = vmatmul.mubr.msk.bf16.vlgmr.msra.gmra.mxu1 %vm1381_vm15, %v921_v61 }
 0x114   : > { %v758_v31 = vpop.permute.xlu0 %757 }
 0x115   : > { %v1886_v63 = vpop.permute.xlu1 %1885  ;;  %v859_v29 = vsel %vm850_vm7, %v3663_v35, %v758_v31 }
 0x116   : > { %v1956_v37 = vsel %vm908_vm13, %v1948_v10, %v1886_v63 }
 0x118   : > { %v1878_v4 = vpop.permute.xlu0 %1877 }
 0x119   : > { %v778_v49 = vpop.permute.xlu1 %777  ;;  %v1950_v21 = vsel %vm899_vm12, %v1942_v17, %v1878_v4 }
 0x11a   : > { %v869_v52 = vsel %vm863_vm8, %v859_v29, %v778_v49 }
 0x11c   : > { %v760_v44 = vpop.permute.xlu0 %759 }
 0x11d   : > { %v1896_v3 = vpop.permute.xlu1 %1895  ;;  %v862_v19 = vsel %vm850_vm7, %v3925_v16, %v760_v44 }
 0x11e   : > { %v1964_v14 = vsel %vm917_vm14, %v1956_v37, %v1896_v3 }
 0x11f   : > { %2701 = vmatprep.mubr.msk.bf16.mxu0 %vm1381_vm15, %v1964_v14 }
 0x120   : > { %v1888_v13 = vpop.permute.xlu0 %1887 }
 0x121   : > { %v791_v1 = vpop.permute.xlu1 %790  ;;  %v1958_v28 = vsel %vm908_vm13, %v1950_v21, %v1888_v13  ;;  %v2134_v21 = vld [vmem:[%s4258_s5] sm:$0xf] }
 0x122   : > { %v878_v8 = vsel %vm872_vm9, %v869_v52, %v791_v1  ;;  %2722 = vmatprep.subr.msk.bf16.mxu1 %vm1390_vm6, %v2134_v21  ;;  %v2609_v52 = vld [vmem:[%s4259_s6] ss:$0 sm:$0xff] }
 0x124   : > { %v780_v5 = vpop.permute.xlu0 %779 }
 0x125   : > { %v1898_v36 = vpop.permute.xlu1 %1897  ;;  %v871_v59 = vsel %vm863_vm8, %v862_v19, %v780_v5  ;;  %v2148_v5 = vsel %vm1390_vm6, %v2134_v21, 0 }
 0x126   : > { %v1966_v42 = vsel %vm917_vm14, %v1958_v28, %v1898_v36  ;;  %2710 = vmatpush3.bf16.msra.mxu1 %v2148_v5 }
 0x127   : > { %2702 = vmatmul.mubr.msk.bf16.vlgmr.msra.gmra.mxu0 %vm1381_vm15, %v1966_v42 }
 0x128   : > { %v1811_v32 = vpop.permute.xlu0 %1810 }
 0x129   : > { %v804_v45 = vpop.permute.xlu1 %803  ;;  %v1911_v9 = vsel %vm850_vm7, %v3762_v20, %v1811_v32 }
 0x12a   : > { %v887_v11 = vsel %vm881_vm10, %v878_v8, %v804_v45 }
 0x12c   : > { %v793_v46 = vpop.permute.xlu0 %792 }
 0x12d   : > { %v1831_v12 = vpop.permute.xlu1 %1830  ;;  %v880_v43 = vsel %vm872_vm9, %v871_v59, %v793_v46 }
 0x12e   : > { %v1920_v58 = vsel %vm863_vm8, %v1911_v9, %v1831_v12 }
 0x130   : > { %v1813_v60 = vpop.permute.xlu0 %1812 }
 0x131   : > { %v817_v24 = vpop.permute.xlu1 %816  ;;  %v1914_v34 = vsel %vm850_vm7, %v3990_v55, %v1813_v60 }
 0x132   : > { %v896_v25 = vsel %vm890_vm11, %v887_v11, %v817_v24 }
 0x134   : > { %v806_v39 = vpop.permute.xlu0 %805 }
 0x135   : > { %v1844_v57 = vpop.permute.xlu1 %1843  ;;  %v889_v18 = vsel %vm881_vm10, %v880_v43, %v806_v39 }
 0x136   : > { %v1928_v10 = vsel %vm872_vm9, %v1920_v58, %v1844_v57 }
 0x138   : > { %v1833_v54 = vpop.permute.xlu0 %1832 }
 0x139   : > { %v827_v41 = vpop.permute.xlu1 %826  ;;  %v1922_v49 = vsel %vm863_vm8, %v1914_v34, %v1833_v54 }
 0x13a   : > { %v905_v47 = vsel %vm899_vm12, %v896_v25, %v827_v41 }
 0x13c   : > { %v819_v26 = vpop.permute.xlu0 %818 }
 0x13d   : > { %v1857_v2 = vpop.permute.xlu1 %1856  ;;  %v898_v61 = vsel %vm890_vm11, %v889_v18, %v819_v26 }
 0x13e   : > { %v1936_v55 = vsel %vm881_vm10, %v1928_v10, %v1857_v2 }
 0x140   : > { %v1846_v62 = vpop.permute.xlu0 %1845 }
 0x141   : > { %v837_v30 = vpop.permute.xlu1 %836  ;;  %v1930_v33 = vsel %vm872_vm9, %v1922_v49, %v1846_v62 }
 0x142   : > { %v914_v22 = vsel %vm908_vm13, %v905_v47, %v837_v30 }
 0x144   : > { %v829_v27 = vpop.permute.xlu0 %828 }
 0x145   : > { %v1870_v56 = vpop.permute.xlu1 %1869  ;;  %v907_v31 = vsel %vm899_vm12, %v898_v61, %v829_v27 }
 0x146   : > { %v1944_v20 = vsel %vm890_vm11, %v1936_v55, %v1870_v56 }
 0x148   : > { %v1859_v6 = vpop.permute.xlu0 %1858 }
 0x149   : > { %v847_v51 = vpop.permute.xlu1 %846  ;;  %v1938_v44 = vsel %vm881_vm10, %v1930_v33, %v1859_v6 }
 0x14a   : > { %v923_v53 = vsel %vm917_vm14, %v914_v22, %v847_v51  ;;  %v2610_v22 = vld [vmem:[%s4260_s7] ss:$0 sm:$0xff] }
 0x14b   : > { %2687 = vmatprep.mubr.msk.bf16.mxu1 %vm1381_vm15, %v923_v53 }
 0x14c   : > { %v839_v35 = vpop.permute.xlu0 %838 }
 0x14d   : > { %v1880_v15 = vpop.permute.xlu1 %1879  ;;  %v916_v63 = vsel %vm908_vm13, %v907_v31, %v839_v35 }
 0x14e   : > { %v1952_v0 = vsel %vm899_vm12, %v1944_v20, %v1880_v15 }
 0x150   : > { %v1872_v50 = vpop.permute.xlu0 %1871 }
 0x151   : > { %v1882_v38 = vpop.permute.xlu1 %1881  ;;  %v1946_v3 = vsel %vm890_vm11, %v1938_v44, %v1872_v50 }
 0x152   : > { %v1954_v23 = vsel %vm899_vm12, %v1946_v3, %v1882_v38 }
 0x154   : > { %v849_v40 = vpop.permute.xlu0 %848 }
 0x155   : > { %v925_v16 = vsel %vm917_vm14, %v916_v63, %v849_v40  ;;  %v1892_v4 = vpop.permute.xlu1 %1891 }
 0x156   : > { %2688 = vmatmul.mubr.msk.bf16.gmra.mxu1 %vm1381_vm15, %v925_v16  ;;  %v1962_v13 = vsel %vm908_vm13, %v1954_v23, %v1892_v4 }
 0x158   : > { %v1890_v37 = vpop.permute.xlu0 %1889 }
 0x159   : > { %v1902_v14 = vpop.permute.xlu1 %1901  ;;  %v1960_v48 = vsel %vm908_vm13, %v1952_v0, %v1890_v37 }
 0x15a   : > { %v1970_v7 = vsel %vm917_vm14, %v1962_v13, %v1902_v14 }
 0x15c   : > { %v1900_v1 = vpop.permute.xlu0 %1899 }
 0x15d   : > { %v1968_v17 = vsel %vm917_vm14, %v1960_v48, %v1900_v1 }
 0x15e   : > { %2705 = vmatprep.mubr.msk.bf16.mxu0 %vm1381_vm15, %v1968_v17 }
 0x15f   : > { %2706 = vmatmul.mubr.msk.bf16.gmra.mxu0 %vm1381_vm15, %v1970_v7 }
 0x17f   : > { %v2667_v28 = vpop.f32.mrf.mxu0 }
 0x181   : > { %v1428_v36 = vpop.f32.mrf.mxu0 }
 0x183   : > { %v2668_v42 = vpop.f32.mrf.mxu0 }
 0x185   : > { %v1431_v32 = vpop.f32.mrf.mxu0 }
 0x1aa   : > { %v2671_v45 = vpop.f32.mrf.mxu0 }
 0x1ac   : > { %v1444_v46 = vpop.f32.mrf.mxu0 }
 0x1ae   : > { %v2672_v60 = vpop.f32.mrf.mxu0 }
 0x1b0   : > { %v1447_v39 = vpop.f32.mrf.mxu0 }
 0x1d3   : > { %v2685_v12 = vpop.f32.mrf.mxu1 }
 0x1d4   : > { %v1540_v54 = vadd.f32 %v2685_v12, %v2667_v28  ;;  %v2615_v12 = vld [vmem:[%s4261_s8] ss:$0 sm:$0xff] }
 0x1d5   : > { %v1531_v24 = vpop.f32.mrf.mxu1 }
 0x1d6   : > { %v1532_v26 = vadd.f32 %v1531_v24, %v1428_v36  ;;  %v2616_v24 = vld [vmem:[%s4262_s9] ss:$0 sm:$0xff] }
 0x1d7   : > { %v2686_v57 = vpop.f32.mrf.mxu1 }
 0x1d8   : > { %v1543_v29 = vadd.f32 %v2686_v57, %v2668_v42  ;;  %v2247_v57 = vld [vmem:[%s4155_s19 + $0x10] sm:$0xff] }
 0x1d9   : > { %v1534_v2 = vpop.f32.mrf.mxu1 }
 0x1da   : > { %v1535_v56 = vadd.f32 %v1534_v2, %v1431_v32  ;;  %v2245_v2 = vld [vmem:[%s4155_s19] sm:$0xff] }
 0x1e7   : > { %v2703_v41 = vpop.f32.mrf.mxu0 }
 0x1e8   : > { %v2086_v62 = vadd.f32 %v2703_v41, %v1540_v54 }
 0x1e9   : > { %v2053_v30 = vpop.f32.mrf.mxu0 }
 0x1ea   : > { %v2084_v27 = vadd.f32 %v2053_v30, %v1532_v26  ;;  %v2101_v47 = vmul.f32 %v2609_v52, %v2086_v62 }
 0x1eb   : > { %v2704_v8 = vpop.f32.mrf.mxu0 }
 0x1ec   : > { %v2099_v11 = vmul.f32 %v2609_v52, %v2084_v27  ;;  %v2087_v25 = vadd.f32 %v2704_v8, %v1543_v29  ;;  %v2116_v59 = vadd.f32 %v2610_v22, %v2101_v47  ;;  %v2248_v27 = vld [vmem:[%s4155_s19 + $0x18] sm:$0xff] }
 0x1ed   : > { %v2056_v6 = vpop.f32.mrf.mxu0 }
 0x1ee   : > { %v2102_v51 = vmul.f32 %v2609_v52, %v2087_v25  ;;  %v2085_v53 = vadd.f32 %v2056_v6, %v1535_v56  ;;  %v2114_v35 = vadd.f32 %v2610_v22, %v2099_v11  ;;  %v2124_v61 = vmax.f32 %v2116_v59, 0.0  ;;  %v2246_v6 = vld [vmem:[%s4155_s19 + $0x8] sm:$0xff] }
 0x1f0   : > { %v2117_v15 = vadd.f32 %v2610_v22, %v2102_v51  ;;  %v2100_v19 = vmul.f32 %v2609_v52, %v2085_v53  ;;  %v2122_v18 = vmax.f32 %v2114_v35, 0.0 }
 0x1f2   : > { %v2115_v43 = vadd.f32 %v2610_v22, %v2100_v19  ;;  %v2125_v50 = vmax.f32 %v2117_v15, 0.0 }
 0x1f4   : > { %v2123_v38 = vmax.f32 %v2115_v43, 0.0  ;;  %v2131_v63 = vpack.c.bf16 %v2125_v50, %v2124_v61  ;;  %v2251_v50 = vld [vmem:[%s4155_s19 + $0x30] sm:$0xff] }
 0x1f6   : > { %v2130_v31 = vpack.c.bf16 %v2123_v38, %v2122_v18 }
 0x1f8   : > { %2711 = vmatprep.mubr.msk.bf16.mxu1 %vm850_vm7, %v2130_v31  ;;  %v2249_v31 = vld [vmem:[%s4155_s19 + $0x20] sm:$0xff] }
 0x1f9   : > { %2712 = vmatmul.mubr.msk.bf16.vlgmr.msra.gmra.mxu1 %vm850_vm7, %v2131_v63 }
 0x216   : > { %v2689_v40 = vpop.f32.mrf.mxu1 }
 0x217   : > { %v1556_v4 = vadd.f32 %v2689_v40, %v2671_v45 }
 0x218   : > { %v1547_v34 = vpop.f32.mrf.mxu1 }
 0x219   : > { %v1548_v49 = vadd.f32 %v1547_v34, %v1444_v46 }
 0x21a   : > { %v2690_v16 = vpop.f32.mrf.mxu1 }
 0x21b   : > { %v1559_v44 = vadd.f32 %v2690_v16, %v2672_v60 }
 0x21c   : > { %v1550_v58 = vpop.f32.mrf.mxu1 }
 0x21d   : > { %v1551_v3 = vadd.f32 %v1550_v58, %v1447_v39 }
 0x21f   : > { %v2707_v9 = vpop.f32.mrf.mxu0 }
 0x220   : > { %v2090_v33 = vadd.f32 %v2707_v9, %v1556_v4  ;;  %v2252_v4 = vld [vmem:[%s4155_s19 + $0x38] sm:$0xff] }
 0x221   : > { %v2069_v10 = vpop.f32.mrf.mxu0 }
 0x222   : > { %v2088_v37 = vadd.f32 %v2069_v10, %v1548_v49  ;;  %v2105_v23 = vmul.f32 %v2609_v52, %v2090_v33 }
 0x223   : > { %v2708_v55 = vpop.f32.mrf.mxu0 }
 0x224   : > { %v2103_v14 = vmul.f32 %v2609_v52, %v2088_v37  ;;  %v2091_v20 = vadd.f32 %v2708_v55, %v1559_v44  ;;  %v2120_v21 = vadd.f32 %v2610_v22, %v2105_v23  ;;  %v2250_v44 = vld [vmem:[%s4155_s19 + $0x28] sm:$0xff]  ;;  %s2857_s19 = sshll.u32 %s2955_s15, 4  ;;  %s2858_s19 = int_to_ptr.vmem [resolvable:$false] %s2857_s19 }
 0x225   : > { %v2072_v0 = vpop.f32.mrf.mxu0  ;;  %s2859_s28 = scalar_lea.vmem %s2858_s19, 2048  ;;  %p2860_p7 = scmp.lt.s32.totalorder %s4195_s17, %s2858_s19 }
 0x226   : > { %v2106_v13 = vmul.f32 %v2609_v52, %v2091_v20  ;;  %v2089_v48 = vadd.f32 %v2072_v0, %v1551_v3  ;;  %v2118_v1 = vadd.f32 %v2610_v22, %v2103_v14  ;;  %v2128_v32 = vmax.f32 %v2120_v21, 0.0  ;;  %p2861_p9 = scmp.lt.s32.totalorder %s2859_s28, %s2853_s29 }
 0x228   : > { %v2121_v7 = vadd.f32 %v2610_v22, %v2106_v13  ;;  %v2104_v17 = vmul.f32 %v2609_v52, %v2089_v48  ;;  %v2126_v36 = vmax.f32 %v2118_v1, 0.0  ;;  %p2862_p10 = por %p2861_p9, %p2860_p7 }
 0x22a   : > { %v2119_v5 = vadd.f32 %v2610_v22, %v2104_v17  ;;  %v2129_v28 = vmax.f32 %v2121_v7, 0.0  ;;  %p2863_p11 = pnand %p2862_p10, %p2856_p6 }
 0x22c   : > { %v2127_v42 = vmax.f32 %v2119_v5, 0.0  ;;  %v2133_v46 = vpack.c.bf16 %v2129_v28, %v2128_v32 }
 0x22e   : > { %v2132_v45 = vpack.c.bf16 %v2127_v42, %v2126_v36 }
 0x230   : > { %2715 = vmatprep.mubr.msk.bf16.mxu1 %vm850_vm7, %v2132_v45 }
 0x231   : > { %2716 = vmatmul.mubr.msk.bf16.gmra.mxu1 %vm850_vm7, %v2133_v46 }
 0x2b9   : > { %v2713_v60 = vpop.f32.mrf.mxu1 }
 0x2ba   : > { %v2224_v39 = vmul.f32 %v2713_v60, %v2615_v12 }
 0x2bb   : > { %v2184_v54 = vpop.f32.mrf.mxu1 }
 0x2bc   : > { %v2239_v41 = vadd.f32 %v2616_v24, %v2224_v39  ;;  %v2222_v26 = vmul.f32 %v2615_v12, %v2184_v54 }
 0x2bd   : > { %v2714_v62 = vpop.f32.mrf.mxu1 }
 0x2be   : > { %v2255_v30 = vadd.f32 %v2247_v57, %v2239_v41  ;;  %v2237_v29 = vadd.f32 %v2616_v24, %v2222_v26  ;;  %v2225_v52 = vmul.f32 %v2714_v62, %v2615_v12 }
 0x2bf   : > { %v2187_v8 = vpop.f32.mrf.mxu1 }
 0x2c0   : > { %v2263_v56 = vmax.f32 %v2255_v30, 0.0  ;;  %v2253_v11 = vadd.f32 %v2245_v2, %v2237_v29  ;;  %v2240_v25 = vadd.f32 %v2616_v24, %v2225_v52  ;;  %v2223_v47 = vmul.f32 %v2615_v12, %v2187_v8 }
 0x2c2   : > { %2271 = vst.msk [vmem:[%s4167_s25 + $0x10] sm:$0xff] %vm881_vm10, %v2263_v56  ;;  %v2261_v22 = vmax.f32 %v2253_v11, 0.0  ;;  %v2256_v51 = vadd.f32 %v2248_v27, %v2240_v25  ;;  %v2238_v53 = vadd.f32 %v2616_v24, %v2223_v47 }
 0x2c4   : > { %2269 = vst.msk [vmem:[%s4167_s25] sm:$0xff] %vm881_vm10, %v2261_v22  ;;  %v2264_v35 = vmax.f32 %v2256_v51, 0.0  ;;  %v2254_v15 = vadd.f32 %v2246_v6, %v2238_v53 }
 0x2c6   : > { %2272 = vst.msk [vmem:[%s4167_s25 + $0x18] sm:$0xff] %vm881_vm10, %v2264_v35  ;;  %v2262_v19 = vmax.f32 %v2254_v15, 0.0 }
 0x2c8   : > { %2270 = vst.msk [vmem:[%s4167_s25 + $0x8] sm:$0xff] %vm881_vm10, %v2262_v19 }
 0x2f1   : > { %v2717_v59 = vpop.f32.mrf.mxu1 }
 0x2f2   : > { %v2228_v43 = vmul.f32 %v2717_v59, %v2615_v12 }
 0x2f3   : > { %v2200_v18 = vpop.f32.mrf.mxu1 }
 0x2f4   : > { %v2243_v38 = vadd.f32 %v2616_v24, %v2228_v43  ;;  %v2226_v61 = vmul.f32 %v2615_v12, %v2200_v18 }
 0x2f5   : > { %v2718_v63 = vpop.f32.mrf.mxu1 }
 0x2f6   : > { %v2259_v40 = vadd.f32 %v2251_v50, %v2243_v38  ;;  %v2241_v34 = vadd.f32 %v2616_v24, %v2226_v61  ;;  %v2229_v16 = vmul.f32 %v2718_v63, %v2615_v12 }
 0x2f7   : > { %v2203_v9 = vpop.f32.mrf.mxu1 }
 0x2f8   : > { %v2267_v49 = vmax.f32 %v2259_v40, 0.0  ;;  %v2257_v58 = vadd.f32 %v2249_v31, %v2241_v34  ;;  %v2244_v33 = vadd.f32 %v2616_v24, %v2229_v16  ;;  %v2227_v10 = vmul.f32 %v2615_v12, %v2203_v9 }
 0x2fa   : > { %2275 = vst.msk [vmem:[%s4167_s25 + $0x30] sm:$0xff] %vm881_vm10, %v2267_v49  ;;  %v2265_v37 = vmax.f32 %v2257_v58, 0.0  ;;  %v2260_v55 = vadd.f32 %v2252_v4, %v2244_v33  ;;  %v2242_v3 = vadd.f32 %v2616_v24, %v2227_v10 }
 0x2fc   : > { %2273 = vst.msk [vmem:[%s4167_s25 + $0x20] sm:$0xff] %vm881_vm10, %v2265_v37  ;;  %v2268_v14 = vmax.f32 %v2260_v55, 0.0  ;;  %v2258_v20 = vadd.f32 %v2250_v44, %v2242_v3 }
 0x2fe   : > { %2276 = vst.msk [vmem:[%s4167_s25 + $0x38] sm:$0xff] %vm881_vm10, %v2268_v14  ;;  %v2266_v23 = vmax.f32 %v2258_v20, 0.0 }
 0x300   : > { %2274 = vst.msk [vmem:[%s4167_s25 + $0x28] sm:$0xff] %vm881_vm10, %v2266_v23 }
 0x301   : > { %2866 = shalt.err (!%p2863_p11)
}
 0x302   : > { %s2867_s12 = scalar_lea.hbm %s4191_s23, 1024  ;;  %s2871_s25 = scalar_lea.hbm %s4263_s10, 16384 }
 0x303   : > { %p2868_p12 = scmp.ne.s32.totalorder %s4191_s23, %s2867_s12  ;;  %p2872_p1 = scmp.lt.s32.totalorder %s4191_s23, %s4263_s10 }
 0x304   : > { %p2873_p2 = scmp.lt.s32.totalorder %s2871_s25, %s2867_s12 }
 0x305   : > { %p2869_p13 = pnand %p2868_p12, %p3063_p3 }
 0x306   : > { %p2874_p4 = por %p2873_p2, %p2872_p1 }
 0x307   : > { %p2870_p0 = pneg %p2869_p13 }
 0x309   : > { %p2875_p5 = pnand %p2874_p4, %p2870_p0 }
 0x30b   : > { %2878 = shalt.err (!%p2875_p5)
}
 0x30c   : > { %s2956_s11 = smov 128  }
 0x30d   : > { %2727 = dma.vmem_to_hbm [thread:$0]  (%p3063_p3), %s4195_s17, 1024, %s4191_s23, %s4201_s18, %s2956_s11, %s2956_s11, %s4303_s30  }
 0x30e PF: > { %p2733_p6 = scmp.ge.s32.totalorder %s2945_s20, 2  ;;  %s2308_s16 = sand.u32 1, %s2917_s13  }
 0x30f   : > { %s2309_s0 = scalar_lea.sflag [#allocation3], %s2308_s16 }
 0x310   : > { %p2730_p7 = pnand %p2733_p6, %p3072_p8 }
 0x312   : > { %p2731_p9 = pneg %p2730_p7 }
 0x314   : > { %2912 = dma.done.wait (%p2731_p9), %s2309_s0, 1024  }
 0x315   : > { %2914 = vsyncadd (%p2731_p9), %s2309_s0, 4294966272  ;;  %s23_s20 = sadd.s32 1, %s2945_s20   ;;  %s4312_s26 = sld [smem:[#allocation5_spill]] }
 0x316   : > { %p20_p10 = scmp.ge.s32.totalorder %s23_s20, 18   ;;  %s4313_s15 = sld [smem:[#allocation10_spill]] }
 0x317   : > { %s4314_s16 = sld [smem:[#allocation6_spill]]  ;;  %s4318_s13 = smov %s2921_s14 }
 0x318   : > { %s4315_s17 = sld [smem:[#allocation7_spill]]  ;;  %22 = sbr.rel (!%p20_p10) target bundleno = 9 (0x9), region = 106 }
 0x319   : > { %s4316_s18 = sld [smem:[#allocation8_spill]] }
 0x31a   : > { %s4317_s19 = sld [smem:[#allocation9_spill]] }
 0x31b   : > { %s4319_s14 = smov %s4312_s26 }
 0x31d   :  { %2314 = vsyncpa [#allocation3], 1 }
 0x31e   :  { %2316 = vsyncpa [#allocation3 + $0x1], 1 }

</bundles_post_ra>
